<compile_context>
chip_gen: v5e
topology: v5e:2x2
jax: 0.10.0
libtpu: 0.0.40
codegen_flags: <defaults>
</compile_context>

<pallas_src>
import functools

import jax
import jax.numpy as jnp
from jax.experimental import pallas as pl
from jax.experimental.pallas import tpu as pltpu

N_EMBED = 384
HIDDEN = 4 * N_EMBED          # 1536
DROPOUT_P = 0.2


def _ffn_kernel(x_ref, w1_ref, b1_ref, w2_ref, b2_ref, *rest,
                dropout_p, apply_dropout, h_chunk):
    if apply_dropout:
        rbits_ref, o_ref = rest
    else:
        (o_ref,) = rest

    H = w1_ref.shape[1]
    n_chunks = H // h_chunk

    # Cast the row tile to bf16 once; accumulate output in f32.
    x = x_ref[...].astype(jnp.bfloat16)                      # (tm, D)
    acc = jnp.zeros(o_ref.shape, jnp.float32)                # (tm, D)

    # Chunk the hidden dimension so the live intermediate stays small.
    for c in range(n_chunks):
        lo, hi = c * h_chunk, (c + 1) * h_chunk
        h = jnp.dot(x, w1_ref[:, lo:hi],
                    preferred_element_type=jnp.float32)      # (tm, h_chunk) f32
        h = h + b1_ref[:, lo:hi]
        h = jnp.maximum(h, 0.0).astype(jnp.bfloat16)
        acc = acc + jnp.dot(h, w2_ref[lo:hi, :],
                            preferred_element_type=jnp.float32)

    y = acc + b2_ref[...]

    if apply_dropout:
        # Integer-domain keep test: drop iff bits < p * 2^32 (inverted dropout).
        thresh = jnp.uint32(round(dropout_p * (2 ** 32)))
        keep = rbits_ref[...] >= thresh
        y = jnp.where(keep, y * (1.0 / (1.0 - dropout_p)), 0.0)

    o_ref[...] = y.astype(o_ref.dtype)


def _round_up(a, b):
    return (a + b - 1) // b * b


def feed_forward(embed, w1, b1, w2, b2, *, key=None, train=True,
                 block_m=256, h_chunk=512):
    """embed: (B, T, n_embed) or (M, n_embed) float32."""
    orig_shape = embed.shape
    x = embed.reshape(-1, orig_shape[-1])
    M, D = x.shape
    H = w1.shape[1]
    assert H % h_chunk == 0

    # Row tile: keep it large; pad M up to a multiple of the tile.
    tm = min(block_m, _round_up(M, 8))
    M_pad = _round_up(M, tm)
    if M_pad != M:
        x = jnp.pad(x, ((0, M_pad - M), (0, 0)))

    # Pre-cast weights to bf16 once (MXU-native); biases stay f32.
    w1b = w1.astype(jnp.bfloat16)
    w2b = w2.astype(jnp.bfloat16)
    b1f = b1.astype(jnp.float32)
    b2f = b2.astype(jnp.float32)

    in_specs = [
        pl.BlockSpec((tm, D), lambda i: (i, 0)),   # x tile
        pl.BlockSpec((D, H), lambda i: (0, 0)),    # W1 (resident)
        pl.BlockSpec((1, H), lambda i: (0, 0)),    # b1
        pl.BlockSpec((H, D), lambda i: (0, 0)),    # W2 (resident)
        pl.BlockSpec((1, D), lambda i: (0, 0)),    # b2
    ]
    args = [x, w1b, b1f, w2b, b2f]

    if train:
        if key is None:
            key = jax.random.PRNGKey(0)
        rbits = jax.random.bits(key, (M_pad, D), dtype=jnp.uint32)
        in_specs.append(pl.BlockSpec((tm, D), lambda i: (i, 0)))  # dropout bits
        args.append(rbits)

    kernel = functools.partial(_ffn_kernel,
                               dropout_p=DROPOUT_P,
                               apply_dropout=train,
                               h_chunk=h_chunk)

    out = pl.pallas_call(
        kernel,
        out_shape=jax.ShapeDtypeStruct((M_pad, D), embed.dtype),
        grid=(M_pad // tm,),
        in_specs=in_specs,
        out_specs=pl.BlockSpec((tm, D), lambda i: (i, 0)),
        compiler_params=pltpu.CompilerParams(
            dimension_semantics=("parallel",),        # shard rows across TCs (v7x)
            vmem_limit_bytes=32 * 1024 * 1024),
    )(*args)

    out = out[:M]
    return out.reshape(orig_shape)


def init_params(key):
    """Deterministic PyTorch-style init: U(-1/sqrt(fan_in), 1/sqrt(fan_in))."""
    k1, k2, k3, k4 = jax.random.split(key, 4)
    lim1 = 1.0 / jnp.sqrt(N_EMBED)
    lim2 = 1.0 / jnp.sqrt(HIDDEN)
    w1 = jax.random.uniform(k1, (N_EMBED, HIDDEN), jnp.float32, -lim1, lim1)
    b1 = jax.random.uniform(k2, (1, HIDDEN), jnp.float32, -lim1, lim1)
    w2 = jax.random.uniform(k3, (HIDDEN, N_EMBED), jnp.float32, -lim2, lim2)
    b2 = jax.random.uniform(k4, (1, N_EMBED), jnp.float32, -lim2, lim2)
    return w1, b1, w2, b2


if __name__ == "__main__":
    key = jax.random.PRNGKey(0)
    k_in, k_par, k_drop = jax.random.split(key, 3)

    # Small example: batch=2, seq=8, n_embed=384 (module requires n_embed=384).
    B, T = 2, 8
    embed = jax.random.normal(k_in, (B, T, N_EMBED), dtype=jnp.float32)
    w1, b1, w2, b2 = init_params(k_par)

    # Train mode (dropout applied inside the kernel).
    out = feed_forward(embed, w1, b1, w2, b2, key=k_drop, train=True)
    out = jax.block_until_ready(out)
    assert out.shape == (B, T, N_EMBED) and out.dtype == jnp.float32
    zero_frac = float(jnp.mean(out == 0.0))
    assert 0.1 < zero_frac < 0.3, zero_frac   # ~20% of elements dropped

    # Eval mode vs pure-JAX f32 reference (bf16 matmuls -> loose tolerance).
    out_eval = feed_forward(embed, w1, b1, w2, b2, train=False)
    out_eval = jax.block_until_ready(out_eval)
    ref = jnp.maximum(embed.reshape(-1, N_EMBED) @ w1 + b1, 0.0) @ w2 + b2
    ref = ref.reshape(B, T, N_EMBED)
    assert jnp.allclose(out_eval, ref, atol=2e-2, rtol=2e-2)

    print("KERNEL_OK")
</pallas_src>

<mosaic_0001>
module attributes {stable_mosaic.version = 11 : i64} {
  func.func @_ffn_kernel(%arg0: i32, %arg1: memref<16x384xf32, #tpu.memory_space<vmem>>, %arg2: memref<384x1536xbf16, #tpu.memory_space<vmem>>, %arg3: memref<1x1536xf32, #tpu.memory_space<vmem>>, %arg4: memref<1536x384xbf16, #tpu.memory_space<vmem>>, %arg5: memref<1x384xf32, #tpu.memory_space<vmem>>, %arg6: memref<16x384xi32, #tpu.memory_space<vmem>>, %arg7: memref<16x384xf32, #tpu.memory_space<vmem>>) attributes {dimension_semantics = [#tpu.dimension_semantics<parallel>], iteration_bounds = array<i64: 1>, scalar_prefetch = 0 : i64, scratch_operands = 0 : i64, tpu.core_type = #tpu.core_type<tc>, window_params = [{transform_indices = @transform_0, window_bounds = array<i64: 16, 384>}, {pipeline_mode = #tpu.pipeline_mode<synchronous>, transform_indices = @transform_1, window_bounds = array<i64: 384, 1536>}, {pipeline_mode = #tpu.pipeline_mode<synchronous>, transform_indices = @transform_2, window_bounds = array<i64: 1, 1536>}, {pipeline_mode = #tpu.pipeline_mode<synchronous>, transform_indices = @transform_3, window_bounds = array<i64: 1536, 384>}, {pipeline_mode = #tpu.pipeline_mode<synchronous>, transform_indices = @transform_4, window_bounds = array<i64: 1, 384>}, {transform_indices = @transform_5, window_bounds = array<i64: 16, 384>}, {transform_indices = @transform_6, window_bounds = array<i64: 16, 384>}]} {
    %c0 = arith.constant 0 : index
    %c0_0 = arith.constant 0 : index
    %0 = vector.load %arg1[%c0, %c0_0] : memref<16x384xf32, #tpu.memory_space<vmem>>, vector<16x384xf32>
    %1 = arith.truncf %0 : vector<16x384xf32> to vector<16x384xbf16>
    %cst = arith.constant 0.000000e+00 : f32
    %2 = vector.broadcast %cst : f32 to vector<16x384xf32>
    %c0_1 = arith.constant 0 : index
    %c0_2 = arith.constant 0 : index
    %3 = vector.load %arg2[%c0_1, %c0_2] : memref<384x1536xbf16, #tpu.memory_space<vmem>>, vector<384x512xbf16>
    %cst_3 = arith.constant dense<0.000000e+00> : vector<16x512xf32>
    %4 = tpu.matmul %1, %3, %cst_3 {dimension_numbers = #tpu.dot_dimension_numbers<[1], [0], [0], [1], [0, 0, 1, 1], [], []>} : vector<16x384xbf16>, vector<384x512xbf16>, vector<16x512xf32> -> vector<16x512xf32>
    %c0_4 = arith.constant 0 : index
    %c0_5 = arith.constant 0 : index
    %5 = vector.load %arg3[%c0_4, %c0_5] : memref<1x1536xf32, #tpu.memory_space<vmem>>, vector<1x512xf32>
    %6 = vector.broadcast %5 : vector<1x512xf32> to vector<16x512xf32>
    %7 = arith.addf %4, %6 : vector<16x512xf32>
    %cst_6 = arith.constant 0.000000e+00 : f32
    %8 = vector.broadcast %cst_6 : f32 to vector<16x512xf32>
    %9 = arith.maximumf %7, %8 : vector<16x512xf32>
    %10 = arith.truncf %9 : vector<16x512xf32> to vector<16x512xbf16>
    %c0_7 = arith.constant 0 : index
    %c0_8 = arith.constant 0 : index
    %11 = vector.load %arg4[%c0_7, %c0_8] : memref<1536x384xbf16, #tpu.memory_space<vmem>>, vector<512x384xbf16>
    %cst_9 = arith.constant dense<0.000000e+00> : vector<16x384xf32>
    %12 = tpu.matmul %10, %11, %cst_9 {dimension_numbers = #tpu.dot_dimension_numbers<[1], [0], [0], [1], [0, 0, 1, 1], [], []>} : vector<16x512xbf16>, vector<512x384xbf16>, vector<16x384xf32> -> vector<16x384xf32>
    %13 = arith.addf %2, %12 : vector<16x384xf32>
    %c0_10 = arith.constant 0 : index
    %c512 = arith.constant 512 : index
    %14 = vector.load %arg2[%c0_10, %c512] : memref<384x1536xbf16, #tpu.memory_space<vmem>>, vector<384x512xbf16>
    %cst_11 = arith.constant dense<0.000000e+00> : vector<16x512xf32>
    %15 = tpu.matmul %1, %14, %cst_11 {dimension_numbers = #tpu.dot_dimension_numbers<[1], [0], [0], [1], [0, 0, 1, 1], [], []>} : vector<16x384xbf16>, vector<384x512xbf16>, vector<16x512xf32> -> vector<16x512xf32>
    %c0_12 = arith.constant 0 : index
    %c512_13 = arith.constant 512 : index
    %16 = vector.load %arg3[%c0_12, %c512_13] : memref<1x1536xf32, #tpu.memory_space<vmem>>, vector<1x512xf32>
    %17 = vector.broadcast %16 : vector<1x512xf32> to vector<16x512xf32>
    %18 = arith.addf %15, %17 : vector<16x512xf32>
    %cst_14 = arith.constant 0.000000e+00 : f32
    %19 = vector.broadcast %cst_14 : f32 to vector<16x512xf32>
    %20 = arith.maximumf %18, %19 : vector<16x512xf32>
    %21 = arith.truncf %20 : vector<16x512xf32> to vector<16x512xbf16>
    %c512_15 = arith.constant 512 : index
    %c0_16 = arith.constant 0 : index
    %22 = vector.load %arg4[%c512_15, %c0_16] : memref<1536x384xbf16, #tpu.memory_space<vmem>>, vector<512x384xbf16>
    %cst_17 = arith.constant dense<0.000000e+00> : vector<16x384xf32>
    %23 = tpu.matmul %21, %22, %cst_17 {dimension_numbers = #tpu.dot_dimension_numbers<[1], [0], [0], [1], [0, 0, 1, 1], [], []>} : vector<16x512xbf16>, vector<512x384xbf16>, vector<16x384xf32> -> vector<16x384xf32>
    %24 = arith.addf %13, %23 : vector<16x384xf32>
    %c0_18 = arith.constant 0 : index
    %c1024 = arith.constant 1024 : index
    %25 = vector.load %arg2[%c0_18, %c1024] : memref<384x1536xbf16, #tpu.memory_space<vmem>>, vector<384x512xbf16>
    %cst_19 = arith.constant dense<0.000000e+00> : vector<16x512xf32>
    %26 = tpu.matmul %1, %25, %cst_19 {dimension_numbers = #tpu.dot_dimension_numbers<[1], [0], [0], [1], [0, 0, 1, 1], [], []>} : vector<16x384xbf16>, vector<384x512xbf16>, vector<16x512xf32> -> vector<16x512xf32>
    %c0_20 = arith.constant 0 : index
    %c1024_21 = arith.constant 1024 : index
    %27 = vector.load %arg3[%c0_20, %c1024_21] : memref<1x1536xf32, #tpu.memory_space<vmem>>, vector<1x512xf32>
    %28 = vector.broadcast %27 : vector<1x512xf32> to vector<16x512xf32>
    %29 = arith.addf %26, %28 : vector<16x512xf32>
    %cst_22 = arith.constant 0.000000e+00 : f32
    %30 = vector.broadcast %cst_22 : f32 to vector<16x512xf32>
    %31 = arith.maximumf %29, %30 : vector<16x512xf32>
    %32 = arith.truncf %31 : vector<16x512xf32> to vector<16x512xbf16>
    %c1024_23 = arith.constant 1024 : index
    %c0_24 = arith.constant 0 : index
    %33 = vector.load %arg4[%c1024_23, %c0_24] : memref<1536x384xbf16, #tpu.memory_space<vmem>>, vector<512x384xbf16>
    %cst_25 = arith.constant dense<0.000000e+00> : vector<16x384xf32>
    %34 = tpu.matmul %32, %33, %cst_25 {dimension_numbers = #tpu.dot_dimension_numbers<[1], [0], [0], [1], [0, 0, 1, 1], [], []>} : vector<16x512xbf16>, vector<512x384xbf16>, vector<16x384xf32> -> vector<16x384xf32>
    %35 = arith.addf %24, %34 : vector<16x384xf32>
    %c0_26 = arith.constant 0 : index
    %c0_27 = arith.constant 0 : index
    %36 = vector.load %arg5[%c0_26, %c0_27] : memref<1x384xf32, #tpu.memory_space<vmem>>, vector<1x384xf32>
    %37 = vector.broadcast %36 : vector<1x384xf32> to vector<16x384xf32>
    %38 = arith.addf %35, %37 : vector<16x384xf32>
    %c0_28 = arith.constant 0 : index
    %c0_29 = arith.constant 0 : index
    %39 = vector.load %arg6[%c0_28, %c0_29] : memref<16x384xi32, #tpu.memory_space<vmem>>, vector<16x384xi32>
    %c858993459_i32 = arith.constant 858993459 : i32
    %40 = vector.broadcast %c858993459_i32 : i32 to vector<16x384xi32>
    %41 = arith.cmpi uge, %39, %40 : vector<16x384xi32>
    %cst_30 = arith.constant 1.250000e+00 : f32
    %42 = vector.broadcast %cst_30 : f32 to vector<16x384xf32>
    %43 = arith.mulf %38, %42 : vector<16x384xf32>
    %cst_31 = arith.constant 0.000000e+00 : f32
    %44 = vector.broadcast %cst_31 : f32 to vector<16x384xf32>
    %45 = arith.select %41, %43, %44 : vector<16x384xi1>, vector<16x384xf32>
    %c0_32 = arith.constant 0 : index
    %c0_33 = arith.constant 0 : index
    %46 = vector.load %arg7[%c0_32, %c0_33] : memref<16x384xf32, #tpu.memory_space<vmem>>, vector<16x384xf32>
    tpu.vector_store %arg7[%c0_32, %c0_33], %45 {strides = array<i32>} : memref<16x384xf32, #tpu.memory_space<vmem>>, vector<16x384xf32>,
    return
  }
  func.func @transform_0(%arg0: i32) -> (i32, i32) {
    %c0_i32 = arith.constant 0 : i32
    %c0_i32_0 = arith.constant 0 : i32
    return %arg0, %c0_i32 : i32, i32
  }
  func.func @transform_1(%arg0: i32) -> (i32, i32) {
    %c0_i32 = arith.constant 0 : i32
    %c0_i32_0 = arith.constant 0 : i32
    %c0_i32_1 = arith.constant 0 : i32
    return %c0_i32, %c0_i32_0 : i32, i32
  }
  func.func @transform_2(%arg0: i32) -> (i32, i32) {
    %c0_i32 = arith.constant 0 : i32
    %c0_i32_0 = arith.constant 0 : i32
    %c0_i32_1 = arith.constant 0 : i32
    return %c0_i32, %c0_i32_0 : i32, i32
  }
  func.func @transform_3(%arg0: i32) -> (i32, i32) {
    %c0_i32 = arith.constant 0 : i32
    %c0_i32_0 = arith.constant 0 : i32
    %c0_i32_1 = arith.constant 0 : i32
    return %c0_i32, %c0_i32_0 : i32, i32
  }
  func.func @transform_4(%arg0: i32) -> (i32, i32) {
    %c0_i32 = arith.constant 0 : i32
    %c0_i32_0 = arith.constant 0 : i32
    %c0_i32_1 = arith.constant 0 : i32
    return %c0_i32, %c0_i32_0 : i32, i32
  }
  func.func @transform_5(%arg0: i32) -> (i32, i32) {
    %c0_i32 = arith.constant 0 : i32
    %c0_i32_0 = arith.constant 0 : i32
    return %arg0, %c0_i32 : i32, i32
  }
  func.func @transform_6(%arg0: i32) -> (i32, i32) {
    %c0_i32 = arith.constant 0 : i32
    %c0_i32_0 = arith.constant 0 : i32
    return %arg0, %c0_i32 : i32, i32
  }
}

</mosaic_0001>

<bundles_post_ra>
// kernel: tpu_custom_call.1
= control target key start
LH: loop header
LB: loop body
LE: loop exit
PB: predicated region body
PF: predicated region fallthrough
CT: control target
= control target key end

     0   :  { %11 = vsyncpa [#allocation3], 0  ;;  %s8338_s0 = inlined_call_operand.hbm [shape: f32[16,384], index: 0, kind: input, shape index: {}]   ;;  %s8339_s1 = inlined_call_operand.hbm [shape: bf16[384,1536], index: 1, kind: input, shape index: {}]   ;;  %s8340_s2 = inlined_call_operand.hbm [shape: f32[1,1536], index: 2, kind: input, shape index: {}]   ;;  %s8341_s3 = inlined_call_operand.hbm [shape: bf16[1536,384], index: 3, kind: input, shape index: {}]   ;;  %s8342_s4 = inlined_call_operand.hbm [shape: f32[1,384], index: 4, kind: input, shape index: {}]   ;;  %s8343_s5 = inlined_call_operand.hbm [shape: u32[16,384], index: 5, kind: input, shape index: {}]   ;;  %s8344_s6 = inlined_call_operand.hbm [shape: f32[16,384], index: 6, kind: output, shape index: {}]  }
   0x1   :  { %12 = vsyncpa [#allocation6], 0 }
   0x2   :  { %13 = vsyncpa [#allocation9], 0 }
   0x3   :  { %14 = vsyncpa [#allocation12], 0  ;;  %s33_s23 = sshll.u32 %s8339_s1, 4  ;;  %s34_s23 = int_to_ptr.hbm [resolvable:$true] %s33_s23 }
   0x4   :  { %15 = vsyncpa [#allocation4], 0  ;;  %s8006_s24 = smov [#allocation5]   ;;  %s57_s28 = sshll.u32 %s8341_s3, 4  ;;  %s58_s28 = int_to_ptr.hbm [resolvable:$true] %s57_s28 }
   0x5   :  { %s35_s25 = sshll.u32 %s8006_s24, 4  ;;  %s8007_s29 = smov 768   ;;  %s36_s25 = int_to_ptr.vmem [resolvable:$true] %s35_s25 }
   0x6   :  { %s8008_s30 = smov 48   ;;  %s8009_s7 = smov [#allocation8]  }
   0x7   :  { %41 = dma.hbm_to_vmem [thread:$0]  %s34_s23, 36864, %s36_s25, [#allocation6], %s8007_s29, %s8007_s29, %s8008_s30  }
   0x8   :  { %s59_s8 = sshll.u32 %s8009_s7, 4  ;;  %s8010_s9 = smov 192   ;;  %s60_s8 = int_to_ptr.vmem [resolvable:$true] %s59_s8 }
   0x9   :  { %s8011_s10 = smov 12   ;;  %s20_s12 = sshll.u32 %s8338_s0, 4  ;;  %s21_s12 = int_to_ptr.hbm [resolvable:$true] %s20_s12 }
   0xa   :  { %65 = dma.hbm_to_vmem [thread:$0]  %s58_s28, 36864, %s60_s8, [#allocation9], %s8010_s9, %s8010_s9, %s8011_s10  }
   0xb   :  { %s8012_s13 = smov [#allocation2]   ;;  %s47_s16 = sshll.u32 %s8340_s2, 4  ;;  %s48_s16 = int_to_ptr.hbm [resolvable:$true] %s47_s16 }
   0xc   :  { %s22_s14 = sshll.u32 %s8012_s13, 4  ;;  %s8013_s17 = smov 384   ;;  %s23_s14 = int_to_ptr.vmem [resolvable:$true] %s22_s14 }
   0xd   :  { %s8014_s18 = smov 24   ;;  %s8015_s19 = smov [#allocation7]  }
   0xe   :  { %28 = dma.hbm_to_vmem [thread:$0]  %s21_s12, 768, %s23_s14, [#allocation3], %s8013_s17, %s8013_s17, %s8014_s18  }
   0xf   :  { %s49_s20 = sshll.u32 %s8015_s19, 4  ;;  %s71_s0 = sshll.u32 %s8342_s4, 4  ;;  %s50_s20 = int_to_ptr.vmem [resolvable:$true] %s49_s20  ;;  %s72_s0 = int_to_ptr.hbm [resolvable:$true] %s71_s0 }
  0x10   :  { %52 = dma.hbm_to_vmem [thread:$0]  %s48_s16, 192, %s50_s20, [#allocation6]  }
  0x11   :  { %s81_s2 = sshll.u32 %s8343_s5, 4  ;;  %s8016_s25 = smov [#allocation10]   ;;  %s82_s2 = int_to_ptr.hbm [resolvable:$true] %s81_s2 }
  0x12   :  { %s73_s26 = sshll.u32 %s8016_s25, 4  ;;  %s8017_s27 = smov [#allocation11]   ;;  %s74_s26 = int_to_ptr.vmem [resolvable:$true] %s73_s26 }
  0x13   :  { %76 = dma.hbm_to_vmem [thread:$0]  %s72_s0, 48, %s74_s26, [#allocation9]  }
  0x14   :  { %s83_s28 = sshll.u32 %s8017_s27, 4  ;;  %s84_s28 = int_to_ptr.vmem [resolvable:$true] %s83_s28 }
  0x15   :  { %89 = dma.hbm_to_vmem [thread:$0]  %s82_s2, 768, %s84_s28, [#allocation12], %s8013_s17, %s8013_s17, %s8014_s18  }
  0x16   :  { %7996 = dma.done.wait [#allocation3], 768  }
  0x17   :  { %7997 = vsyncadd [#allocation3], 4294966528 }
  0x18   :  { %7998 = dma.done.wait [#allocation6], 37056  }
  0x19   :  { %7999 = vsyncadd [#allocation6], 4294930240 }
  0x1a   :  { %8000 = dma.done.wait [#allocation9], 36912  }
  0x1b   :  { %8001 = vsyncadd [#allocation9], 4294930384 }
  0x1c   :  { %8002 = dma.done.wait [#allocation12], 768  }
  0x1d   :  { %8003 = vsyncadd [#allocation12], 4294966528  ;;  %v5043_v0 = vld [vmem:[#allocation5 + $0x2a0] sm:$0xf]  ;;  %v7269_v1 = vld [vmem:[#allocation5 + $0x2cc] sm:$0xf0] }
  0x1e   :  { %v5171_v2 = vld [vmem:[#allocation5 + $0x5a0] sm:$0xf]  ;;  %v5044_v3 = vor.u32 %v7269_v1, %v5043_v0  ;;  %v7301_v4 = vld [vmem:[#allocation5 + $0x5cc] sm:$0xf0]  ;;  %v7267_v9 = vld [vmem:[#allocation5 + $0x2a4] sm:$0xf] }
  0x1f   :  { %v5299_v5 = vld [vmem:[#allocation5 + $0x8a0] sm:$0xf]  ;;  %v7333_v6 = vld [vmem:[#allocation5 + $0x8cc] sm:$0xf0]  ;;  %v5172_v7 = vor.u32 %v7301_v4, %v5171_v2  ;;  %v5045_v10 = vld [vmem:[#allocation5 + $0x2d0] sm:$0xf0] }
  0x20   :  { %v5300_v8 = vor.u32 %v7333_v6, %v5299_v5  ;;  %v5027_v11 = vld [vmem:[#allocation5 + $0x240] sm:$0xf]  ;;  %709 = vmatpush.bf16.msra.mxu0 %v5044_v3  ;;  %v5048_v12 = vor.u32 %v7267_v9, %v5045_v10  ;;  %v7265_v13 = vld [vmem:[#allocation5 + $0x26c] sm:$0xf0]  ;;  %v7263_v20 = vld [vmem:[#allocation5 + $0x244] sm:$0xf] }
  0x21   :  { %v5155_v14 = vld [vmem:[#allocation5 + $0x540] sm:$0xf]  ;;  %v7297_v15 = vld [vmem:[#allocation5 + $0x56c] sm:$0xf0]  ;;  %723 = vmatpush.bf16.msra.mxu1 %v5172_v7  ;;  %v5028_v16 = vor.u32 %v7265_v13, %v5027_v11  ;;  %v5029_v22 = vld [vmem:[#allocation5 + $0x270] sm:$0xf0] }
  0x22   :  { %737 = vmatpush.bf16.msra.mxu2 %v5300_v8  ;;  %v5156_v17 = vor.u32 %v7297_v15, %v5155_v14  ;;  %v5283_v18 = vld [vmem:[#allocation5 + $0x840] sm:$0xf]  ;;  %v7329_v19 = vld [vmem:[#allocation5 + $0x86c] sm:$0xf0]  ;;  %751 = vmatpush.bf16.msra.mxu3 %v5048_v12  ;;  %v5032_v25 = vor.u32 %v7263_v20, %v5029_v22  ;;  %v7259_v31 = vld [vmem:[#allocation5 + $0x1e4] sm:$0xf] }
  0x23   :  { %v5284_v21 = vor.u32 %v7329_v19, %v5283_v18  ;;  %v5011_v23 = vld [vmem:[#allocation5 + $0x1e0] sm:$0xf]  ;;  %v7261_v24 = vld [vmem:[#allocation5 + $0x20c] sm:$0xf0]  ;;  %v5013_v32 = vld [vmem:[#allocation5 + $0x210] sm:$0xf0] }
  0x24   :  { %v5139_v26 = vld [vmem:[#allocation5 + $0x4e0] sm:$0xf]  ;;  %v7293_v27 = vld [vmem:[#allocation5 + $0x50c] sm:$0xf0]  ;;  %710 = vmatpush.bf16.msra.mxu0 %v5028_v16  ;;  %v5012_v29 = vor.u32 %v7261_v24, %v5011_v23  ;;  %v5016_v38 = vor.u32 %v7259_v31, %v5013_v32  ;;  %v7255_v42 = vld [vmem:[#allocation5 + $0x184] sm:$0xf] }
  0x25   :  { %v5267_v28 = vld [vmem:[#allocation5 + $0x7e0] sm:$0xf]  ;;  %v7325_v30 = vld [vmem:[#allocation5 + $0x80c] sm:$0xf0]  ;;  %724 = vmatpush.bf16.msra.mxu1 %v5156_v17  ;;  %v5140_v33 = vor.u32 %v7293_v27, %v5139_v26  ;;  %v4997_v43 = vld [vmem:[#allocation5 + $0x1b0] sm:$0xf0] }
  0x26   :  { %738 = vmatpush.bf16.msra.mxu2 %v5284_v21  ;;  %v5268_v34 = vor.u32 %v7325_v30, %v5267_v28  ;;  %v4995_v35 = vld [vmem:[#allocation5 + $0x180] sm:$0xf]  ;;  %v7257_v36 = vld [vmem:[#allocation5 + $0x1ac] sm:$0xf0]  ;;  %752 = vmatpush.bf16.msra.mxu3 %v5032_v25  ;;  %v5000_v50 = vor.u32 %v7255_v42, %v4997_v43  ;;  %v7251_v54 = vld [vmem:[#allocation5 + $0x124] sm:$0xf] }
  0x27   :  { %v5123_v37 = vld [vmem:[#allocation5 + $0x480] sm:$0xf]  ;;  %v7289_v39 = vld [vmem:[#allocation5 + $0x4ac] sm:$0xf0]  ;;  %v4996_v44 = vor.u32 %v7257_v36, %v4995_v35  ;;  %v4981_v55 = vld [vmem:[#allocation5 + $0x150] sm:$0xf0] }
  0x28   :  { %v5251_v40 = vld [vmem:[#allocation5 + $0x780] sm:$0xf]  ;;  %v7321_v41 = vld [vmem:[#allocation5 + $0x7ac] sm:$0xf0]  ;;  %711 = vmatpush.bf16.msra.mxu0 %v5012_v29  ;;  %v5124_v45 = vor.u32 %v7289_v39, %v5123_v37  ;;  %v4984_v62 = vor.u32 %v7251_v54, %v4981_v55  ;;  %v7247_v2 = vld [vmem:[#allocation5 + $0xc4] sm:$0xf] }
  0x29   :  { %725 = vmatpush.bf16.msra.mxu1 %v5140_v33  ;;  %v5252_v46 = vor.u32 %v7321_v41, %v5251_v40  ;;  %v4979_v47 = vld [vmem:[#allocation5 + $0x120] sm:$0xf]  ;;  %v7253_v48 = vld [vmem:[#allocation5 + $0x14c] sm:$0xf0]  ;;  %v4965_v3 = vld [vmem:[#allocation5 + $0xf0] sm:$0xf0] }
  0x2a   :  { %739 = vmatpush.bf16.msra.mxu2 %v5268_v34  ;;  %v5107_v49 = vld [vmem:[#allocation5 + $0x420] sm:$0xf]  ;;  %753 = vmatpush.bf16.msra.mxu3 %v5016_v38  ;;  %v7285_v51 = vld [vmem:[#allocation5 + $0x44c] sm:$0xf0]  ;;  %v4980_v56 = vor.u32 %v7253_v48, %v4979_v47  ;;  %v4968_v10 = vor.u32 %v7247_v2, %v4965_v3  ;;  %v7243_v14 = vld [vmem:[#allocation5 + $0x64] sm:$0xf] }
  0x2b   :  { %v5235_v52 = vld [vmem:[#allocation5 + $0x720] sm:$0xf]  ;;  %v7317_v53 = vld [vmem:[#allocation5 + $0x74c] sm:$0xf0]  ;;  %v5108_v57 = vor.u32 %v7285_v51, %v5107_v49  ;;  %v4949_v15 = vld [vmem:[#allocation5 + $0x90] sm:$0xf0] }
  0x2c   :  { %712 = vmatpush.bf16.msra.mxu0 %v4996_v44  ;;  %v5236_v58 = vor.u32 %v7317_v53, %v5235_v52  ;;  %v4963_v59 = vld [vmem:[#allocation5 + $0xc0] sm:$0xf]  ;;  %v7249_v60 = vld [vmem:[#allocation5 + $0xec] sm:$0xf0]  ;;  %v4952_v24 = vor.u32 %v7243_v14, %v4949_v15  ;;  %v7239_v26 = vld [vmem:[#allocation5 + $0x4] sm:$0xf] }
  0x2d   :  { %726 = vmatpush.bf16.msra.mxu1 %v5124_v45  ;;  %v5091_v61 = vld [vmem:[#allocation5 + $0x3c0] sm:$0xf]  ;;  %v7281_v63 = vld [vmem:[#allocation5 + $0x3ec] sm:$0xf0]  ;;  %v4964_v4 = vor.u32 %v7249_v60, %v4963_v59  ;;  %v4933_v27 = vld [vmem:[#allocation5 + $0x30] sm:$0xf0] }
  0x2e   :  { %740 = vmatpush.bf16.msra.mxu2 %v5252_v46  ;;  %754 = vmatpush.bf16.msra.mxu3 %v5000_v50  ;;  %v5219_v0 = vld [vmem:[#allocation5 + $0x6c0] sm:$0xf]  ;;  %v7313_v1 = vld [vmem:[#allocation5 + $0x6ec] sm:$0xf0]  ;;  %v5092_v5 = vor.u32 %v7281_v63, %v5091_v61  ;;  %v7299_v28 = vld [vmem:[#allocation5 + $0x5a4] sm:$0xf]  ;;  %v4936_v39 = vor.u32 %v7239_v26, %v4933_v27 }
  0x2f   :  { %v5220_v6 = vor.u32 %v7313_v1, %v5219_v0  ;;  %v4947_v7 = vld [vmem:[#allocation5 + $0x60] sm:$0xf]  ;;  %v7245_v8 = vld [vmem:[#allocation5 + $0x8c] sm:$0xf0]  ;;  %v5173_v29 = vld [vmem:[#allocation5 + $0x5d0] sm:$0xf0] }
  0x30   :  { %713 = vmatpush.bf16.msra.mxu0 %v4980_v56  ;;  %v5075_v9 = vld [vmem:[#allocation5 + $0x360] sm:$0xf]  ;;  %v7277_v11 = vld [vmem:[#allocation5 + $0x38c] sm:$0xf0]  ;;  %v4948_v16 = vor.u32 %v7245_v8, %v4947_v7  ;;  %v7331_v30 = vld [vmem:[#allocation5 + $0x8a4] sm:$0xf]  ;;  %v5176_v40 = vor.u32 %v7299_v28, %v5173_v29 }
  0x31   :  { %727 = vmatpush.bf16.msra.mxu1 %v5108_v57  ;;  %v5203_v12 = vld [vmem:[#allocation5 + $0x660] sm:$0xf]  ;;  %v7309_v13 = vld [vmem:[#allocation5 + $0x68c] sm:$0xf0]  ;;  %v5076_v19 = vor.u32 %v7277_v11, %v5075_v9  ;;  %v5301_v32 = vld [vmem:[#allocation5 + $0x8d0] sm:$0xf0] }
  0x32   :  { %741 = vmatpush.bf16.msra.mxu2 %v5236_v58  ;;  %755 = vmatpush.bf16.msra.mxu3 %v4984_v62  ;;  %v4931_v17 = vld [vmem:[#allocation5] sm:$0xf]  ;;  %v7241_v18 = vld [vmem:[#allocation5 + $0x2c] sm:$0xf0]  ;;  %v5204_v20 = vor.u32 %v7309_v13, %v5203_v12  ;;  %v5051_v33 = vld [vmem:[#allocation5 + $0x2a8] sm:$0xf]  ;;  %v5304_v42 = vor.u32 %v7331_v30, %v5301_v32 }
  0x33   :  { %v5059_v21 = vld [vmem:[#allocation5 + $0x300] sm:$0xf]  ;;  %v7273_v22 = vld [vmem:[#allocation5 + $0x32c] sm:$0xf0]  ;;  %v4932_v31 = vor.u32 %v7241_v18, %v4931_v17  ;;  %v7270_v34 = vld [vmem:[#allocation5 + $0x2d4] sm:$0xf0] }
  0x34   :  { %714 = vmatpush.bf16.msra.mxu0 %v4964_v4  ;;  %v5187_v23 = vld [vmem:[#allocation5 + $0x600] sm:$0xf]  ;;  %v7305_v25 = vld [vmem:[#allocation5 + $0x62c] sm:$0xf0]  ;;  %v5060_v35 = vor.u32 %v7273_v22, %v5059_v21  ;;  %v5179_v37 = vld [vmem:[#allocation5 + $0x5a8] sm:$0xf]  ;;  %v5052_v43 = vor.u32 %v7270_v34, %v5051_v33 }
  0x35   :  { %728 = vmatpush.bf16.msra.mxu1 %v5092_v5  ;;  %v5188_v36 = vor.u32 %v7305_v25, %v5187_v23  ;;  %v7302_v38 = vld [vmem:[#allocation5 + $0x5d4] sm:$0xf0]  ;;  %v7295_v41 = vld [vmem:[#allocation5 + $0x544] sm:$0xf]  ;;  %v5157_v44 = vld [vmem:[#allocation5 + $0x570] sm:$0xf0] }
  0x36   :  { %742 = vmatpush.bf16.msra.mxu2 %v5220_v6  ;;  %756 = vmatpush.bf16.msra.mxu3 %v4968_v10  ;;  %v7327_v45 = vld [vmem:[#allocation5 + $0x844] sm:$0xf]  ;;  %v5285_v46 = vld [vmem:[#allocation5 + $0x870] sm:$0xf0]  ;;  %v5180_v47 = vor.u32 %v7302_v38, %v5179_v37  ;;  %v5035_v48 = vld [vmem:[#allocation5 + $0x248] sm:$0xf]  ;;  %v5160_v54 = vor.u32 %v7295_v41, %v5157_v44 }
  0x37   :  { %v7266_v49 = vld [vmem:[#allocation5 + $0x274] sm:$0xf0]  ;;  %v5163_v50 = vld [vmem:[#allocation5 + $0x548] sm:$0xf]  ;;  %v114_v52 = vld [vmem:[#allocation2] sm:$0xff]  ;;  %v5288_v58 = vor.u32 %v7327_v45, %v5285_v46  ;;  %s8018_s4 = smov [#allocation13]  }
  0x38   :  { %715 = vmatpush.bf16.msra.mxu0 %v4948_v16  ;;  %v7298_v51 = vld [vmem:[#allocation5 + $0x574] sm:$0xf0]  ;;  %v117_v53 = vld [vmem:[#allocation2 + $0x18] sm:$0xff]  ;;  %v7291_v55 = vld [vmem:[#allocation5 + $0x4e4] sm:$0xf]  ;;  %v5036_v59 = vor.u32 %v7266_v49, %v5035_v48  ;;  %s4911_s5 = sshll.u32 %s8018_s4, 4  ;;  %s4912_s5 = int_to_ptr.vmem [resolvable:$true] %s4911_s5 }
  0x39   :  { %729 = vmatpush.bf16.msra.mxu1 %v5076_v19  ;;  %v5141_v56 = vld [vmem:[#allocation5 + $0x510] sm:$0xf0]  ;;  %v8078_v57 = vpack.c.bf16 %v117_v53, %v114_v52  ;;  %v7323_v60 = vld [vmem:[#allocation5 + $0x7e4] sm:$0xf]  ;;  %v5019_v62 = vld [vmem:[#allocation5 + $0x1e8] sm:$0xf]  ;;  %v5164_v63 = vor.u32 %v7298_v51, %v5163_v50 }
  0x3a   :  { %743 = vmatpush.bf16.msra.mxu2 %v5204_v20  ;;  %757 = vmatpush.bf16.msra.mxu3 %v4952_v24  ;;  %v5269_v61 = vld [vmem:[#allocation5 + $0x810] sm:$0xf0]  ;;  %v7262_v0 = vld [vmem:[#allocation5 + $0x214] sm:$0xf0]  ;;  %v5147_v3 = vld [vmem:[#allocation5 + $0x4e8] sm:$0xf]  ;;  %v5144_v6 = vor.u32 %v7291_v55, %v5141_v56 }
  0x3b   :  { %v115_v1 = vld [vmem:[#allocation2 + $0x8] sm:$0xff]  ;;  %v118_v2 = vld [vmem:[#allocation2 + $0x20] sm:$0xff]  ;;  %v7287_v7 = vld [vmem:[#allocation5 + $0x484] sm:$0xf]  ;;  %v5272_v9 = vor.u32 %v7323_v60, %v5269_v61  ;;  %v5020_v10 = vor.u32 %v7262_v0, %v5019_v62  ;;  %s4913_s7 = sshll.u32 %s8344_s6, 4  ;;  %s4914_s7 = int_to_ptr.hbm [resolvable:$true] %s4913_s7 }
  0x3c   :  { %716 = vmatpush.bf16.msra.mxu0 %v4932_v31  ;;  %v7294_v4 = vld [vmem:[#allocation5 + $0x514] sm:$0xf0]  ;;  %v8081_v5 = vpack.c.bf16 %v118_v2, %v115_v1  ;;  %v5125_v8 = vld [vmem:[#allocation5 + $0x4b0] sm:$0xf0]  ;;  %v7319_v11 = vld [vmem:[#allocation5 + $0x784] sm:$0xf] }
  0x3d   :  { %730 = vmatpush.bf16.msra.mxu1 %v5060_v35  ;;  %v5253_v12 = vld [vmem:[#allocation5 + $0x7b0] sm:$0xf0]  ;;  %v116_v13 = vld [vmem:[#allocation2 + $0x10] sm:$0xff]  ;;  %v5148_v14 = vor.u32 %v7294_v4, %v5147_v3  ;;  %v5003_v15 = vld [vmem:[#allocation5 + $0x188] sm:$0xf]  ;;  %v5128_v21 = vor.u32 %v7287_v7, %v5125_v8 }
  0x3e   :  { %744 = vmatpush.bf16.msra.mxu2 %v5188_v36  ;;  %758 = vmatpush.bf16.msra.mxu3 %v4936_v39  ;;  %v7258_v16 = vld [vmem:[#allocation5 + $0x1b4] sm:$0xf0]  ;;  %v5131_v18 = vld [vmem:[#allocation5 + $0x488] sm:$0xf]  ;;  %v5256_v22 = vor.u32 %v7319_v11, %v5253_v12  ;;  %v7283_v24 = vld [vmem:[#allocation5 + $0x424] sm:$0xf] }
  0x3f   :  { %717 = vmatmul.bf16.vlgmr.msra.gmra.mxu0 %v8078_v57  ;;  %v119_v17 = vld [vmem:[#allocation2 + $0x28] sm:$0xff]  ;;  %v5004_v23 = vor.u32 %v7258_v16, %v5003_v15  ;;  %v5109_v25 = vld [vmem:[#allocation5 + $0x450] sm:$0xf0]  ;;  %v7315_v26 = vld [vmem:[#allocation5 + $0x724] sm:$0xf] }
  0x40   :  { %765 = vmatpush.bf16.msrb.mxu0 %v5176_v40  ;;  %731 = vmatmul.bf16.vlgmr.msra.gmra.mxu1 %v8081_v5  ;;  %v7290_v19 = vld [vmem:[#allocation5 + $0x4b4] sm:$0xf0]  ;;  %v8085_v20 = vpack.c.bf16 %v119_v17, %v116_v13  ;;  %v5237_v28 = vld [vmem:[#allocation5 + $0x750] sm:$0xf0]  ;;  %v4987_v29 = vld [vmem:[#allocation5 + $0x128] sm:$0xf]  ;;  %v5112_v33 = vor.u32 %v7283_v24, %v5109_v25 }
  0x41   :  { %779 = vmatpush.bf16.msrb.mxu1 %v5304_v42  ;;  %759 = vmatmul.bf16.vlgmr.msra.gmra.mxu3 %v8078_v57  ;;  %v5132_v27 = vor.u32 %v7290_v19, %v5131_v18  ;;  %v7254_v30 = vld [vmem:[#allocation5 + $0x154] sm:$0xf0]  ;;  %v5115_v31 = vld [vmem:[#allocation5 + $0x428] sm:$0xf]  ;;  %v5240_v34 = vor.u32 %v7315_v26, %v5237_v28  ;;  %v7279_v36 = vld [vmem:[#allocation5 + $0x3c4] sm:$0xf] }
  0x42   :  { %793 = vmatpush.bf16.msrb.mxu2 %v5052_v43  ;;  %807 = vmatpush.bf16.msrb.mxu3 %v5180_v47  ;;  %v7286_v32 = vld [vmem:[#allocation5 + $0x454] sm:$0xf0]  ;;  %v4988_v35 = vor.u32 %v7254_v30, %v4987_v29  ;;  %v5093_v37 = vld [vmem:[#allocation5 + $0x3f0] sm:$0xf0]  ;;  %v7311_v38 = vld [vmem:[#allocation5 + $0x6c4] sm:$0xf] }
  0x43   :  { %745 = vmatmul.bf16.vlgmr.msra.gmra.mxu2 %v8085_v20  ;;  %v5116_v39 = vor.u32 %v7286_v32, %v5115_v31  ;;  %v5221_v40 = vld [vmem:[#allocation5 + $0x6f0] sm:$0xf0]  ;;  %v4971_v41 = vld [vmem:[#allocation5 + $0xc8] sm:$0xf]  ;;  %v7250_v42 = vld [vmem:[#allocation5 + $0xf4] sm:$0xf0]  ;;  %v5096_v45 = vor.u32 %v7279_v36, %v5093_v37 }
  0x44   :  { %766 = vmatpush.bf16.msrb.mxu0 %v5160_v54  ;;  %v5099_v43 = vld [vmem:[#allocation5 + $0x3c8] sm:$0xf]  ;;  %v7282_v44 = vld [vmem:[#allocation5 + $0x3f4] sm:$0xf0]  ;;  %v5224_v46 = vor.u32 %v7311_v38, %v5221_v40  ;;  %v4972_v47 = vor.u32 %v7250_v42, %v4971_v41  ;;  %v7275_v48 = vld [vmem:[#allocation5 + $0x364] sm:$0xf] }
  0x45   :  { %780 = vmatpush.bf16.msrb.mxu1 %v5288_v58  ;;  %v5077_v49 = vld [vmem:[#allocation5 + $0x390] sm:$0xf0]  ;;  %v7307_v50 = vld [vmem:[#allocation5 + $0x664] sm:$0xf]  ;;  %v5100_v51 = vor.u32 %v7282_v44, %v5099_v43  ;;  %v4955_v53 = vld [vmem:[#allocation5 + $0x68] sm:$0xf] }
  0x46   :  { %794 = vmatpush.bf16.msrb.mxu2 %v5036_v59  ;;  %808 = vmatpush.bf16.msrb.mxu3 %v5164_v63  ;;  %v5205_v52 = vld [vmem:[#allocation5 + $0x690] sm:$0xf0]  ;;  %v7246_v54 = vld [vmem:[#allocation5 + $0x94] sm:$0xf0]  ;;  %v5083_v55 = vld [vmem:[#allocation5 + $0x368] sm:$0xf]  ;;  %v5080_v58 = vor.u32 %v7275_v48, %v5077_v49 }
  0x47   :  { %v7278_v56 = vld [vmem:[#allocation5 + $0x394] sm:$0xf0]  ;;  %v7271_v59 = vld [vmem:[#allocation5 + $0x304] sm:$0xf]  ;;  %v5061_v60 = vld [vmem:[#allocation5 + $0x330] sm:$0xf0]  ;;  %v5208_v61 = vor.u32 %v7307_v50, %v5205_v52  ;;  %v4956_v62 = vor.u32 %v7246_v54, %v4955_v53 }
  0x48   :  { %767 = vmatpush.bf16.msrb.mxu0 %v5144_v6  ;;  %v7303_v63 = vld [vmem:[#allocation5 + $0x604] sm:$0xf]  ;;  %v5189_v0 = vld [vmem:[#allocation5 + $0x630] sm:$0xf0]  ;;  %v4939_v1 = vld [vmem:[#allocation5 + $0x8] sm:$0xf]  ;;  %v5084_v2 = vor.u32 %v7278_v56, %v5083_v55 }
  0x49   :  { %781 = vmatpush.bf16.msrb.mxu1 %v5272_v9  ;;  %v7242_v3 = vld [vmem:[#allocation5 + $0x34] sm:$0xf0]  ;;  %v5067_v4 = vld [vmem:[#allocation5 + $0x308] sm:$0xf]  ;;  %v7268_v9 = vld [vmem:[#allocation5 + $0x2ac] sm:$0xf] }
  0x4a   :  { %795 = vmatpush.bf16.msrb.mxu2 %v5020_v10  ;;  %809 = vmatpush.bf16.msrb.mxu3 %v5148_v14  ;;  %v7274_v6 = vld [vmem:[#allocation5 + $0x334] sm:$0xf0]  ;;  %v5307_v7 = vld [vmem:[#allocation5 + $0x8a8] sm:$0xf]  ;;  %v5064_v10 = vor.u32 %v7271_v59, %v5061_v60  ;;  %v5053_v11 = vld [vmem:[#allocation5 + $0x2d8] sm:$0xf0]  ;;  %v5192_v14 = vor.u32 %v7303_v63, %v5189_v0  ;;  %v4940_v15 = vor.u32 %v7242_v3, %v4939_v1 }
  0x4b   :  { %v7334_v8 = vld [vmem:[#allocation5 + $0x8d4] sm:$0xf0]  ;;  %v7300_v12 = vld [vmem:[#allocation5 + $0x5ac] sm:$0xf]  ;;  %v5181_v13 = vld [vmem:[#allocation5 + $0x5d8] sm:$0xf0]  ;;  %v5068_v18 = vor.u32 %v7274_v6, %v5067_v4 }
  0x4c   :  { %768 = vmatpush.bf16.msrb.mxu0 %v5128_v21  ;;  %v7332_v16 = vld [vmem:[#allocation5 + $0x8ac] sm:$0xf]  ;;  %v5309_v17 = vld [vmem:[#allocation5 + $0x8d8] sm:$0xf0]  ;;  %v5308_v19 = vor.u32 %v7334_v8, %v5307_v7  ;;  %v5056_v21 = vor.u32 %v7268_v9, %v5053_v11  ;;  %v7330_v24 = vld [vmem:[#allocation5 + $0x874] sm:$0xf0] }
  0x4d   :  { %782 = vmatpush.bf16.msrb.mxu1 %v5256_v22  ;;  %v5184_v22 = vor.u32 %v7300_v12, %v5181_v13  ;;  %v7264_v25 = vld [vmem:[#allocation5 + $0x24c] sm:$0xf]  ;;  %v5312_v26 = vor.u32 %v7332_v16, %v5309_v17  ;;  %v5165_v29 = vld [vmem:[#allocation5 + $0x578] sm:$0xf0]  ;;  %v7326_v36 = vld [vmem:[#allocation5 + $0x814] sm:$0xf0] }
  0x4e   :  { %796 = vmatpush.bf16.msrb.mxu2 %v5004_v23  ;;  %810 = vmatpush.bf16.msrb.mxu3 %v5132_v27  ;;  %v5291_v23 = vld [vmem:[#allocation5 + $0x848] sm:$0xf]  ;;  %v5037_v27 = vld [vmem:[#allocation5 + $0x278] sm:$0xf0]  ;;  %v7296_v28 = vld [vmem:[#allocation5 + $0x54c] sm:$0xf] }
  0x4f   :  { %v7328_v30 = vld [vmem:[#allocation5 + $0x84c] sm:$0xf]  ;;  %v5293_v31 = vld [vmem:[#allocation5 + $0x878] sm:$0xf0]  ;;  %v5292_v32 = vor.u32 %v7330_v24, %v5291_v23  ;;  %v7322_v48 = vld [vmem:[#allocation5 + $0x7b4] sm:$0xf0] }
  0x50   :  { %769 = vmatpush.bf16.msrb.mxu0 %v5112_v33  ;;  %v5040_v33 = vor.u32 %v7264_v25, %v5037_v27  ;;  %v7260_v37 = vld [vmem:[#allocation5 + $0x1ec] sm:$0xf]  ;;  %v5296_v38 = vor.u32 %v7328_v30, %v5293_v31  ;;  %v5149_v41 = vld [vmem:[#allocation5 + $0x518] sm:$0xf0]  ;;  %v5243_v60 = vld [vmem:[#allocation5 + $0x728] sm:$0xf] }
  0x51   :  { %783 = vmatpush.bf16.msrb.mxu1 %v5240_v34  ;;  %v5168_v34 = vor.u32 %v7296_v28, %v5165_v29  ;;  %v7292_v40 = vld [vmem:[#allocation5 + $0x4ec] sm:$0xf]  ;;  %v5277_v43 = vld [vmem:[#allocation5 + $0x818] sm:$0xf0]  ;;  %v5227_v9 = vld [vmem:[#allocation5 + $0x6c8] sm:$0xf] }
  0x52   :  { %797 = vmatpush.bf16.msrb.mxu2 %v4988_v35  ;;  %811 = vmatpush.bf16.msrb.mxu3 %v5116_v39  ;;  %v5275_v35 = vld [vmem:[#allocation5 + $0x7e8] sm:$0xf]  ;;  %v5021_v39 = vld [vmem:[#allocation5 + $0x218] sm:$0xf0]  ;;  %v7324_v42 = vld [vmem:[#allocation5 + $0x7ec] sm:$0xf] }
  0x53   :  { %v5276_v44 = vor.u32 %v7326_v36, %v5275_v35  ;;  %v7256_v49 = vld [vmem:[#allocation5 + $0x18c] sm:$0xf]  ;;  %v5280_v50 = vor.u32 %v7324_v42, %v5277_v43  ;;  %v5133_v53 = vld [vmem:[#allocation5 + $0x4b8] sm:$0xf0]  ;;  %v7310_v23 = vld [vmem:[#allocation5 + $0x694] sm:$0xf0] }
  0x54   :  { %770 = vmatpush.bf16.msrb.mxu0 %v5096_v45  ;;  %v5024_v45 = vor.u32 %v7260_v37, %v5021_v39  ;;  %v7288_v52 = vld [vmem:[#allocation5 + $0x48c] sm:$0xf]  ;;  %v5261_v55 = vld [vmem:[#allocation5 + $0x7b8] sm:$0xf0]  ;;  %v5427_v43 = vld [vmem:[#allocation5 + $0x2b0] sm:$0xf] }
  0x55   :  { %784 = vmatpush.bf16.msrb.mxu1 %v5224_v46  ;;  %v5152_v46 = vor.u32 %v7292_v40, %v5149_v41  ;;  %v7320_v54 = vld [vmem:[#allocation5 + $0x78c] sm:$0xf]  ;;  %v5136_v59 = vor.u32 %v7288_v52, %v5133_v53  ;;  %v4989_v0 = vld [vmem:[#allocation5 + $0x158] sm:$0xf0]  ;;  %v7459_v52 = vld [vmem:[#allocation5 + $0x2b4] sm:$0xf] }
  0x56   :  { %798 = vmatpush.bf16.msrb.mxu2 %v4972_v47  ;;  %812 = vmatpush.bf16.msrb.mxu3 %v5100_v51  ;;  %v5259_v47 = vld [vmem:[#allocation5 + $0x788] sm:$0xf]  ;;  %v5005_v51 = vld [vmem:[#allocation5 + $0x1b8] sm:$0xf0]  ;;  %v5264_v63 = vor.u32 %v7320_v54, %v5261_v55  ;;  %v7284_v1 = vld [vmem:[#allocation5 + $0x42c] sm:$0xf] }
  0x57   :  { %v5260_v56 = vor.u32 %v7322_v48, %v5259_v47  ;;  %v7316_v3 = vld [vmem:[#allocation5 + $0x72c] sm:$0xf]  ;;  %v5245_v4 = vld [vmem:[#allocation5 + $0x758] sm:$0xf0]  ;;  %v7493_v47 = vld [vmem:[#allocation5 + $0x5dc] sm:$0xf0] }
  0x58   :  { %771 = vmatpush.bf16.msrb.mxu0 %v5080_v58  ;;  %v5008_v58 = vor.u32 %v7256_v49, %v5005_v51  ;;  %v7248_v11 = vld [vmem:[#allocation5 + $0xcc] sm:$0xf]  ;;  %v5248_v12 = vor.u32 %v7316_v3, %v5245_v4  ;;  %v4973_v13 = vld [vmem:[#allocation5 + $0xf8] sm:$0xf0]  ;;  %v5683_v48 = vld [vmem:[#allocation5 + $0x8b0] sm:$0xf] }
  0x59   :  { %785 = vmatpush.bf16.msrb.mxu1 %v5208_v61  ;;  %v7318_v61 = vld [vmem:[#allocation5 + $0x754] sm:$0xf0]  ;;  %v7312_v16 = vld [vmem:[#allocation5 + $0x6cc] sm:$0xf]  ;;  %v5229_v17 = vld [vmem:[#allocation5 + $0x6f8] sm:$0xf0] }
  0x5a   :  { %799 = vmatpush.bf16.msrb.mxu2 %v4956_v62  ;;  %813 = vmatpush.bf16.msrb.mxu3 %v5084_v2  ;;  %v7252_v62 = vld [vmem:[#allocation5 + $0x12c] sm:$0xf]  ;;  %v5117_v2 = vld [vmem:[#allocation5 + $0x458] sm:$0xf0]  ;;  %v5244_v6 = vor.u32 %v7318_v61, %v5243_v60  ;;  %v5232_v25 = vor.u32 %v7312_v16, %v5229_v17  ;;  %v7525_v49 = vld [vmem:[#allocation5 + $0x8dc] sm:$0xf0] }
  0x5b   :  { %v4992_v7 = vor.u32 %v7252_v62, %v4989_v0  ;;  %v5120_v8 = vor.u32 %v7284_v1, %v5117_v2  ;;  %v7244_v24 = vld [vmem:[#allocation5 + $0x6c] sm:$0xf]  ;;  %v5085_v28 = vld [vmem:[#allocation5 + $0x398] sm:$0xf0]  ;;  %v5429_v53 = vld [vmem:[#allocation5 + $0x2e0] sm:$0xf0] }
  0x5c   :  { %772 = vmatpush.bf16.msrb.mxu0 %v5064_v10  ;;  %v7314_v10 = vld [vmem:[#allocation5 + $0x6f4] sm:$0xf0]  ;;  %v7276_v27 = vld [vmem:[#allocation5 + $0x36c] sm:$0xf]  ;;  %v5213_v30 = vld [vmem:[#allocation5 + $0x698] sm:$0xf0]  ;;  %v5432_v62 = vor.u32 %v7459_v52, %v5429_v53 }
  0x5d   :  { %786 = vmatpush.bf16.msrb.mxu1 %v5192_v14  ;;  %v7280_v14 = vld [vmem:[#allocation5 + $0x3cc] sm:$0xf]  ;;  %v5088_v35 = vor.u32 %v7276_v27, %v5085_v28  ;;  %v4941_v37 = vld [vmem:[#allocation5 + $0x38] sm:$0xf0]  ;;  %v7457_v60 = vld [vmem:[#allocation5 + $0x27c] sm:$0xf0] }
  0x5e   :  { %800 = vmatpush.bf16.msrb.mxu2 %v4940_v15  ;;  %814 = vmatpush.bf16.msrb.mxu3 %v5068_v18  ;;  %v5101_v15 = vld [vmem:[#allocation5 + $0x3f8] sm:$0xf0]  ;;  %v5228_v18 = vor.u32 %v7314_v10, %v5227_v9  ;;  %v7308_v29 = vld [vmem:[#allocation5 + $0x66c] sm:$0xf]  ;;  %v5539_v61 = vld [vmem:[#allocation5 + $0x550] sm:$0xf] }
  0x5f   :  { %773 = vmatmul.bf16.vlgmr.msrb.gmra.mxu0 %v8081_v5  ;;  %v7240_v36 = vld [vmem:[#allocation5 + $0xc] sm:$0xf]  ;;  %v5216_v39 = vor.u32 %v7308_v29, %v5213_v30  ;;  %v5069_v40 = vld [vmem:[#allocation5 + $0x338] sm:$0xf0]  ;;  %v5667_v0 = vld [vmem:[#allocation5 + $0x850] sm:$0xf] }
  0x60   :  { %821 = vmatpush.bf16.msra.mxu0 %v5308_v19  ;;  %787 = vmatmul.bf16.vlgmr.msrb.gmra.mxu1 %v8085_v20  ;;  %v4976_v19 = vor.u32 %v7248_v11, %v4973_v13  ;;  %v7304_v41 = vld [vmem:[#allocation5 + $0x60c] sm:$0xf]  ;;  %v5197_v42 = vld [vmem:[#allocation5 + $0x638] sm:$0xf0]  ;;  %v7521_v1 = vld [vmem:[#allocation5 + $0x87c] sm:$0xf0] }
  0x61   :  { %835 = vmatpush.bf16.msra.mxu1 %v5056_v21  ;;  %801 = vmatmul.bf16.vlgmr.msrb.gmra.mxu2 %v8078_v57  ;;  %v5104_v21 = vor.u32 %v7280_v14, %v5101_v15  ;;  %v5200_v54 = vor.u32 %v7304_v41, %v5197_v42  ;;  %v7455_v2 = vld [vmem:[#allocation5 + $0x254] sm:$0xf]  ;;  %v5413_v3 = vld [vmem:[#allocation5 + $0x280] sm:$0xf0]  ;;  %v7453_v9 = vld [vmem:[#allocation5 + $0x21c] sm:$0xf0] }
  0x62   :  { %849 = vmatpush.bf16.msra.mxu2 %v5184_v22  ;;  %863 = vmatpush.bf16.msra.mxu3 %v5312_v26  ;;  %v5211_v22 = vld [vmem:[#allocation5 + $0x668] sm:$0xf]  ;;  %v4957_v26 = vld [vmem:[#allocation5 + $0x98] sm:$0xf0]  ;;  %v5523_v10 = vld [vmem:[#allocation5 + $0x4f0] sm:$0xf]  ;;  %v5416_v11 = vor.u32 %v7455_v2, %v5413_v3 }
  0x63   :  { %815 = vmatmul.bf16.vlgmr.msrb.gmra.mxu3 %v8081_v5  ;;  %v5212_v31 = vor.u32 %v7310_v23, %v5211_v22  ;;  %v5651_v13 = vld [vmem:[#allocation5 + $0x7f0] sm:$0xf]  ;;  %v7517_v14 = vld [vmem:[#allocation5 + $0x81c] sm:$0xf0]  ;;  %v7451_v15 = vld [vmem:[#allocation5 + $0x1f4] sm:$0xf] }
  0x64   :  { %822 = vmatpush.bf16.msra.mxu0 %v5292_v32  ;;  %v5195_v32 = vld [vmem:[#allocation5 + $0x608] sm:$0xf]  ;;  %v5397_v16 = vld [vmem:[#allocation5 + $0x220] sm:$0xf0]  ;;  %v7449_v22 = vld [vmem:[#allocation5 + $0x1bc] sm:$0xf0] }
  0x65   :  { %836 = vmatpush.bf16.msra.mxu1 %v5040_v33  ;;  %v7306_v33 = vld [vmem:[#allocation5 + $0x634] sm:$0xf0]  ;;  %v5507_v23 = vld [vmem:[#allocation5 + $0x490] sm:$0xf]  ;;  %v7513_v27 = vld [vmem:[#allocation5 + $0x7bc] sm:$0xf0] }
  0x66   :  { %850 = vmatpush.bf16.msra.mxu2 %v5168_v34  ;;  %864 = vmatpush.bf16.msra.mxu3 %v5296_v38  ;;  %v4960_v34 = vor.u32 %v7244_v24, %v4957_v26  ;;  %v7272_v38 = vld [vmem:[#allocation5 + $0x30c] sm:$0xf]  ;;  %v5400_v24 = vor.u32 %v7451_v15, %v5397_v16  ;;  %v5635_v26 = vld [vmem:[#allocation5 + $0x790] sm:$0xf]  ;;  %v7447_v28 = vld [vmem:[#allocation5 + $0x194] sm:$0xf] }
  0x67   :  { %v5072_v51 = vor.u32 %v7272_v38, %v5069_v40  ;;  %v5381_v29 = vld [vmem:[#allocation5 + $0x1c0] sm:$0xf0]  ;;  %v5619_v38 = vld [vmem:[#allocation5 + $0x730] sm:$0xf]  ;;  %v7443_v40 = vld [vmem:[#allocation5 + $0x134] sm:$0xf] }
  0x68   :  { %823 = vmatpush.bf16.msra.mxu0 %v5276_v44  ;;  %v7461_v44 = vld [vmem:[#allocation5 + $0x2dc] sm:$0xf0]  ;;  %v5365_v41 = vld [vmem:[#allocation5 + $0x160] sm:$0xf0]  ;;  %v7439_v52 = vld [vmem:[#allocation5 + $0xd4] sm:$0xf] }
  0x69   :  { %837 = vmatpush.bf16.msra.mxu1 %v5024_v45  ;;  %v5555_v45 = vld [vmem:[#allocation5 + $0x5b0] sm:$0xf]  ;;  %v5428_v55 = vor.u32 %v7461_v44, %v5427_v43  ;;  %v5349_v53 = vld [vmem:[#allocation5 + $0x100] sm:$0xf0]  ;;  %v7491_v16 = vld [vmem:[#allocation5 + $0x5b4] sm:$0xf] }
  0x6a   :  { %851 = vmatpush.bf16.msra.mxu2 %v5152_v46  ;;  %865 = vmatpush.bf16.msra.mxu3 %v5280_v50  ;;  %v5196_v46 = vor.u32 %v7306_v33, %v5195_v32  ;;  %v4944_v50 = vor.u32 %v7240_v36, %v4941_v37  ;;  %v5636_v32 = vor.u32 %v7513_v27, %v5635_v26  ;;  %v5363_v33 = vld [vmem:[#allocation5 + $0x130] sm:$0xf]  ;;  %v7477_v37 = vld [vmem:[#allocation5 + $0x45c] sm:$0xf0]  ;;  %v5333_v2 = vld [vmem:[#allocation5 + $0xa0] sm:$0xf0] }
  0x6b   :  { %v5384_v36 = vor.u32 %v7447_v28, %v5381_v29  ;;  %v5317_v15 = vld [vmem:[#allocation5 + $0x40] sm:$0xf0]  ;;  %v5563_v26 = vld [vmem:[#allocation5 + $0x5b8] sm:$0xf]  ;;  %v7494_v27 = vld [vmem:[#allocation5 + $0x5e4] sm:$0xf0] }
  0x6c   :  { %824 = vmatpush.bf16.msra.mxu0 %v5260_v56  ;;  %v5556_v56 = vor.u32 %v7493_v47, %v5555_v45  ;;  %v5347_v45 = vld [vmem:[#allocation5 + $0xd0] sm:$0xf] }
  0x6d   :  { %838 = vmatpush.bf16.msra.mxu1 %v5008_v58  ;;  %v5684_v58 = vor.u32 %v7525_v49, %v5683_v48  ;;  %v5475_v47 = vld [vmem:[#allocation5 + $0x3d0] sm:$0xf]  ;;  %v5368_v48 = vor.u32 %v7443_v40, %v5365_v41  ;;  %v7473_v49 = vld [vmem:[#allocation5 + $0x3fc] sm:$0xf0]  ;;  %v7490_v40 = vld [vmem:[#allocation5 + $0x584] sm:$0xf0] }
  0x6e   :  { %852 = vmatpush.bf16.msra.mxu2 %v5136_v59  ;;  %866 = vmatpush.bf16.msra.mxu3 %v5264_v63  ;;  %v5411_v59 = vld [vmem:[#allocation5 + $0x250] sm:$0xf]  ;;  %v7489_v63 = vld [vmem:[#allocation5 + $0x57c] sm:$0xf0] }
  0x6f   :  { %v5412_v4 = vor.u32 %v7457_v60, %v5411_v59  ;;  %v7437_v59 = vld [vmem:[#allocation5 + $0x9c] sm:$0xf0]  ;;  %v5459_v60 = vld [vmem:[#allocation5 + $0x370] sm:$0xf] }
  0x70   :  { %825 = vmatpush.bf16.msra.mxu0 %v5244_v6  ;;  %v5540_v6 = vor.u32 %v7489_v63, %v5539_v61  ;;  %v5352_v61 = vor.u32 %v7439_v52, %v5349_v53  ;;  %v5587_v63 = vld [vmem:[#allocation5 + $0x670] sm:$0xf]  ;;  %v7486_v52 = vld [vmem:[#allocation5 + $0x524] sm:$0xf0] }
  0x71   :  { %839 = vmatpush.bf16.msra.mxu1 %v4992_v7  ;;  %v5668_v7 = vor.u32 %v7521_v1, %v5667_v0  ;;  %v7501_v0 = vld [vmem:[#allocation5 + $0x69c] sm:$0xf0]  ;;  %v7435_v1 = vld [vmem:[#allocation5 + $0x74] sm:$0xf] }
  0x72   :  { %853 = vmatpush.bf16.msra.mxu2 %v5120_v8  ;;  %867 = vmatpush.bf16.msra.mxu3 %v5248_v12  ;;  %v5395_v8 = vld [vmem:[#allocation5 + $0x1f0] sm:$0xf]  ;;  %v7485_v12 = vld [vmem:[#allocation5 + $0x51c] sm:$0xf0] }
  0x73   :  { %v5396_v17 = vor.u32 %v7453_v9, %v5395_v8  ;;  %v5588_v8 = vor.u32 %v7501_v0, %v5587_v63  ;;  %v5443_v9 = vld [vmem:[#allocation5 + $0x310] sm:$0xf]  ;;  %v7450_v63 = vld [vmem:[#allocation5 + $0x1c4] sm:$0xf0]  ;;  %v5515_v0 = vld [vmem:[#allocation5 + $0x498] sm:$0xf] }
  0x74   :  { %826 = vmatpush.bf16.msra.mxu0 %v5228_v18  ;;  %v5524_v18 = vor.u32 %v7485_v12, %v5523_v10  ;;  %v7465_v10 = vld [vmem:[#allocation5 + $0x33c] sm:$0xf0]  ;;  %v5336_v12 = vor.u32 %v7435_v1, %v5333_v2  ;;  %v7482_v1 = vld [vmem:[#allocation5 + $0x4c4] sm:$0xf0] }
  0x75   :  { %840 = vmatpush.bf16.msra.mxu1 %v4976_v19  ;;  %v5652_v19 = vor.u32 %v7517_v14, %v5651_v13  ;;  %v7497_v13 = vld [vmem:[#allocation5 + $0x63c] sm:$0xf0]  ;;  %v7431_v14 = vld [vmem:[#allocation5 + $0x14] sm:$0xf] }
  0x76   :  { %854 = vmatpush.bf16.msra.mxu2 %v5104_v21  ;;  %868 = vmatpush.bf16.msra.mxu3 %v5232_v25  ;;  %v5379_v21 = vld [vmem:[#allocation5 + $0x190] sm:$0xf]  ;;  %v7481_v25 = vld [vmem:[#allocation5 + $0x4bc] sm:$0xf0]  ;;  %v5320_v28 = vor.u32 %v7431_v14, %v5317_v15  ;;  %v7478_v14 = vld [vmem:[#allocation5 + $0x464] sm:$0xf0] }
  0x77   :  { %v5380_v30 = vor.u32 %v7449_v22, %v5379_v21  ;;  %v5685_v21 = vld [vmem:[#allocation5 + $0x8e0] sm:$0xf0]  ;;  %v5435_v22 = vld [vmem:[#allocation5 + $0x2b8] sm:$0xf] }
  0x78   :  { %827 = vmatpush.bf16.msra.mxu0 %v5212_v31  ;;  %v5508_v31 = vor.u32 %v7481_v25, %v5507_v23  ;;  %v7462_v23 = vld [vmem:[#allocation5 + $0x2e4] sm:$0xf0] }
  0x79   :  { %841 = vmatpush.bf16.msra.mxu1 %v4960_v34  ;;  %v7445_v34 = vld [vmem:[#allocation5 + $0x15c] sm:$0xf0] }
  0x7a   :  { %855 = vmatpush.bf16.msra.mxu2 %v5088_v35  ;;  %869 = vmatpush.bf16.msra.mxu3 %v5216_v39  ;;  %v5491_v35 = vld [vmem:[#allocation5 + $0x430] sm:$0xf]  ;;  %v7509_v39 = vld [vmem:[#allocation5 + $0x75c] sm:$0xf0]  ;;  %v5364_v42 = vor.u32 %v7445_v34, %v5363_v33  ;;  %v5541_v33 = vld [vmem:[#allocation5 + $0x580] sm:$0xf0] }
  0x7b   :  { %v5492_v43 = vor.u32 %v7477_v37, %v5491_v35  ;;  %v5620_v44 = vor.u32 %v7509_v39, %v5619_v38  ;;  %v7519_v34 = vld [vmem:[#allocation5 + $0x854] sm:$0xf]  ;;  %v5564_v35 = vor.u32 %v7494_v27, %v5563_v26  ;;  %v5419_v37 = vld [vmem:[#allocation5 + $0x258] sm:$0xf]  ;;  %v7458_v38 = vld [vmem:[#allocation5 + $0x284] sm:$0xf0] }
  0x7c   :  { %828 = vmatpush.bf16.msra.mxu0 %v5196_v46  ;;  %v7441_v46 = vld [vmem:[#allocation5 + $0xfc] sm:$0xf0]  ;;  %v5547_v39 = vld [vmem:[#allocation5 + $0x558] sm:$0xf]  ;;  %v7474_v27 = vld [vmem:[#allocation5 + $0x404] sm:$0xf0] }
  0x7d   :  { %842 = vmatpush.bf16.msra.mxu1 %v4944_v50  ;;  %v5603_v50 = vld [vmem:[#allocation5 + $0x6d0] sm:$0xf]  ;;  %v5483_v26 = vld [vmem:[#allocation5 + $0x3d8] sm:$0xf] }
  0x7e   :  { %856 = vmatpush.bf16.msra.mxu2 %v5072_v51  ;;  %870 = vmatpush.bf16.msra.mxu3 %v5200_v54  ;;  %v7505_v51 = vld [vmem:[#allocation5 + $0x6fc] sm:$0xf0]  ;;  %v5348_v54 = vor.u32 %v7441_v46, %v5347_v45  ;;  %v5525_v45 = vld [vmem:[#allocation5 + $0x520] sm:$0xf0]  ;;  %v7515_v46 = vld [vmem:[#allocation5 + $0x7f4] sm:$0xf] }
  0x7f   :  { %829 = vmatmul.bf16.vlgmr.msra.gmra.mxu0 %v8085_v20 }
  0x80   :  { %1603 = vmatpush.bf16.msrb.mxu0 %v5428_v55  ;;  %843 = vmatmul.bf16.vlgmr.msra.gmra.mxu1 %v8078_v57  ;;  %v5476_v55 = vor.u32 %v7473_v49, %v5475_v47  ;;  %v5548_v47 = vor.u32 %v7490_v40, %v5547_v39  ;;  %v5403_v49 = vld [vmem:[#allocation5 + $0x1f8] sm:$0xf]  ;;  %v7470_v39 = vld [vmem:[#allocation5 + $0x3a4] sm:$0xf0] }
  0x81   :  { %1617 = vmatpush.bf16.msrb.mxu1 %v5556_v56  ;;  %857 = vmatmul.bf16.vlgmr.msra.gmra.mxu2 %v8081_v5  ;;  %v5604_v56 = vor.u32 %v7505_v51, %v5603_v50  ;;  %v7454_v50 = vld [vmem:[#allocation5 + $0x224] sm:$0xf0]  ;;  %v5531_v51 = vld [vmem:[#allocation5 + $0x4f8] sm:$0xf] }
  0x82   :  { %1631 = vmatpush.bf16.msrb.mxu2 %v5684_v58  ;;  %1645 = vmatpush.bf16.msrb.mxu3 %v5432_v62  ;;  %v5331_v58 = vld [vmem:[#allocation5 + $0x70] sm:$0xf]  ;;  %v7469_v62 = vld [vmem:[#allocation5 + $0x39c] sm:$0xf0] }
  0x83   :  { %871 = vmatmul.bf16.vlgmr.msra.gmra.mxu3 %v8085_v20  ;;  %v5332_v3 = vor.u32 %v7437_v59, %v5331_v58  ;;  %v5509_v58 = vld [vmem:[#allocation5 + $0x4c0] sm:$0xf0]  ;;  %v7511_v59 = vld [vmem:[#allocation5 + $0x794] sm:$0xf] }
  0x84   :  { %1604 = vmatpush.bf16.msrb.mxu0 %v5412_v4  ;;  %v5315_v4 = vld [vmem:[#allocation5 + $0x10] sm:$0xf] }
  0x85   :  { %1618 = vmatpush.bf16.msrb.mxu1 %v5540_v6  ;;  %v7433_v6 = vld [vmem:[#allocation5 + $0x3c] sm:$0xf0] }
  0x86   :  { %1632 = vmatpush.bf16.msrb.mxu2 %v5668_v7  ;;  %1646 = vmatpush.bf16.msrb.mxu3 %v5416_v11  ;;  %v5460_v7 = vor.u32 %v7469_v62, %v5459_v60  ;;  %v5571_v11 = vld [vmem:[#allocation5 + $0x610] sm:$0xf]  ;;  %v5532_v60 = vor.u32 %v7486_v52, %v5531_v51  ;;  %v5387_v62 = vld [vmem:[#allocation5 + $0x198] sm:$0xf]  ;;  %v7466_v51 = vld [vmem:[#allocation5 + $0x344] sm:$0xf0] }
  0x87   :  { %v5572_v25 = vor.u32 %v7497_v13, %v5571_v11  ;;  %v5371_v11 = vld [vmem:[#allocation5 + $0x138] sm:$0xf] }
  0x88   :  { %1605 = vmatpush.bf16.msrb.mxu0 %v5396_v17  ;;  %v5557_v17 = vld [vmem:[#allocation5 + $0x5e0] sm:$0xf0]  ;;  %v5499_v13 = vld [vmem:[#allocation5 + $0x438] sm:$0xf] }
  0x89   :  { %1619 = vmatpush.bf16.msrb.mxu1 %v5524_v18  ;;  %v7523_v18 = vld [vmem:[#allocation5 + $0x8b4] sm:$0xf]  ;;  %v5560_v29 = vor.u32 %v7491_v16, %v5557_v17  ;;  %v5691_v52 = vld [vmem:[#allocation5 + $0x8b8] sm:$0xf] }
  0x8a   :  { %1633 = vmatpush.bf16.msrb.mxu2 %v5652_v19  ;;  %1647 = vmatpush.bf16.msrb.mxu3 %v5400_v24  ;;  %v5316_v19 = vor.u32 %v7433_v6, %v5315_v4  ;;  %v5444_v24 = vor.u32 %v7465_v10, %v5443_v9  ;;  %v5388_v4 = vor.u32 %v7450_v63, %v5387_v62  ;;  %v7475_v6 = vld [vmem:[#allocation5 + $0x434] sm:$0xf]  ;;  %v5621_v10 = vld [vmem:[#allocation5 + $0x760] sm:$0xf0]  ;;  %v7524_v62 = vld [vmem:[#allocation5 + $0x8bc] sm:$0xf] }
  0x8b   :  { %v5516_v9 = vor.u32 %v7482_v1, %v5515_v0  ;;  %v5693_v63 = vld [vmem:[#allocation5 + $0x8e8] sm:$0xf0] }
  0x8c   :  { %1606 = vmatpush.bf16.msrb.mxu0 %v5380_v30  ;;  %v5688_v30 = vor.u32 %v7523_v18, %v5685_v21  ;;  %v7471_v18 = vld [vmem:[#allocation5 + $0x3d4] sm:$0xf] }
  0x8d   :  { %1620 = vmatpush.bf16.msrb.mxu1 %v5508_v31  ;;  %v5436_v31 = vor.u32 %v7462_v23, %v5435_v22  ;;  %v7503_v21 = vld [vmem:[#allocation5 + $0x6d4] sm:$0xf]  ;;  %v5500_v22 = vor.u32 %v7478_v14, %v5499_v13  ;;  %v5605_v23 = vld [vmem:[#allocation5 + $0x700] sm:$0xf0]  ;;  %v5677_v13 = vld [vmem:[#allocation5 + $0x888] sm:$0xf0] }
  0x8e   :  { %1634 = vmatpush.bf16.msrb.mxu2 %v5636_v32  ;;  %1648 = vmatpush.bf16.msrb.mxu3 %v5384_v36  ;;  %v7487_v32 = vld [vmem:[#allocation5 + $0x554] sm:$0xf]  ;;  %v5669_v36 = vld [vmem:[#allocation5 + $0x880] sm:$0xf0] }
  0x8f   :  { %v5544_v41 = vor.u32 %v7487_v32, %v5541_v33  ;;  %v5461_v32 = vld [vmem:[#allocation5 + $0x3a0] sm:$0xf0]  ;;  %v7499_v33 = vld [vmem:[#allocation5 + $0x674] sm:$0xf] }
  0x90   :  { %1607 = vmatpush.bf16.msrb.mxu0 %v5364_v42  ;;  %v5672_v42 = vor.u32 %v7519_v34, %v5669_v36  ;;  %v5484_v34 = vor.u32 %v7474_v27, %v5483_v26  ;;  %v5339_v36 = vld [vmem:[#allocation5 + $0x78] sm:$0xf]  ;;  %v7516_v26 = vld [vmem:[#allocation5 + $0x7fc] sm:$0xf]  ;;  %v5661_v27 = vld [vmem:[#allocation5 + $0x828] sm:$0xf0] }
  0x91   :  { %1621 = vmatpush.bf16.msrb.mxu1 %v5492_v43  ;;  %v5420_v43 = vor.u32 %v7458_v38, %v5419_v37  ;;  %v7438_v37 = vld [vmem:[#allocation5 + $0xa4] sm:$0xf0]  ;;  %v5467_v38 = vld [vmem:[#allocation5 + $0x378] sm:$0xf] }
  0x92   :  { %1635 = vmatpush.bf16.msrb.mxu2 %v5620_v44  ;;  %1649 = vmatpush.bf16.msrb.mxu3 %v5368_v48  ;;  %v7483_v44 = vld [vmem:[#allocation5 + $0x4f4] sm:$0xf]  ;;  %v5653_v48 = vld [vmem:[#allocation5 + $0x820] sm:$0xf0] }
  0x93   :  { %v5528_v53 = vor.u32 %v7483_v44, %v5525_v45  ;;  %v5340_v44 = vor.u32 %v7438_v37, %v5339_v36  ;;  %v7495_v45 = vld [vmem:[#allocation5 + $0x614] sm:$0xf]  ;;  %v5389_v36 = vld [vmem:[#allocation5 + $0x1c8] sm:$0xf0]  ;;  %v7480_v37 = vld [vmem:[#allocation5 + $0x49c] sm:$0xf] }
  0x94   :  { %1608 = vmatpush.bf16.msrb.mxu0 %v5348_v54  ;;  %v5656_v54 = vor.u32 %v7515_v46, %v5653_v48  ;;  %v5573_v46 = vld [vmem:[#allocation5 + $0x640] sm:$0xf0]  ;;  %v5468_v48 = vor.u32 %v7470_v39, %v5467_v38  ;;  %v5517_v38 = vld [vmem:[#allocation5 + $0x4c8] sm:$0xf0]  ;;  %v7512_v39 = vld [vmem:[#allocation5 + $0x79c] sm:$0xf] }
  0x95   :  { %1622 = vmatpush.bf16.msrb.mxu1 %v5476_v55  ;;  %v5404_v55 = vor.u32 %v7454_v50, %v5403_v49  ;;  %v7434_v49 = vld [vmem:[#allocation5 + $0x44] sm:$0xf0]  ;;  %v5451_v50 = vld [vmem:[#allocation5 + $0x318] sm:$0xf] }
  0x96   :  { %1636 = vmatpush.bf16.msrb.mxu2 %v5604_v56  ;;  %1650 = vmatpush.bf16.msrb.mxu3 %v5352_v61  ;;  %v7479_v56 = vld [vmem:[#allocation5 + $0x494] sm:$0xf]  ;;  %v5637_v61 = vld [vmem:[#allocation5 + $0x7c0] sm:$0xf0]  ;;  %v5452_v0 = vor.u32 %v7466_v51, %v5451_v50  ;;  %v5373_v50 = vld [vmem:[#allocation5 + $0x168] sm:$0xf0] }
  0x97   :  { %v5512_v2 = vor.u32 %v7479_v56, %v5509_v58  ;;  %v5437_v56 = vld [vmem:[#allocation5 + $0x2e8] sm:$0xf0]  ;;  %v7492_v58 = vld [vmem:[#allocation5 + $0x5bc] sm:$0xf] }
  0x98   :  { %1609 = vmatpush.bf16.msrb.mxu0 %v5332_v3  ;;  %v5640_v3 = vor.u32 %v7511_v59, %v5637_v61  ;;  %v5565_v59 = vld [vmem:[#allocation5 + $0x5e8] sm:$0xf0]  ;;  %v7476_v51 = vld [vmem:[#allocation5 + $0x43c] sm:$0xf] }
  0x99   :  { %1623 = vmatpush.bf16.msrb.mxu1 %v5460_v7  ;;  %v5493_v7 = vld [vmem:[#allocation5 + $0x460] sm:$0xf0] }
  0x9a   :  { %1637 = vmatpush.bf16.msrb.mxu2 %v5588_v8  ;;  %1651 = vmatpush.bf16.msrb.mxu3 %v5336_v12  ;;  %v7507_v8 = vld [vmem:[#allocation5 + $0x734] sm:$0xf]  ;;  %v7446_v12 = vld [vmem:[#allocation5 + $0x164] sm:$0xf0]  ;;  %v5496_v15 = vor.u32 %v7475_v6, %v5493_v7  ;;  %v7456_v7 = vld [vmem:[#allocation5 + $0x25c] sm:$0xf] }
  0x9b   :  { %v5624_v16 = vor.u32 %v7507_v8, %v5621_v10  ;;  %v5372_v17 = vor.u32 %v7446_v12, %v5371_v11  ;;  %v7522_v6 = vld [vmem:[#allocation5 + $0x884] sm:$0xf0]  ;;  %v5696_v8 = vor.u32 %v7524_v62, %v5693_v63  ;;  %v7488_v10 = vld [vmem:[#allocation5 + $0x55c] sm:$0xf]  ;;  %v5549_v11 = vld [vmem:[#allocation5 + $0x588] sm:$0xf0] }
  0x9c   :  { %1610 = vmatpush.bf16.msrb.mxu0 %v5316_v19  ;;  %v5477_v19 = vld [vmem:[#allocation5 + $0x400] sm:$0xf0]  ;;  %v7520_v12 = vld [vmem:[#allocation5 + $0x85c] sm:$0xf]  ;;  %v7506_v62 = vld [vmem:[#allocation5 + $0x704] sm:$0xf0] }
  0x9d   :  { %1624 = vmatpush.bf16.msrb.mxu1 %v5444_v24  ;;  %v5355_v24 = vld [vmem:[#allocation5 + $0xd8] sm:$0xf]  ;;  %v7440_v63 = vld [vmem:[#allocation5 + $0xdc] sm:$0xf] }
  0x9e   :  { %1638 = vmatpush.bf16.msrb.mxu2 %v5572_v25  ;;  %1652 = vmatpush.bf16.msrb.mxu3 %v5320_v28  ;;  %v7442_v25 = vld [vmem:[#allocation5 + $0x104] sm:$0xf0]  ;;  %v5480_v28 = vor.u32 %v7471_v18, %v5477_v19  ;;  %v7452_v19 = vld [vmem:[#allocation5 + $0x1fc] sm:$0xf] }
  0x9f   :  { %1611 = vmatmul.bf16.vlgmr.msrb.gmra.mxu0 %v8078_v57  ;;  %v7518_v18 = vld [vmem:[#allocation5 + $0x824] sm:$0xf0] }
  0xa0   :  { %1659 = vmatpush.bf16.msra.mxu0 %v5560_v29  ;;  %1625 = vmatmul.bf16.vlgmr.msrb.gmra.mxu1 %v8081_v5  ;;  %v5608_v29 = vor.u32 %v7503_v21, %v5605_v23  ;;  %v8100_v21 = vld [vmem:[#allocation7] sm:$0xf]  ;;  %v5405_v23 = vld [vmem:[#allocation5 + $0x228] sm:$0xf0] }
  0xa1   :  { %1673 = vmatpush.bf16.msra.mxu1 %v5688_v30  ;;  %1639 = vmatmul.bf16.vlgmr.msrb.gmra.mxu2 %v8085_v20  ;;  %v5356_v30 = vor.u32 %v7442_v25, %v5355_v24  ;;  %v7484_v24 = vld [vmem:[#allocation5 + $0x4fc] sm:$0xf]  ;;  %v5533_v25 = vld [vmem:[#allocation5 + $0x528] sm:$0xf0] }
  0xa2   :  { %1687 = vmatpush.bf16.msra.mxu2 %v5436_v31  ;;  %1701 = vmatpush.bf16.msra.mxu3 %v5564_v35  ;;  %v7467_v31 = vld [vmem:[#allocation5 + $0x374] sm:$0xf]  ;;  %v5589_v35 = vld [vmem:[#allocation5 + $0x6a0] sm:$0xf0] }
  0xa3   :  { %1653 = vmatmul.bf16.vlgmr.msrb.gmra.mxu3 %v8078_v57  ;;  %v5464_v40 = vor.u32 %v7467_v31, %v5461_v32  ;;  %v5536_v31 = vor.u32 %v7484_v24, %v5533_v25  ;;  %v5643_v32 = vld [vmem:[#allocation5 + $0x798] sm:$0xf]  ;;  %v7498_v25 = vld [vmem:[#allocation5 + $0x644] sm:$0xf0] }
  0xa4   :  { %1660 = vmatpush.bf16.msra.mxu0 %v5544_v41  ;;  %v7463_v41 = vld [vmem:[#allocation5 + $0x314] sm:$0xf] }
  0xa5   :  { %1674 = vmatpush.bf16.msra.mxu1 %v5672_v42  ;;  %v5445_v42 = vld [vmem:[#allocation5 + $0x340] sm:$0xf0] }
  0xa6   :  { %1688 = vmatpush.bf16.msra.mxu2 %v5420_v43  ;;  %1702 = vmatpush.bf16.msra.mxu3 %v5548_v47  ;;  %v5592_v43 = vor.u32 %v7499_v33, %v5589_v35  ;;  %v5323_v47 = vld [vmem:[#allocation5 + $0x18] sm:$0xf]  ;;  %v7514_v33 = vld [vmem:[#allocation5 + $0x7c4] sm:$0xf0]  ;;  %v5664_v35 = vor.u32 %v7516_v26, %v5661_v27  ;;  %v7432_v26 = vld [vmem:[#allocation5 + $0x1c] sm:$0xf] }
  0xa7   :  { %v5324_v61 = vor.u32 %v7434_v49, %v5323_v47  ;;  %v7510_v47 = vld [vmem:[#allocation5 + $0x764] sm:$0xf0]  ;;  %v5325_v27 = vld [vmem:[#allocation5 + $0x48] sm:$0xf0] }
  0xa8   :  { %1661 = vmatpush.bf16.msra.mxu0 %v5528_v53  ;;  %v7526_v53 = vld [vmem:[#allocation5 + $0x8e4] sm:$0xf0] }
  0xa9   :  { %1675 = vmatpush.bf16.msra.mxu1 %v5656_v54  ;;  %v7460_v54 = vld [vmem:[#allocation5 + $0x2bc] sm:$0xf]  ;;  %v5692_v1 = vor.u32 %v7526_v53, %v5691_v52  ;;  %v5501_v52 = vld [vmem:[#allocation5 + $0x468] sm:$0xf0] }
  0xaa   :  { %1689 = vmatpush.bf16.msra.mxu2 %v5404_v55  ;;  %1703 = vmatpush.bf16.msra.mxu3 %v5532_v60  ;;  %v5448_v55 = vor.u32 %v7463_v41, %v5445_v42  ;;  %v5576_v60 = vor.u32 %v7495_v45, %v5573_v46  ;;  %v5644_v42 = vor.u32 %v7514_v33, %v5643_v32  ;;  %v5627_v46 = vld [vmem:[#allocation5 + $0x738] sm:$0xf]  ;;  %v7508_v53 = vld [vmem:[#allocation5 + $0x73c] sm:$0xf]  ;;  %v5453_v32 = vld [vmem:[#allocation5 + $0x348] sm:$0xf0] }
  0xab   :  { %v5520_v45 = vor.u32 %v7480_v37, %v5517_v38  ;;  %v7496_v33 = vld [vmem:[#allocation5 + $0x61c] sm:$0xf]  ;;  %v7549_v37 = vld [vmem:[#allocation8 + $0x3b0] sm:$0xf0] }
  0xac   :  { %1662 = vmatpush.bf16.msra.mxu0 %v5512_v2  ;;  %v5440_v2 = vor.u32 %v7460_v54, %v5437_v56  ;;  %v5629_v54 = vld [vmem:[#allocation5 + $0x768] sm:$0xf0]  ;;  %v5628_v56 = vor.u32 %v7510_v47, %v5627_v46 }
  0xad   :  { %1676 = vmatpush.bf16.msra.mxu1 %v5640_v3  ;;  %v5568_v3 = vor.u32 %v7492_v58, %v5565_v59 }
  0xae   :  { %1690 = vmatpush.bf16.msra.mxu2 %v5388_v4  ;;  %1704 = vmatpush.bf16.msra.mxu3 %v5516_v9  ;;  %v5675_v4 = vld [vmem:[#allocation5 + $0x858] sm:$0xf]  ;;  %v5421_v9 = vld [vmem:[#allocation5 + $0x288] sm:$0xf0] }
  0xaf   :  { %v5676_v14 = vor.u32 %v7522_v6, %v5675_v4  ;;  %v7504_v4 = vld [vmem:[#allocation5 + $0x6dc] sm:$0xf]  ;;  %v5613_v6 = vld [vmem:[#allocation5 + $0x708] sm:$0xf0] }
  0xb0   :  { %1663 = vmatpush.bf16.msra.mxu0 %v5496_v15  ;;  %v5659_v15 = vld [vmem:[#allocation5 + $0x7f8] sm:$0xf] }
  0xb1   :  { %1677 = vmatpush.bf16.msra.mxu1 %v5624_v16  ;;  %v5424_v16 = vor.u32 %v7456_v7, %v5421_v9 }
  0xb2   :  { %1691 = vmatpush.bf16.msra.mxu2 %v5372_v17  ;;  %1705 = vmatpush.bf16.msra.mxu3 %v5500_v22  ;;  %v5552_v17 = vor.u32 %v7488_v10, %v5549_v11  ;;  %v5680_v22 = vor.u32 %v7520_v12, %v5677_v13  ;;  %v5595_v10 = vld [vmem:[#allocation5 + $0x678] sm:$0xf]  ;;  %v7502_v11 = vld [vmem:[#allocation5 + $0x6a4] sm:$0xf0]  ;;  %v7436_v12 = vld [vmem:[#allocation5 + $0x7c] sm:$0xf]  ;;  %v5616_v13 = vor.u32 %v7504_v4, %v5613_v6 }
  0xb4   :  { %1664 = vmatpush.bf16.msra.mxu0 %v5480_v28  ;;  %v5660_v28 = vor.u32 %v7518_v18, %v5659_v15  ;;  %v7468_v15 = vld [vmem:[#allocation5 + $0x37c] sm:$0xf]  ;;  %v5597_v18 = vld [vmem:[#allocation5 + $0x6a8] sm:$0xf0] }
  0xb5   :  { %1678 = vmatpush.bf16.msra.mxu1 %v5608_v29  ;;  %v221_v29 = vperm.slane %v8100_v21, 0 }
  0xb6   :  { %1692 = vmatpush.bf16.msra.mxu2 %v5356_v30  ;;  %1706 = vmatpush.bf16.msra.mxu3 %v5484_v34  ;;  %v5408_v30 = vor.u32 %v7452_v19, %v5405_v23  ;;  %v7448_v34 = vld [vmem:[#allocation5 + $0x19c] sm:$0xf]  ;;  %v5596_v19 = vor.u32 %v7502_v11, %v5595_v10  ;;  %v7534_v10 = vld [vmem:[#allocation8 + $0x338] sm:$0xf0]  ;;  %v5711_v11 = vld [vmem:[#allocation8 + $0x318] sm:$0xf] }
  0xb8   :  { %1665 = vmatpush.bf16.msra.mxu0 %v5464_v40  ;;  %v5645_v40 = vld [vmem:[#allocation5 + $0x7c8] sm:$0xf0] }
  0xb9   :  { %1679 = vmatpush.bf16.msra.mxu1 %v5592_v43  ;;  %v5648_v49 = vor.u32 %v7512_v39, %v5645_v40  ;;  %v5328_v39 = vor.u32 %v7432_v26, %v5325_v27  ;;  %v5785_v26 = vld [vmem:[#allocation8 + $0x3b4] sm:$0xf0] }
  0xba   :  { %1693 = vmatpush.bf16.msra.mxu2 %v5340_v44  ;;  %1707 = vmatpush.bf16.msra.mxu3 %v5468_v48  ;;  %v5392_v44 = vor.u32 %v7448_v34, %v5389_v36  ;;  %v7444_v48 = vld [vmem:[#allocation5 + $0x13c] sm:$0xf]  ;;  %v5783_v36 = vld [vmem:[#allocation8 + $0x3a8] sm:$0xf]  ;;  %v5855_v27 = vld [vmem:[#allocation8 + $0x438] sm:$0xf] }
  0xbb   :  { %v5376_v59 = vor.u32 %v7444_v48, %v5373_v50  ;;  %v222_v48 = vperm.slane %v8100_v21, 1 }
  0xbc   :  { %1666 = vmatpush.bf16.msra.mxu0 %v5448_v55  ;;  %v718_v41 = vpop.f32.mrf.mxu0 }
  0xbd   :  { %1680 = vmatpush.bf16.msra.mxu1 %v5576_v60  ;;  %v719_v43 = vadd.f32 %v718_v41, %v221_v29  ;;  %v732_v55 = vpop.f32.mrf.mxu1  ;;  %v5504_v60 = vor.u32 %v7476_v51, %v5501_v52  ;;  %v5759_v52 = vld [vmem:[#allocation8 + $0x378] sm:$0xf] }
  0xbe   :  { %1694 = vmatpush.bf16.msra.mxu2 %v5324_v61  ;;  %1708 = vmatpush.bf16.msra.mxu3 %v5452_v0  ;;  %v5611_v61 = vld [vmem:[#allocation5 + $0x6d8] sm:$0xf]  ;;  %v5632_v0 = vor.u32 %v7508_v53, %v5629_v54  ;;  %v7543_v53 = vld [vmem:[#allocation8 + $0x380] sm:$0xf0] }
  0xbf   :  { %1667 = vmatmul.bf16.vlgmr.msra.gmra.mxu0 %v8081_v5  ;;  %v733_v58 = vadd.f32 %v732_v55, %v719_v43  ;;  %v5612_v7 = vor.u32 %v7506_v62, %v5611_v61  ;;  %v5760_v55 = vor.u32 %v7543_v53, %v5759_v52 }
  0xc0   :  { %1715 = vmatpush.bf16.msrb.mxu0 %v5692_v1  ;;  %1681 = vmatmul.bf16.vlgmr.msra.gmra.mxu1 %v8085_v20  ;;  %v5357_v1 = vld [vmem:[#allocation5 + $0x108] sm:$0xf0] }
  0xc1   :  { %1729 = vmatpush.bf16.msrb.mxu1 %v5440_v2  ;;  %1695 = vmatmul.bf16.vlgmr.msra.gmra.mxu2 %v8078_v57  ;;  %v7472_v2 = vld [vmem:[#allocation5 + $0x3dc] sm:$0xf] }
  0xc2   :  { %1743 = vmatpush.bf16.msrb.mxu2 %v5568_v3  ;;  %1757 = vmatpush.bf16.msrb.mxu3 %v5696_v8  ;;  %v5485_v3 = vld [vmem:[#allocation5 + $0x408] sm:$0xf0]  ;;  %v5360_v8 = vor.u32 %v7440_v63, %v5357_v1 }
  0xc3   :  { %1709 = vmatmul.bf16.vlgmr.msra.gmra.mxu3 %v8081_v5  ;;  %v5488_v9 = vor.u32 %v7472_v2, %v5485_v3  ;;  %v5735_v2 = vld [vmem:[#allocation8 + $0x348] sm:$0xf]  ;;  %v7537_v3 = vld [vmem:[#allocation8 + $0x350] sm:$0xf0] }
  0xc4   :  { %1716 = vmatpush.bf16.msrb.mxu0 %v5676_v14  ;;  %v5341_v14 = vld [vmem:[#allocation5 + $0xa8] sm:$0xf0]  ;;  %v8111_v43 = vpop.f32.mrf.mxu0  ;;  %v760_v46 = vpop.f32.mrf.mxu3  ;;  %v5736_v6 = vor.u32 %v7537_v3, %v5735_v2  ;;  %v5819_v2 = vld [vmem:[#allocation8 + $0x3f0] sm:$0xf]  ;;  %v7558_v3 = vld [vmem:[#allocation8 + $0x3f8] sm:$0xf0] }
  0xc5   :  { %1730 = vmatpush.bf16.msrb.mxu1 %v5424_v16  ;;  %v5469_v16 = vld [vmem:[#allocation5 + $0x3a8] sm:$0xf0]  ;;  %v5344_v23 = vor.u32 %v7436_v12, %v5341_v14  ;;  %v8113_v47 = vpop.f32.mrf.mxu1  ;;  %v761_v50 = vadd.f32 %v760_v46, %v222_v48  ;;  %v5879_v14 = vld [vmem:[#allocation8 + $0x468] sm:$0xf] }
  0xc6   :  { %1744 = vmatpush.bf16.msrb.mxu2 %v5552_v17  ;;  %1758 = vmatpush.bf16.msrb.mxu3 %v5680_v22  ;;  %v7500_v17 = vld [vmem:[#allocation5 + $0x67c] sm:$0xf]  ;;  %v5579_v22 = vld [vmem:[#allocation5 + $0x618] sm:$0xf]  ;;  %v5472_v24 = vor.u32 %v7468_v15, %v5469_v16  ;;  %v7573_v15 = vld [vmem:[#allocation8 + $0x470] sm:$0xf0] }
  0xc7   :  { %v5580_v38 = vor.u32 %v7498_v25, %v5579_v22  ;;  %v5699_v22 = vld [vmem:[#allocation8 + $0x300] sm:$0xf]  ;;  %v7548_v25 = vld [vmem:[#allocation8 + $0x3ac] sm:$0xf] }
  0xc8   :  { %1717 = vmatpush.bf16.msrb.mxu0 %v5660_v28  ;;  %v746_v28 = vpop.f32.mrf.mxu2 }
  0xc9   :  { %1731 = vmatpush.bf16.msrb.mxu1 %v5408_v30  ;;  %v5600_v30 = vor.u32 %v7500_v17, %v5597_v18  ;;  %v8109_v34 = vadd.f32 %v746_v28, %v733_v58  ;;  %v5880_v17 = vor.u32 %v7573_v15, %v5879_v14  ;;  %v5867_v18 = vld [vmem:[#allocation8 + $0x450] sm:$0xf]  ;;  %v7567_v28 = vld [vmem:[#allocation8 + $0x440] sm:$0xf0]  ;;  %v7533_v15 = vld [vmem:[#allocation8 + $0x334] sm:$0xf] }
  0xca   :  { %1745 = vmatpush.bf16.msrb.mxu2 %v5536_v31  ;;  %1759 = vmatpush.bf16.msrb.mxu3 %v5664_v35  ;;  %v7464_v31 = vld [vmem:[#allocation5 + $0x31c] sm:$0xf]  ;;  %v5581_v35 = vld [vmem:[#allocation5 + $0x648] sm:$0xf0]  ;;  %v7555_v14 = vld [vmem:[#allocation8 + $0x3e0] sm:$0xf0] }
  0xcb   :  { %v5456_v40 = vor.u32 %v7464_v31, %v5453_v32  ;;  %v5584_v41 = vor.u32 %v7496_v33, %v5581_v35  ;;  %v5788_v31 = vor.u32 %v7548_v25, %v5785_v26  ;;  %v5856_v32 = vor.u32 %v7567_v28, %v5855_v27  ;;  %v7545_v33 = vld [vmem:[#allocation8 + $0x394] sm:$0xf]  ;;  %v5773_v35 = vld [vmem:[#allocation8 + $0x39c] sm:$0xf0]  ;;  %v7552_v25 = vld [vmem:[#allocation8 + $0x3c8] sm:$0xf0] }
  0xcc   :  { %1718 = vmatpush.bf16.msrb.mxu0 %v5644_v42  ;;  %v5784_v42 = vor.u32 %v7549_v37, %v5783_v36  ;;  %v8124_v58 = vpop.f32.mrf.mxu3  ;;  %v5843_v36 = vld [vmem:[#allocation8 + $0x420] sm:$0xf]  ;;  %v7564_v37 = vld [vmem:[#allocation8 + $0x428] sm:$0xf0]  ;;  %v7530_v26 = vld [vmem:[#allocation8 + $0x31c] sm:$0xf] }
  0xcd   :  { %1732 = vmatpush.bf16.msrb.mxu1 %v5392_v44  ;;  %v5771_v44 = vld [vmem:[#allocation8 + $0x390] sm:$0xf]  ;;  %v5713_v28 = vld [vmem:[#allocation8 + $0x324] sm:$0xf0] }
  0xce   :  { %1746 = vmatpush.bf16.msrb.mxu2 %v5520_v45  ;;  %1760 = vmatpush.bf16.msrb.mxu3 %v5648_v49  ;;  %v7546_v45 = vld [vmem:[#allocation8 + $0x398] sm:$0xf0] }
  0xcf   :  { %v5772_v49 = vor.u32 %v7546_v45, %v5771_v44 }
  0xd0   :  { %1719 = vmatpush.bf16.msrb.mxu0 %v5628_v56  ;;  %v8122_v51 = vpop.f32.mrf.mxu2 }
  0xd1   :  { %1733 = vmatpush.bf16.msrb.mxu1 %v5376_v59  ;;  %v5747_v59 = vld [vmem:[#allocation8 + $0x360] sm:$0xf] }
  0xd2   :  { %1747 = vmatpush.bf16.msrb.mxu2 %v5504_v60  ;;  %1761 = vmatpush.bf16.msrb.mxu3 %v5632_v0  ;;  %v7540_v60 = vld [vmem:[#allocation8 + $0x368] sm:$0xf0]  ;;  %v223_v0 = vperm.slane %v8100_v21, 2 }
  0xd3   :  { %v5748_v62 = vor.u32 %v7540_v60, %v5747_v59 }
  0xd4   :  { %1720 = vmatpush.bf16.msrb.mxu0 %v5612_v7 }
  0xd5   :  { %1734 = vmatpush.bf16.msrb.mxu1 %v5360_v8 }
  0xd6   :  { %1748 = vmatpush.bf16.msrb.mxu2 %v5488_v9  ;;  %1762 = vmatpush.bf16.msrb.mxu3 %v5616_v13  ;;  %v5723_v9 = vld [vmem:[#allocation8 + $0x330] sm:$0xf]  ;;  %v7531_v13 = vld [vmem:[#allocation8 + $0x320] sm:$0xf0] }
  0xd7   :  { %v5724_v12 = vor.u32 %v7534_v10, %v5723_v9  ;;  %v5712_v16 = vor.u32 %v7531_v13, %v5711_v11  ;;  %v5807_v13 = vld [vmem:[#allocation8 + $0x3d8] sm:$0xf] }
  0xd8   :  { %1721 = vmatpush.bf16.msrb.mxu0 %v5596_v19  ;;  %v7570_v19 = vld [vmem:[#allocation8 + $0x458] sm:$0xf0] }
  0xd9   :  { %1735 = vmatpush.bf16.msrb.mxu1 %v5344_v23  ;;  %v7528_v23 = vld [vmem:[#allocation8 + $0x308] sm:$0xf0] }
  0xda   :  { %1749 = vmatpush.bf16.msrb.mxu2 %v5472_v24  ;;  %1763 = vmatpush.bf16.msrb.mxu3 %v5600_v30  ;;  %v5868_v24 = vor.u32 %v7570_v19, %v5867_v18  ;;  %v5700_v30 = vor.u32 %v7528_v23, %v5699_v22  ;;  %v5975_v19 = vld [vmem:[#allocation8 + $0x528] sm:$0xf]  ;;  %v7597_v22 = vld [vmem:[#allocation8 + $0x530] sm:$0xf0] }
  0xdb   :  { %v5976_v23 = vor.u32 %v7597_v22, %v5975_v19  ;;  %v5927_v19 = vld [vmem:[#allocation8 + $0x4c8] sm:$0xf]  ;;  %v7585_v22 = vld [vmem:[#allocation8 + $0x4d0] sm:$0xf0] }
  0xdc   :  { %1722 = vmatpush.bf16.msrb.mxu0 %v5580_v38  ;;  %v774_v54 = vpop.f32.mrf.mxu0 }
  0xdd   :  { %1736 = vmatpush.bf16.msrb.mxu1 %v5328_v39  ;;  %v775_v56 = vadd.f32 %v774_v54, %v761_v50  ;;  %v788_v61 = vpop.f32.mrf.mxu1  ;;  %v5776_v39 = vor.u32 %v7545_v33, %v5773_v35  ;;  %v224_v50 = vperm.slane %v8100_v21, 3  ;;  %v5831_v54 = vld [vmem:[#allocation8 + $0x408] sm:$0xf]  ;;  %v5963_v35 = vld [vmem:[#allocation8 + $0x510] sm:$0xf] }
  0xde   :  { %1750 = vmatpush.bf16.msrb.mxu2 %v5456_v40  ;;  %1764 = vmatpush.bf16.msrb.mxu3 %v5584_v41  ;;  %v5844_v40 = vor.u32 %v7564_v37, %v5843_v36  ;;  %v7542_v41 = vld [vmem:[#allocation8 + $0x37c] sm:$0xf]  ;;  %v7527_v37 = vld [vmem:[#allocation8 + $0x304] sm:$0xf] }
  0xdf   :  { %1723 = vmatmul.bf16.vlgmr.msrb.gmra.mxu0 %v8085_v20  ;;  %v8126_v63 = vadd.f32 %v788_v61, %v775_v56  ;;  %v7539_v56 = vld [vmem:[#allocation8 + $0x364] sm:$0xf]  ;;  %v5749_v61 = vld [vmem:[#allocation8 + $0x36c] sm:$0xf0]  ;;  %v7594_v36 = vld [vmem:[#allocation8 + $0x518] sm:$0xf0] }
  0xe0   :  { %2423 = vmatpush.bf16.msra.mxu0 %v5784_v42  ;;  %1737 = vmatmul.bf16.vlgmr.msrb.gmra.mxu1 %v8078_v57  ;;  %v5761_v42 = vld [vmem:[#allocation8 + $0x384] sm:$0xf0] }
  0xe1   :  { %1751 = vmatmul.bf16.vlgmr.msrb.gmra.mxu2 %v8081_v5  ;;  %1765 = vmatmul.bf16.vlgmr.msrb.gmra.mxu3 %v8085_v20  ;;  %v5764_v45 = vor.u32 %v7542_v41, %v5761_v42  ;;  %v7569_v42 = vld [vmem:[#allocation8 + $0x454] sm:$0xf] }
  0xe2   :  { %2437 = vmatpush.bf16.msra.mxu1 %v5880_v17  ;;  %v5725_v17 = vld [vmem:[#allocation8 + $0x33c] sm:$0xf0]  ;;  %2451 = vmatpush.bf16.msra.mxu2 %v5976_v23  ;;  %v6047_v23 = vld [vmem:[#allocation8 + $0x5b8] sm:$0xf] }
  0xe3   :  { %v5728_v18 = vor.u32 %v7533_v15, %v5725_v17  ;;  %v7563_v15 = vld [vmem:[#allocation8 + $0x424] sm:$0xf] }
  0xe4   :  { %2424 = vmatpush.bf16.msra.mxu0 %v5772_v49  ;;  %v802_v1 = vpop.f32.mrf.mxu2  ;;  %v8131_v38 = vpop.f32.mrf.mxu0 }
  0xe5   :  { %v803_v4 = vadd.f32 %v802_v1, %v223_v0  ;;  %v8133_v44 = vpop.f32.mrf.mxu1  ;;  %v5752_v1 = vor.u32 %v7539_v56, %v5749_v61  ;;  %v7591_v56 = vld [vmem:[#allocation8 + $0x500] sm:$0xf0] }
  0xe6   :  { %v816_v7 = vpop.f32.mrf.mxu3  ;;  %2438 = vmatpush.bf16.msra.mxu1 %v5868_v24  ;;  %v5795_v24 = vld [vmem:[#allocation8 + $0x3c0] sm:$0xf] }
  0xe7   :  { %v817_v8 = vadd.f32 %v816_v7, %v803_v4  ;;  %v7536_v4 = vld [vmem:[#allocation8 + $0x34c] sm:$0xf]  ;;  %v5820_v7 = vor.u32 %v7558_v3, %v5819_v2  ;;  %v5796_v27 = vor.u32 %v7552_v25, %v5795_v24  ;;  %v5857_v2 = vld [vmem:[#allocation8 + $0x444] sm:$0xf0]  ;;  %v5928_v24 = vor.u32 %v7585_v22, %v5927_v19  ;;  %v7615_v25 = vld [vmem:[#allocation8 + $0x5c0] sm:$0xf0] }
  0xe8   :  { %2425 = vmatpush.bf16.msra.mxu0 %v5760_v55  ;;  %v7561_v55 = vld [vmem:[#allocation8 + $0x410] sm:$0xf0] }
  0xe9   :  { %v5832_v60 = vor.u32 %v7561_v55, %v5831_v54  ;;  %v5951_v54 = vld [vmem:[#allocation8 + $0x4f8] sm:$0xf] }
  0xea   :  { %2439 = vmatpush.bf16.msra.mxu1 %v5856_v32  ;;  %v5716_v32 = vor.u32 %v7530_v26, %v5713_v28  ;;  %v5952_v61 = vor.u32 %v7591_v56, %v5951_v54  ;;  %v6048_v28 = vor.u32 %v7615_v25, %v6047_v23  ;;  %v7606_v23 = vld [vmem:[#allocation8 + $0x578] sm:$0xf0]  ;;  %v5977_v25 = vld [vmem:[#allocation8 + $0x534] sm:$0xf0] }
  0xec   :  { %2426 = vmatpush.bf16.msra.mxu0 %v5748_v62  ;;  %v8135_v46 = vpop.f32.mrf.mxu2 }
  0xee   :  { %2440 = vmatpush.bf16.msra.mxu1 %v5844_v40  ;;  %v8140_v53 = vpop.f32.mrf.mxu3  ;;  %v5701_v40 = vld [vmem:[#allocation8 + $0x30c] sm:$0xf0] }
  0xef   :  { %v5704_v41 = vor.u32 %v7527_v37, %v5701_v40  ;;  %v6035_v37 = vld [vmem:[#allocation8 + $0x5a0] sm:$0xf]  ;;  %v7612_v40 = vld [vmem:[#allocation8 + $0x5a8] sm:$0xf0] }
  0xf0   :  { %2427 = vmatpush.bf16.msra.mxu0 %v5736_v6 }
  0xf2   :  { %2441 = vmatpush.bf16.msra.mxu1 %v5832_v60  ;;  %v7621_v60 = vld [vmem:[#allocation8 + $0x5f0] sm:$0xf0] }
  0xf4   :  { %2428 = vmatpush.bf16.msra.mxu0 %v5724_v12 }
  0xf6   :  { %2442 = vmatpush.bf16.msra.mxu1 %v5820_v7  ;;  %v7588_v7 = vld [vmem:[#allocation8 + $0x4e8] sm:$0xf0] }
  0xf8   :  { %2429 = vmatpush.bf16.msra.mxu0 %v5712_v16  ;;  %v5808_v16 = vor.u32 %v7555_v14, %v5807_v13 }
  0xfa   :  { %2443 = vmatpush.bf16.msra.mxu1 %v5808_v16  ;;  %v5845_v16 = vld [vmem:[#allocation8 + $0x42c] sm:$0xf0] }
  0xfc   :  { %2430 = vmatpush.bf16.msra.mxu0 %v5700_v30  ;;  %v830_v49 = vpop.f32.mrf.mxu0  ;;  %v7572_v30 = vld [vmem:[#allocation8 + $0x46c] sm:$0xf] }
  0xfd   :  { %v8138_v52 = vadd.f32 %v830_v49, %v817_v8  ;;  %v844_v59 = vpop.f32.mrf.mxu1  ;;  %v5737_v8 = vld [vmem:[#allocation8 + $0x354] sm:$0xf0] }
  0xfe   :  { %v845_v62 = vadd.f32 %v844_v59, %v224_v50  ;;  %v5740_v10 = vor.u32 %v7536_v4, %v5737_v8  ;;  %2444 = vmatpush.bf16.msra.mxu1 %v5796_v27  ;;  %v6071_v59 = vld [vmem:[#allocation8 + $0x5e8] sm:$0xf]  ;;  %v8150_v8 = vld [vmem:[#allocation7 + $0x4] sm:$0xf] }
  0xff   :  { %v1115_v17 = vperm.slane %v8150_v8, 0 }
 0x100   :  { %2479 = vmatpush.bf16.msrb.mxu0 %v5788_v31  ;;  %v5881_v31 = vld [vmem:[#allocation8 + $0x474] sm:$0xf0] }
 0x101   :  { %v5884_v33 = vor.u32 %v7572_v30, %v5881_v31  ;;  %v7560_v30 = vld [vmem:[#allocation8 + $0x40c] sm:$0xf]  ;;  %v5833_v31 = vld [vmem:[#allocation8 + $0x414] sm:$0xf0] }
 0x103   :  { %2493 = vmatpush.bf16.msrb.mxu1 %v5884_v33 }
 0x104   :  { %2480 = vmatpush.bf16.msrb.mxu0 %v5776_v39  ;;  %v858_v6 = vpop.f32.mrf.mxu2  ;;  %v5964_v39 = vor.u32 %v7594_v36, %v5963_v35  ;;  %v8148_v3 = vpop.f32.mrf.mxu0  ;;  %v5915_v35 = vld [vmem:[#allocation8 + $0x4b0] sm:$0xf]  ;;  %v7582_v36 = vld [vmem:[#allocation8 + $0x4b8] sm:$0xf0] }
 0x105   :  { %v859_v9 = vadd.f32 %v858_v6, %v845_v62  ;;  %v8146_v55 = vpop.f32.mrf.mxu1  ;;  %v6072_v62 = vor.u32 %v7621_v60, %v6071_v59  ;;  %v5939_v6 = vld [vmem:[#allocation8 + $0x4e0] sm:$0xf]  ;;  %v5903_v59 = vld [vmem:[#allocation8 + $0x498] sm:$0xf]  ;;  %v7579_v60 = vld [vmem:[#allocation8 + $0x4a0] sm:$0xf0] }
 0x106   :  { %v872_v11 = vpop.f32.mrf.mxu3  ;;  %2452 = vmatpush.bf16.msra.mxu2 %v5964_v39  ;;  %v5916_v39 = vor.u32 %v7582_v36, %v5915_v35 }
 0x107   :  { %v8144_v12 = vadd.f32 %v872_v11, %v859_v9  ;;  %2465 = vmatpush.bf16.msra.mxu3 %v6072_v62  ;;  %v5940_v9 = vor.u32 %v7588_v7, %v5939_v6  ;;  %v7618_v11 = vld [vmem:[#allocation8 + $0x5d8] sm:$0xf0]  ;;  %v5904_v62 = vor.u32 %v7579_v60, %v5903_v59  ;;  %v5779_v59 = vld [vmem:[#allocation8 + $0x398] sm:$0xf] }
 0x108   :  { %2481 = vmatpush.bf16.msrb.mxu0 %v5764_v45  ;;  %v5869_v45 = vld [vmem:[#allocation8 + $0x45c] sm:$0xf0]  ;;  %v7554_v7 = vld [vmem:[#allocation8 + $0x3dc] sm:$0xf] }
 0x109   :  { %v5872_v49 = vor.u32 %v7569_v42, %v5869_v45  ;;  %v7557_v42 = vld [vmem:[#allocation8 + $0x3f4] sm:$0xf]  ;;  %v5821_v45 = vld [vmem:[#allocation8 + $0x3fc] sm:$0xf0] }
 0x10a   :  { %2453 = vmatpush.bf16.msra.mxu2 %v5952_v61  ;;  %v5824_v54 = vor.u32 %v7557_v42, %v5821_v45  ;;  %v6023_v61 = vld [vmem:[#allocation8 + $0x588] sm:$0xf]  ;;  %v7593_v42 = vld [vmem:[#allocation8 + $0x514] sm:$0xf]  ;;  %v5965_v45 = vld [vmem:[#allocation8 + $0x51c] sm:$0xf0] }
 0x10b   :  { %2494 = vmatpush.bf16.msrb.mxu1 %v5872_v49 }
 0x10c   :  { %2482 = vmatpush.bf16.msrb.mxu0 %v5752_v1  ;;  %v7566_v1 = vld [vmem:[#allocation8 + $0x43c] sm:$0xf]  ;;  %v8152_v13 = vpop.f32.mrf.mxu2 }
 0x10d   :  { %v5860_v4 = vor.u32 %v7566_v1, %v5857_v2  ;;  %v7609_v1 = vld [vmem:[#allocation8 + $0x590] sm:$0xf0] }
 0x10e   :  { %2454 = vmatpush.bf16.msra.mxu2 %v5940_v9  ;;  %v6024_v6 = vor.u32 %v7609_v1, %v6023_v61  ;;  %v5809_v9 = vld [vmem:[#allocation8 + $0x3e4] sm:$0xf0]  ;;  %v7547_v61 = vld [vmem:[#allocation8 + $0x3a0] sm:$0xf0]  ;;  %v7600_v1 = vld [vmem:[#allocation8 + $0x548] sm:$0xf0] }
 0x10f   :  { %2495 = vmatpush.bf16.msrb.mxu1 %v5860_v4 }
 0x110   :  { %2483 = vmatpush.bf16.msrb.mxu0 %v5740_v10  ;;  %v6059_v10 = vld [vmem:[#allocation8 + $0x5d0] sm:$0xf] }
 0x111   :  { %v6060_v14 = vor.u32 %v7618_v11, %v6059_v10  ;;  %v5812_v11 = vor.u32 %v7554_v7, %v5809_v9  ;;  %v7620_v7 = vld [vmem:[#allocation8 + $0x5ec] sm:$0xf] }
 0x112   :  { %2455 = vmatpush.bf16.msra.mxu2 %v5928_v24  ;;  %v7596_v24 = vld [vmem:[#allocation8 + $0x52c] sm:$0xf] }
 0x113   :  { %2466 = vmatpush.bf16.msra.mxu3 %v6060_v14 }
 0x114   :  { %2484 = vmatpush.bf16.msrb.mxu0 %v5728_v18  ;;  %v5848_v18 = vor.u32 %v7563_v15, %v5845_v16  ;;  %v5891_v15 = vld [vmem:[#allocation8 + $0x480] sm:$0xf]  ;;  %v7576_v16 = vld [vmem:[#allocation8 + $0x488] sm:$0xf0] }
 0x115   :  { %v5892_v22 = vor.u32 %v7576_v16, %v5891_v15  ;;  %v5767_v16 = vld [vmem:[#allocation8 + $0x380] sm:$0xf] }
 0x116   :  { %2496 = vmatpush.bf16.msrb.mxu1 %v5848_v18  ;;  %2456 = vmatpush.bf16.msra.mxu2 %v5916_v39  ;;  %v6011_v18 = vld [vmem:[#allocation8 + $0x570] sm:$0xf]  ;;  %v5999_v39 = vld [vmem:[#allocation8 + $0x558] sm:$0xf] }
 0x117   :  { %2467 = vmatpush.bf16.msra.mxu3 %v6048_v28  ;;  %v7551_v28 = vld [vmem:[#allocation8 + $0x3c4] sm:$0xf] }
 0x118   :  { %2485 = vmatpush.bf16.msrb.mxu0 %v5716_v32  ;;  %v5836_v32 = vor.u32 %v7560_v30, %v5833_v31  ;;  %v5797_v30 = vld [vmem:[#allocation8 + $0x3cc] sm:$0xf0]  ;;  %v8155_v31 = vpop.f32.mrf.mxu3 }
 0x119   :  { %v5800_v35 = vor.u32 %v7551_v28, %v5797_v30  ;;  %v5755_v30 = vld [vmem:[#allocation8 + $0x368] sm:$0xf] }
 0x11a   :  { %2497 = vmatpush.bf16.msrb.mxu1 %v5836_v32  ;;  %2457 = vmatpush.bf16.msra.mxu2 %v5904_v62  ;;  %v5791_v32 = vld [vmem:[#allocation8 + $0x3b0] sm:$0xf]  ;;  %v5987_v62 = vld [vmem:[#allocation8 + $0x540] sm:$0xf] }
 0x11c   :  { %2486 = vmatpush.bf16.msrb.mxu0 %v5704_v41  ;;  %v1612_v26 = vpop.f32.mrf.mxu0  ;;  %v6036_v41 = vor.u32 %v7612_v40, %v6035_v37  ;;  %v7603_v40 = vld [vmem:[#allocation8 + $0x560] sm:$0xf0] }
 0x11d   :  { %v1626_v27 = vpop.f32.mrf.mxu1  ;;  %v1613_v33 = vadd.f32 %v1612_v26, %v1115_v17  ;;  %v6012_v26 = vor.u32 %v7606_v23, %v6011_v18  ;;  %v7544_v18 = vld [vmem:[#allocation8 + $0x388] sm:$0xf0]  ;;  %v7617_v23 = vld [vmem:[#allocation8 + $0x5d4] sm:$0xf] }
 0x11e   :  { %2468 = vmatpush.bf16.msra.mxu3 %v6036_v41  ;;  %2498 = vmatpush.bf16.msrb.mxu1 %v5824_v54  ;;  %v6000_v41 = vor.u32 %v7603_v40, %v5999_v39  ;;  %v5968_v54 = vor.u32 %v7593_v42, %v5965_v45  ;;  %v6049_v39 = vld [vmem:[#allocation8 + $0x5c4] sm:$0xf0] }
 0x11f   :  { %v1627_v56 = vadd.f32 %v1626_v27, %v1613_v33  ;;  %v5980_v27 = vor.u32 %v7596_v24, %v5977_v25  ;;  %v7550_v33 = vld [vmem:[#allocation8 + $0x3b8] sm:$0xf0]  ;;  %2458 = vmatpush.bf16.msra.mxu2 %v5892_v22  ;;  %v5941_v22 = vld [vmem:[#allocation8 + $0x4ec] sm:$0xf0]  ;;  %v1116_v24 = vperm.slane %v8150_v8, 1 }
 0x122   :  { %2469 = vmatpush.bf16.msra.mxu3 %v6024_v6  ;;  %2499 = vmatpush.bf16.msrb.mxu1 %v5812_v11  ;;  %v5953_v6 = vld [vmem:[#allocation8 + $0x504] sm:$0xf0]  ;;  %v5780_v11 = vor.u32 %v7547_v61, %v5779_v59  ;;  %v7581_v59 = vld [vmem:[#allocation8 + $0x4b4] sm:$0xf]  ;;  %v5917_v61 = vld [vmem:[#allocation8 + $0x4bc] sm:$0xf0] }
 0x123   :  { %2507 = vmatpush.bf16.msrb.mxu2 %v5980_v27  ;;  %v5768_v27 = vor.u32 %v7544_v18, %v5767_v16  ;;  %v7608_v16 = vld [vmem:[#allocation8 + $0x58c] sm:$0xf] }
 0x124   :  { %v1640_v49 = vpop.f32.mrf.mxu2  ;;  %v1614_v2 = vpop.f32.mrf.mxu0 }
 0x125   :  { %v1628_v4 = vpop.f32.mrf.mxu1  ;;  %v1615_v10 = vadd.f32 %v1614_v2, %v1115_v17  ;;  %v1641_v14 = vadd.f32 %v1640_v49, %v1627_v56  ;;  %v5792_v56 = vor.u32 %v7550_v33, %v5791_v32  ;;  %v5988_v2 = vor.u32 %v7600_v1, %v5987_v62  ;;  %v7584_v32 = vld [vmem:[#allocation8 + $0x4cc] sm:$0xf]  ;;  %v5929_v33 = vld [vmem:[#allocation8 + $0x4d4] sm:$0xf0]  ;;  %v7611_v62 = vld [vmem:[#allocation8 + $0x5a4] sm:$0xf] }
 0x126   :  { %2470 = vmatpush.bf16.msra.mxu3 %v6012_v26  ;;  %2500 = vmatpush.bf16.msrb.mxu1 %v5800_v35  ;;  %v6061_v26 = vld [vmem:[#allocation8 + $0x5dc] sm:$0xf0]  ;;  %v7614_v35 = vld [vmem:[#allocation8 + $0x5bc] sm:$0xf] }
 0x127   :  { %v1629_v19 = vadd.f32 %v1628_v4, %v1615_v10  ;;  %v1771_v36 = vmax.f32 %v1641_v14, 0.0  ;;  %2508 = vmatpush.bf16.msrb.mxu2 %v5968_v54  ;;  %v7590_v4 = vld [vmem:[#allocation8 + $0x4fc] sm:$0xf]  ;;  %v6073_v10 = vld [vmem:[#allocation8 + $0x5f4] sm:$0xf0]  ;;  %v1654_v14 = vpop.f32.mrf.mxu3  ;;  %v6064_v28 = vor.u32 %v7617_v23, %v6061_v26  ;;  %v6052_v42 = vor.u32 %v7614_v35, %v6049_v39 }
 0x128   :  { %v5956_v9 = vor.u32 %v7590_v4, %v5953_v6  ;;  %v6076_v15 = vor.u32 %v7620_v7, %v6073_v10  ;;  %v7538_v54 = vld [vmem:[#allocation8 + $0x358] sm:$0xf0]  ;;  %v6037_v4 = vld [vmem:[#allocation8 + $0x5ac] sm:$0xf0]  ;;  %v5731_v10 = vld [vmem:[#allocation8 + $0x338] sm:$0xf] }
 0x129   :  { %v6040_v7 = vor.u32 %v7611_v62, %v6037_v4  ;;  %v7605_v35 = vld [vmem:[#allocation8 + $0x574] sm:$0xf]  ;;  %v7574_v39 = vld [vmem:[#allocation8 + $0x478] sm:$0xf0] }
 0x12a   :  { %2471 = vmatpush.bf16.msra.mxu3 %v6000_v41  ;;  %v7357_v62 = vld [vmem:[#allocation8 + $0xb0] sm:$0xf0] }
 0x12b   :  { %2509 = vmatpush.bf16.msrb.mxu2 %v5956_v9 }
 0x12c   :  { %v1642_v17 = vpop.f32.mrf.mxu2 }
 0x12d   :  { %v1643_v37 = vadd.f32 %v1642_v17, %v1629_v19  ;;  %v7587_v19 = vld [vmem:[#allocation8 + $0x4e4] sm:$0xf]  ;;  %v7541_v17 = vld [vmem:[#allocation8 + $0x370] sm:$0xf0] }
 0x12e   :  { %2472 = vmatpush.bf16.msra.mxu3 %v5988_v2  ;;  %v5944_v25 = vor.u32 %v7587_v19, %v5941_v22  ;;  %v5756_v41 = vor.u32 %v7541_v17, %v5755_v30  ;;  %v5920_v2 = vor.u32 %v7581_v59, %v5917_v61  ;;  %v6025_v22 = vld [vmem:[#allocation8 + $0x594] sm:$0xf0]  ;;  %v5719_v30 = vld [vmem:[#allocation8 + $0x320] sm:$0xf]  ;;  %v5887_v17 = vld [vmem:[#allocation8 + $0x470] sm:$0xf] }
 0x12f   :  { %v1775_v49 = vmax.f32 %v1643_v37, 0.0  ;;  %v5932_v37 = vor.u32 %v7584_v32, %v5929_v33  ;;  %v6028_v26 = vor.u32 %v7608_v16, %v6025_v22  ;;  %v7575_v32 = vld [vmem:[#allocation8 + $0x484] sm:$0xf]  ;;  %v5893_v33 = vld [vmem:[#allocation8 + $0x48c] sm:$0xf0]  ;;  %v5888_v61 = vor.u32 %v7574_v39, %v5887_v17 }
 0x130   :  { %2510 = vmatpush.bf16.msrb.mxu2 %v5944_v25  ;;  %v6167_v59 = vld [vmem:[#allocation8 + $0xa8] sm:$0xf]  ;;  %v5989_v22 = vld [vmem:[#allocation8 + $0x54c] sm:$0xf0]  ;;  %v7351_v17 = vld [vmem:[#allocation8 + $0x80] sm:$0xf0] }
 0x131   :  { %v8157_v60 = vpack.c.bf16 %v1775_v49, %v1771_v36  ;;  %v1655_v36 = vadd.f32 %v1654_v14, %v1116_v24  ;;  %v5743_v49 = vld [vmem:[#allocation8 + $0x350] sm:$0xf]  ;;  %v7578_v14 = vld [vmem:[#allocation8 + $0x49c] sm:$0xf]  ;;  %v6131_v39 = vld [vmem:[#allocation8 + $0x60] sm:$0xf] }
 0x132   :  { %2521 = vmatpush.bf16.msrb.mxu3 %v6076_v15  ;;  %v5744_v6 = vor.u32 %v7538_v54, %v5743_v49  ;;  %v5905_v15 = vld [vmem:[#allocation8 + $0x4a4] sm:$0xf0] }
 0x133   :  { %2431 = vmatmul.bf16.vlgmr.msra.gmra.mxu0 %v8157_v60  ;;  %v5908_v19 = vor.u32 %v7578_v14, %v5905_v15  ;;  %v6155_v14 = vld [vmem:[#allocation8 + $0x90] sm:$0xf] }
 0x134   :  { %2535 = vmatpush.bf16.msra.mxu0 %v5792_v56  ;;  %2511 = vmatpush.bf16.msrb.mxu2 %v5932_v37  ;;  %v1656_v56 = vpop.f32.mrf.mxu3 }
 0x135   :  { %v1657_v9 = vadd.f32 %v1656_v56, %v1116_v24  ;;  %v7532_v24 = vld [vmem:[#allocation8 + $0x328] sm:$0xf0]  ;;  %v7529_v56 = vld [vmem:[#allocation8 + $0x310] sm:$0xf0] }
 0x136   :  { %2522 = vmatpush.bf16.msrb.mxu3 %v6064_v28 }
 0x138   :  { %2536 = vmatpush.bf16.msra.mxu0 %v5780_v11  ;;  %v7535_v11 = vld [vmem:[#allocation8 + $0x340] sm:$0xf0]  ;;  %2512 = vmatpush.bf16.msrb.mxu2 %v5920_v2  ;;  %v6001_v2 = vld [vmem:[#allocation8 + $0x564] sm:$0xf0] }
 0x139   :  { %v5732_v25 = vor.u32 %v7535_v11, %v5731_v10  ;;  %v6168_v11 = vor.u32 %v7357_v62, %v6167_v59  ;;  %v6119_v62 = vld [vmem:[#allocation8 + $0x48] sm:$0xf] }
 0x13a   :  { %2523 = vmatpush.bf16.msrb.mxu3 %v6052_v42  ;;  %v5720_v42 = vor.u32 %v7532_v24, %v5719_v30  ;;  %v6143_v24 = vld [vmem:[#allocation8 + $0x78] sm:$0xf] }
 0x13c   :  { %v1668_v40 = vpop.f32.mrf.mxu0  ;;  %2537 = vmatpush.bf16.msra.mxu0 %v5768_v27  ;;  %2513 = vmatpush.bf16.msrb.mxu2 %v5908_v19  ;;  %v7599_v19 = vld [vmem:[#allocation8 + $0x544] sm:$0xf] }
 0x13d   :  { %v1682_v45 = vpop.f32.mrf.mxu1  ;;  %v1669_v1 = vadd.f32 %v1668_v40, %v1655_v36  ;;  %v5896_v40 = vor.u32 %v7575_v32, %v5893_v33  ;;  %v5851_v32 = vld [vmem:[#allocation8 + $0x428] sm:$0xf]  ;;  %v7565_v33 = vld [vmem:[#allocation8 + $0x430] sm:$0xf0] }
 0x13e   :  { %2524 = vmatpush.bf16.msrb.mxu3 %v6040_v7  ;;  %v7571_v7 = vld [vmem:[#allocation8 + $0x460] sm:$0xf0] }
 0x13f   :  { %v1683_v18 = vadd.f32 %v1682_v45, %v1669_v1  ;;  %v5707_v45 = vld [vmem:[#allocation8 + $0x308] sm:$0xf]  ;;  %v7602_v1 = vld [vmem:[#allocation8 + $0x55c] sm:$0xf] }
 0x140   :  { %2538 = vmatpush.bf16.msra.mxu0 %v5756_v41  ;;  %v6013_v41 = vld [vmem:[#allocation8 + $0x57c] sm:$0xf0]  ;;  %2514 = vmatpush.bf16.msrb.mxu2 %v5896_v40  ;;  %v5708_v10 = vor.u32 %v7529_v56, %v5707_v45  ;;  %v7348_v40 = vld [vmem:[#allocation8 + $0x68] sm:$0xf0] }
 0x141   :  { %v1772_v36 = vmax.f32 %v1683_v18, 0.0  ;;  %v6016_v49 = vor.u32 %v7605_v35, %v6013_v41  ;;  %v7354_v18 = vld [vmem:[#allocation8 + $0x98] sm:$0xf0]  ;;  %v6144_v35 = vor.u32 %v7351_v17, %v6143_v24  ;;  %v5839_v41 = vld [vmem:[#allocation8 + $0x410] sm:$0xf]  ;;  %v6132_v56 = vor.u32 %v7348_v40, %v6131_v39 }
 0x142   :  { %2525 = vmatpush.bf16.msrb.mxu3 %v6028_v26  ;;  %v7568_v26 = vld [vmem:[#allocation8 + $0x448] sm:$0xf0]  ;;  %v5983_v17 = vld [vmem:[#allocation8 + $0x530] sm:$0xf] }
 0x143   :  { %2487 = vmatmul.bf16.vlgmr.msrb.gmra.mxu0 %v8157_v60 }
 0x144   :  { %v1670_v23 = vpop.f32.mrf.mxu0  ;;  %2539 = vmatpush.bf16.msra.mxu0 %v5744_v6  ;;  %v5875_v6 = vld [vmem:[#allocation8 + $0x458] sm:$0xf]  ;;  %v1696_v15 = vpop.f32.mrf.mxu2 }
 0x145   :  { %v1671_v27 = vadd.f32 %v1670_v23, %v1657_v9  ;;  %v1684_v28 = vpop.f32.mrf.mxu1  ;;  %v6004_v9 = vor.u32 %v7602_v1, %v6001_v2  ;;  %v5876_v16 = vor.u32 %v7571_v7, %v5875_v6  ;;  %v7345_v1 = vld [vmem:[#allocation8 + $0x50] sm:$0xf0]  ;;  %v5827_v2 = vld [vmem:[#allocation8 + $0x3f8] sm:$0xf]  ;;  %v7559_v6 = vld [vmem:[#allocation8 + $0x400] sm:$0xf0] }
 0x146   :  { %2526 = vmatpush.bf16.msrb.mxu3 %v6016_v49  ;;  %v1710_v23 = vpop.f32.mrf.mxu3 }
 0x147   :  { %v1685_v37 = vadd.f32 %v1684_v28, %v1671_v27  ;;  %v5992_v27 = vor.u32 %v7599_v19, %v5989_v22  ;;  %v6156_v28 = vor.u32 %v7354_v18, %v6155_v14  ;;  %v7342_v18 = vld [vmem:[#allocation8 + $0x38] sm:$0xf0]  ;;  %v5815_v19 = vld [vmem:[#allocation8 + $0x3e0] sm:$0xf]  ;;  %v7556_v22 = vld [vmem:[#allocation8 + $0x3e8] sm:$0xf0] }
 0x148   :  { %2540 = vmatpush.bf16.msra.mxu0 %v5732_v25  ;;  %v5863_v25 = vld [vmem:[#allocation8 + $0x440] sm:$0xf] }
 0x149   :  { %v1776_v54 = vmax.f32 %v1685_v37, 0.0  ;;  %v5864_v30 = vor.u32 %v7568_v26, %v5863_v25  ;;  %v5852_v37 = vor.u32 %v7565_v33, %v5851_v32 }
 0x14a   :  { %2527 = vmatpush.bf16.msrb.mxu3 %v6004_v9  ;;  %v1118_v9 = vperm.slane %v8150_v8, 3 }
 0x14b   :  { %v8162_v4 = vpack.c.bf16 %v1776_v54, %v1772_v36  ;;  %v1117_v36 = vperm.slane %v8150_v8, 2 }
 0x14c   :  { %2541 = vmatpush.bf16.msra.mxu0 %v5720_v42  ;;  %v7562_v42 = vld [vmem:[#allocation8 + $0x418] sm:$0xf0]  ;;  %v1698_v45 = vpop.f32.mrf.mxu2 }
 0x14d   :  { %2445 = vmatmul.bf16.vlgmr.msra.gmra.mxu1 %v8162_v4  ;;  %v1697_v59 = vadd.f32 %v1696_v15, %v1117_v36  ;;  %v1699_v7 = vadd.f32 %v1698_v45, %v1117_v36  ;;  %v5828_v15 = vor.u32 %v7559_v6, %v5827_v2  ;;  %v5803_v36 = vld [vmem:[#allocation8 + $0x3c8] sm:$0xf]  ;;  %v7381_v45 = vld [vmem:[#allocation8 + $0x170] sm:$0xf0]  ;;  %v6083_v6 = vld [vmem:[#allocation8] sm:$0xf] }
 0x14e   :  { %2549 = vmatpush.bf16.msra.mxu1 %v5888_v61  ;;  %2528 = vmatpush.bf16.msrb.mxu3 %v5992_v27  ;;  %v1712_v49 = vpop.f32.mrf.mxu3 }
 0x14f   :  { %v1711_v14 = vadd.f32 %v1710_v23, %v1697_v59  ;;  %v1713_v25 = vadd.f32 %v1712_v49, %v1699_v7  ;;  %v6095_v23 = vld [vmem:[#allocation8 + $0x18] sm:$0xf]  ;;  %v7336_v7 = vld [vmem:[#allocation8 + $0x8] sm:$0xf0] }
 0x150   :  { %2542 = vmatpush.bf16.msra.mxu0 %v5708_v10  ;;  %v6120_v10 = vor.u32 %v7345_v1, %v6119_v62  ;;  %v7595_v62 = vld [vmem:[#allocation8 + $0x520] sm:$0xf0] }
 0x152   :  { %2550 = vmatpush.bf16.msra.mxu1 %v5876_v16  ;;  %v6107_v16 = vld [vmem:[#allocation8 + $0x30] sm:$0xf] }
 0x153   :  { %2543 = vmatmul.bf16.vlgmr.msra.gmra.mxu0 %v8157_v60  ;;  %v5840_v60 = vor.u32 %v7562_v42, %v5839_v41  ;;  %v6108_v24 = vor.u32 %v7342_v18, %v6107_v16  ;;  %v6263_v42 = vld [vmem:[#allocation8 + $0x168] sm:$0xf]  ;;  %v6169_v16 = vld [vmem:[#allocation8 + $0xb4] sm:$0xf0] }
 0x154   :  { %3103 = vmatpush.bf16.msrb.mxu0 %v6168_v11  ;;  %v721_v11 = vadd.f32 %v8111_v43, %v221_v29  ;;  %v5816_v29 = vor.u32 %v7556_v22, %v5815_v19  ;;  %v7598_v43 = vld [vmem:[#allocation8 + $0x538] sm:$0xf0]  ;;  %v6264_v2 = vor.u32 %v7381_v45, %v6263_v42  ;;  %v877_v22 = vmax.f32 %v8109_v34, 0.0 }
 0x156   :  { %2551 = vmatpush.bf16.msra.mxu1 %v5864_v30  ;;  %v735_v32 = vadd.f32 %v8113_v47, %v721_v11 }
 0x158   :  { %3104 = vmatpush.bf16.msrb.mxu0 %v6156_v28  ;;  %v749_v59 = vadd.f32 %v8122_v51, %v735_v32  ;;  %v6079_v32 = vld [vmem:[#allocation8 + $0x5f0] sm:$0xf] }
 0x15a   :  { %2552 = vmatpush.bf16.msra.mxu1 %v5852_v37  ;;  %v7553_v37 = vld [vmem:[#allocation8 + $0x3d0] sm:$0xf0] }
 0x15c   :  { %v1724_v54 = vpop.f32.mrf.mxu0  ;;  %3105 = vmatpush.bf16.msrb.mxu0 %v6144_v35  ;;  %v7339_v35 = vld [vmem:[#allocation8 + $0x20] sm:$0xf0] }
 0x15d   :  { %v1738_v61 = vpop.f32.mrf.mxu1  ;;  %2501 = vmatmul.bf16.vlgmr.msrb.gmra.mxu1 %v8162_v4  ;;  %v1725_v26 = vadd.f32 %v1724_v54, %v1711_v14  ;;  %v5984_v54 = vor.u32 %v7598_v43, %v5983_v17  ;;  %v7378_v14 = vld [vmem:[#allocation8 + $0x158] sm:$0xf0]  ;;  %v7353_v43 = vld [vmem:[#allocation8 + $0x94] sm:$0xf] }
 0x15e   :  { %2553 = vmatpush.bf16.msra.mxu1 %v5840_v60  ;;  %v1739_v28 = vadd.f32 %v1738_v61, %v1118_v9  ;;  %v5804_v61 = vor.u32 %v7553_v37, %v5803_v36  ;;  %v5971_v60 = vld [vmem:[#allocation8 + $0x518] sm:$0xf] }
 0x15f   :  { %v1773_v39 = vmax.f32 %v1725_v26, 0.0  ;;  %v5972_v51 = vor.u32 %v7595_v62, %v5971_v60  ;;  %v7350_v60 = vld [vmem:[#allocation8 + $0x7c] sm:$0xf]  ;;  %v6145_v62 = vld [vmem:[#allocation8 + $0x84] sm:$0xf0] }
 0x160   :  { %3106 = vmatpush.bf16.msrb.mxu0 %v6132_v56  ;;  %v6096_v56 = vor.u32 %v7339_v35, %v6095_v23  ;;  %v6157_v23 = vld [vmem:[#allocation8 + $0x9c] sm:$0xf0] }
 0x161   :  { %v6160_v45 = vor.u32 %v7353_v43, %v6157_v23  ;;  %v5911_v43 = vld [vmem:[#allocation8 + $0x4a0] sm:$0xf]  ;;  %v7580_v23 = vld [vmem:[#allocation8 + $0x4a8] sm:$0xf0] }
 0x162   :  { %2554 = vmatpush.bf16.msra.mxu1 %v5828_v15  ;;  %v7356_v15 = vld [vmem:[#allocation8 + $0xac] sm:$0xf] }
 0x163   :  { %v6172_v17 = vor.u32 %v7356_v15, %v6169_v16  ;;  %v6215_v15 = vld [vmem:[#allocation8 + $0x108] sm:$0xf]  ;;  %v7369_v16 = vld [vmem:[#allocation8 + $0x110] sm:$0xf0] }
 0x164   :  { %v1752_v27 = vpop.f32.mrf.mxu2  ;;  %v1766_v8 = vpop.f32.mrf.mxu3  ;;  %3107 = vmatpush.bf16.msrb.mxu0 %v6120_v10  ;;  %v6251_v10 = vld [vmem:[#allocation8 + $0x150] sm:$0xf] }
 0x165   :  { %v1726_v30 = vpop.f32.mrf.mxu0  ;;  %v1740_v41 = vpop.f32.mrf.mxu1  ;;  %v1753_v49 = vadd.f32 %v1752_v27, %v1739_v28  ;;  %v5959_v27 = vld [vmem:[#allocation8 + $0x500] sm:$0xf]  ;;  %v7592_v28 = vld [vmem:[#allocation8 + $0x508] sm:$0xf0] }
 0x166   :  { %v1727_v33 = vadd.f32 %v1726_v30, %v1713_v25  ;;  %2555 = vmatpush.bf16.msra.mxu1 %v5816_v29  ;;  %v1741_v1 = vadd.f32 %v1740_v41, %v1118_v9  ;;  %v881_v25 = vmax.f32 %v749_v59, 0.0  ;;  %v6084_v9 = vor.u32 %v7336_v7, %v6083_v6  ;;  %v6239_v29 = vld [vmem:[#allocation8 + $0x138] sm:$0xf]  ;;  %v7586_v6 = vld [vmem:[#allocation8 + $0x4d8] sm:$0xf0] }
 0x167   :  { %v1767_v18 = vadd.f32 %v1766_v8, %v1753_v49  ;;  %v7375_v8 = vld [vmem:[#allocation8 + $0x140] sm:$0xf0]  ;;  %v5960_v34 = vor.u32 %v7592_v28, %v5959_v27  ;;  %v6067_v49 = vld [vmem:[#allocation8 + $0x5d8] sm:$0xf]  ;;  %v6216_v27 = vor.u32 %v7369_v16, %v6215_v15 }
 0x168   :  { %v1777_v40 = vmax.f32 %v1727_v33, 0.0  ;;  %3108 = vmatpush.bf16.msrb.mxu0 %v6108_v24  ;;  %v6252_v24 = vor.u32 %v7378_v14, %v6251_v10  ;;  %v7622_v33 = vld [vmem:[#allocation8 + $0x5f8] sm:$0xf0]  ;;  %v6240_v42 = vor.u32 %v7375_v8, %v6239_v29  ;;  %v8181_v59 = vpack.c.bf16 %v881_v25, %v877_v22  ;;  %v7616_v14 = vld [vmem:[#allocation8 + $0x5c8] sm:$0xf0] }
 0x169   :  { %v1774_v35 = vmax.f32 %v1767_v18, 0.0  ;;  %v6080_v37 = vor.u32 %v7622_v33, %v6079_v32  ;;  %v6148_v10 = vor.u32 %v7350_v60, %v6145_v62  ;;  %v7347_v18 = vld [vmem:[#allocation8 + $0x64] sm:$0xf]  ;;  %v763_v22 = vadd.f32 %v8124_v58, %v222_v48  ;;  %v7366_v32 = vld [vmem:[#allocation8 + $0xf8] sm:$0xf0] }
 0x16a   :  { %v8174_v47 = vpack.c.bf16 %v1777_v40, %v1773_v39  ;;  %2556 = vmatpush.bf16.msra.mxu1 %v5804_v61  ;;  %v5947_v39 = vld [vmem:[#allocation8 + $0x4e8] sm:$0xf]  ;;  %v7589_v40 = vld [vmem:[#allocation8 + $0x4f0] sm:$0xf0]  ;;  %v7372_v61 = vld [vmem:[#allocation8 + $0x128] sm:$0xf0] }
 0x16b   :  { %v7344_v33 = vld [vmem:[#allocation8 + $0x4c] sm:$0xf]  ;;  %v6121_v29 = vld [vmem:[#allocation8 + $0x54] sm:$0xf0]  ;;  %v777_v48 = vadd.f32 %v8131_v38, %v763_v22  ;;  %v7607_v62 = vld [vmem:[#allocation8 + $0x580] sm:$0xf0] }
 0x16c   :  { %v1754_v11 = vpop.f32.mrf.mxu2  ;;  %2459 = vmatmul.bf16.vlgmr.msra.gmra.mxu2 %v8174_v47  ;;  %3109 = vmatpush.bf16.msrb.mxu0 %v6096_v56  ;;  %v1768_v26 = vpop.f32.mrf.mxu3  ;;  %v6227_v56 = vld [vmem:[#allocation8 + $0x120] sm:$0xf]  ;;  %v6019_v60 = vld [vmem:[#allocation8 + $0x578] sm:$0xf] }
 0x16d   :  { %v1755_v19 = vadd.f32 %v1754_v11, %v1741_v1  ;;  %2563 = vmatpush.bf16.msra.mxu2 %v5984_v54  ;;  %2557 = vmatmul.bf16.vlgmr.msra.gmra.mxu1 %v8162_v4  ;;  %v7619_v54 = vld [vmem:[#allocation8 + $0x5e0] sm:$0xf0]  ;;  %v5948_v4 = vor.u32 %v7589_v40, %v5947_v39  ;;  %v6228_v7 = vor.u32 %v7372_v61, %v6227_v56  ;;  %v6055_v11 = vld [vmem:[#allocation8 + $0x5c0] sm:$0xf]  ;;  %v6191_v39 = vld [vmem:[#allocation8 + $0xd8] sm:$0xf] }
 0x16e   :  { %3117 = vmatpush.bf16.msrb.mxu1 %v6264_v2  ;;  %v6068_v1 = vor.u32 %v7619_v54, %v6067_v49  ;;  %v5935_v2 = vld [vmem:[#allocation8 + $0x4d0] sm:$0xf]  ;;  %v6056_v25 = vor.u32 %v7616_v14, %v6055_v11  ;;  %v7363_v40 = vld [vmem:[#allocation8 + $0xe0] sm:$0xf0]  ;;  %v5912_v49 = vor.u32 %v7580_v23, %v5911_v43  ;;  %v5899_v54 = vld [vmem:[#allocation8 + $0x488] sm:$0xf]  ;;  %v791_v56 = vadd.f32 %v8133_v44, %v777_v48 }
 0x16f   :  { %v1769_v30 = vadd.f32 %v1768_v26, %v1755_v19  ;;  %v6133_v19 = vld [vmem:[#allocation8 + $0x6c] sm:$0xf0]  ;;  %v5923_v26 = vld [vmem:[#allocation8 + $0x4b8] sm:$0xf]  ;;  %v7577_v61 = vld [vmem:[#allocation8 + $0x490] sm:$0xf0] }
 0x170   :  { %3110 = vmatpush.bf16.msrb.mxu0 %v6084_v9  ;;  %v7583_v9 = vld [vmem:[#allocation8 + $0x4c0] sm:$0xf0]  ;;  %v6136_v28 = vor.u32 %v7347_v18, %v6133_v19  ;;  %v7338_v11 = vld [vmem:[#allocation8 + $0x1c] sm:$0xf]  ;;  %v6097_v14 = vld [vmem:[#allocation8 + $0x24] sm:$0xf0]  ;;  %v5900_v15 = vor.u32 %v7577_v61, %v5899_v54 }
 0x171   :  { %v1778_v36 = vmax.f32 %v1769_v30, 0.0  ;;  %2564 = vmatpush.bf16.msra.mxu2 %v5972_v51  ;;  %v5936_v51 = vor.u32 %v7586_v6, %v5935_v2  ;;  %v6043_v30 = vld [vmem:[#allocation8 + $0x5a8] sm:$0xf]  ;;  %v5924_v8 = vor.u32 %v7583_v9, %v5923_v26  ;;  %v7405_v6 = vld [vmem:[#allocation8 + $0x230] sm:$0xf0]  ;;  %v878_v18 = vmax.f32 %v8126_v63, 0.0 }
 0x172   :  { %3118 = vmatpush.bf16.msrb.mxu1 %v6252_v24  ;;  %v7613_v24 = vld [vmem:[#allocation8 + $0x5b0] sm:$0xf0]  ;;  %v6359_v2 = vld [vmem:[#allocation8 + $0x228] sm:$0xf]  ;;  %v7380_v44 = vld [vmem:[#allocation8 + $0x16c] sm:$0xf]  ;;  %v6100_v9 = vor.u32 %v7338_v11, %v6097_v14 }
 0x173   :  { %v8179_v41 = vpack.c.bf16 %v1778_v36, %v1774_v35  ;;  %3111 = vmatmul.bf16.vlgmr.msrb.gmra.mxu0 %v8181_v59  ;;  %v6044_v58 = vor.u32 %v7613_v24, %v6043_v30  ;;  %v6124_v36 = vor.u32 %v7344_v33, %v6121_v29  ;;  %v6265_v16 = vld [vmem:[#allocation8 + $0x174] sm:$0xf0]  ;;  %v882_v19 = vmax.f32 %v791_v56, 0.0  ;;  %v7402_v30 = vld [vmem:[#allocation8 + $0x218] sm:$0xf0] }
 0x174   :  { %3159 = vmatpush.bf16.msra.mxu0 %v6172_v17  ;;  %v6203_v17 = vld [vmem:[#allocation8 + $0xf0] sm:$0xf]  ;;  %v6360_v22 = vor.u32 %v7405_v6, %v6359_v2  ;;  %v6268_v24 = vor.u32 %v7380_v44, %v6265_v16  ;;  %v7377_v33 = vld [vmem:[#allocation8 + $0x154] sm:$0xf]  ;;  %v6253_v29 = vld [vmem:[#allocation8 + $0x15c] sm:$0xf0] }
 0x175   :  { %2473 = vmatmul.bf16.vlgmr.msra.gmra.mxu3 %v8179_v41  ;;  %2565 = vmatpush.bf16.msra.mxu2 %v5960_v34  ;;  %v6204_v35 = vor.u32 %v7366_v32, %v6203_v17  ;;  %v6031_v34 = vld [vmem:[#allocation8 + $0x590] sm:$0xf]  ;;  %v7335_v17 = vld [vmem:[#allocation8 + $0x4] sm:$0xf]  ;;  %v7358_v63 = vld [vmem:[#allocation8 + $0xb8] sm:$0xf0] }
 0x176   :  { %2577 = vmatpush.bf16.msra.mxu3 %v6080_v37  ;;  %3119 = vmatpush.bf16.msrb.mxu1 %v6240_v42  ;;  %v7610_v37 = vld [vmem:[#allocation8 + $0x598] sm:$0xf0]  ;;  %v7341_v42 = vld [vmem:[#allocation8 + $0x34] sm:$0xf]  ;;  %v6085_v32 = vld [vmem:[#allocation8 + $0xc] sm:$0xf0] }
 0x177   :  { %v6032_v38 = vor.u32 %v7610_v37, %v6031_v34  ;;  %v6088_v23 = vor.u32 %v7335_v17, %v6085_v32  ;;  %v7399_v34 = vld [vmem:[#allocation8 + $0x200] sm:$0xf0]  ;;  %v8193_v37 = vpack.c.bf16 %v882_v19, %v878_v18  ;;  %v6241_v54 = vld [vmem:[#allocation8 + $0x144] sm:$0xf0]  ;;  %v6163_v56 = vld [vmem:[#allocation8 + $0x98] sm:$0xf] }
 0x178   :  { %3160 = vmatpush.bf16.msra.mxu0 %v6160_v45  ;;  %v6109_v45 = vld [vmem:[#allocation8 + $0x3c] sm:$0xf0]  ;;  %v6443_v6 = vld [vmem:[#allocation8 + $0x2d0] sm:$0xf]  ;;  %v6311_v18 = vld [vmem:[#allocation8 + $0x1c8] sm:$0xf] }
 0x179   :  { %2566 = vmatpush.bf16.msra.mxu2 %v5948_v4  ;;  %v6192_v4 = vor.u32 %v7363_v40, %v6191_v39  ;;  %v6256_v39 = vor.u32 %v7377_v33, %v6253_v29  ;;  %v6229_v11 = vld [vmem:[#allocation8 + $0x12c] sm:$0xf0]  ;;  %v6151_v14 = vld [vmem:[#allocation8 + $0x80] sm:$0xf]  ;;  %v7393_v19 = vld [vmem:[#allocation8 + $0x1d0] sm:$0xf0] }
 0x17a   :  { %2578 = vmatpush.bf16.msra.mxu3 %v6068_v1  ;;  %3120 = vmatpush.bf16.msrb.mxu1 %v6228_v7  ;;  %v6112_v1 = vor.u32 %v7341_v42, %v6109_v45  ;;  %v6179_v7 = vld [vmem:[#allocation8 + $0xc0] sm:$0xf]  ;;  %v6455_v42 = vld [vmem:[#allocation8 + $0x2e8] sm:$0xf]  ;;  %v7429_v45 = vld [vmem:[#allocation8 + $0x2f0] sm:$0xf0]  ;;  %v6312_v17 = vor.u32 %v7393_v19, %v6311_v18 }
 0x17b   :  { %v6299_v33 = vld [vmem:[#allocation8 + $0x1b0] sm:$0xf]  ;;  %v7390_v29 = vld [vmem:[#allocation8 + $0x1b8] sm:$0xf0] }
 0x17c   :  { %3161 = vmatpush.bf16.msra.mxu0 %v6148_v10  ;;  %2515 = vmatmul.bf16.vlgmr.msrb.gmra.mxu2 %v8174_v47  ;;  %v7360_v10 = vld [vmem:[#allocation8 + $0xc8] sm:$0xf0]  ;;  %v6271_v18 = vld [vmem:[#allocation8 + $0x170] sm:$0xf]  ;;  %v7382_v19 = vld [vmem:[#allocation8 + $0x178] sm:$0xf0] }
 0x17d   :  { %2567 = vmatpush.bf16.msra.mxu2 %v5936_v51  ;;  %v6020_v51 = vor.u32 %v7607_v62, %v6019_v60  ;;  %v6180_v26 = vor.u32 %v7360_v10, %v6179_v7  ;;  %v6456_v62 = vor.u32 %v7429_v45, %v6455_v42  ;;  %v7426_v7 = vld [vmem:[#allocation8 + $0x2d8] sm:$0xf0]  ;;  %v7371_v10 = vld [vmem:[#allocation8 + $0x124] sm:$0xf]  ;;  %v6407_v45 = vld [vmem:[#allocation8 + $0x288] sm:$0xf] }
 0x17e   :  { %2579 = vmatpush.bf16.msra.mxu3 %v6056_v25  ;;  %3121 = vmatpush.bf16.msrb.mxu1 %v6216_v27  ;;  %v6007_v25 = vld [vmem:[#allocation8 + $0x560] sm:$0xf]  ;;  %v7604_v27 = vld [vmem:[#allocation8 + $0x568] sm:$0xf0]  ;;  %v6444_v16 = vor.u32 %v7426_v7, %v6443_v6 }
 0x17f   :  { %v6008_v48 = vor.u32 %v7604_v27, %v6007_v25  ;;  %v6431_v25 = vld [vmem:[#allocation8 + $0x2b8] sm:$0xf] }
 0x180   :  { %3162 = vmatpush.bf16.msra.mxu0 %v6136_v28  ;;  %v6347_v28 = vld [vmem:[#allocation8 + $0x210] sm:$0xf]  ;;  %v6217_v27 = vld [vmem:[#allocation8 + $0x114] sm:$0xf0] }
 0x181   :  { %2568 = vmatpush.bf16.msra.mxu2 %v5924_v8  ;;  %v6175_v8 = vld [vmem:[#allocation8 + $0xb0] sm:$0xf]  ;;  %v6348_v43 = vor.u32 %v7402_v30, %v6347_v28  ;;  %v6139_v28 = vld [vmem:[#allocation8 + $0x68] sm:$0xf]  ;;  %v7349_v30 = vld [vmem:[#allocation8 + $0x70] sm:$0xf0] }
 0x182   :  { %2580 = vmatpush.bf16.msra.mxu3 %v6044_v58  ;;  %3122 = vmatpush.bf16.msrb.mxu1 %v6204_v35  ;;  %v5995_v58 = vld [vmem:[#allocation8 + $0x548] sm:$0xf]  ;;  %v7601_v35 = vld [vmem:[#allocation8 + $0x550] sm:$0xf0]  ;;  %v6176_v40 = vor.u32 %v7358_v63, %v6175_v8  ;;  %v6140_v63 = vor.u32 %v7349_v30, %v6139_v28  ;;  %v6272_v30 = vor.u32 %v7382_v19, %v6271_v18  ;;  %v7653_v18 = vld [vmem:[#allocation5 + $0x2ec] sm:$0xf0] }
 0x183   :  { %v5996_v61 = vor.u32 %v7601_v35, %v5995_v58  ;;  %v7420_v58 = vld [vmem:[#allocation8 + $0x2a8] sm:$0xf0]  ;;  %v7346_v35 = vld [vmem:[#allocation8 + $0x58] sm:$0xf0] }
 0x184   :  { %3163 = vmatpush.bf16.msra.mxu0 %v6124_v36  ;;  %v6335_v36 = vld [vmem:[#allocation8 + $0x1f8] sm:$0xf] }
 0x185   :  { %2529 = vmatmul.bf16.vlgmr.msrb.gmra.mxu3 %v8179_v41  ;;  %2569 = vmatpush.bf16.msra.mxu2 %v5912_v49  ;;  %v7374_v49 = vld [vmem:[#allocation8 + $0x13c] sm:$0xf]  ;;  %v6336_v60 = vor.u32 %v7399_v34, %v6335_v36  ;;  %v6287_v34 = vld [vmem:[#allocation8 + $0x198] sm:$0xf] }
 0x186   :  { %2581 = vmatpush.bf16.msra.mxu3 %v6032_v38  ;;  %3123 = vmatpush.bf16.msrb.mxu1 %v6192_v4  ;;  %v7355_v38 = vld [vmem:[#allocation8 + $0xa0] sm:$0xf0]  ;;  %v6323_v4 = vld [vmem:[#allocation8 + $0x1e0] sm:$0xf] }
 0x187   :  { %v6164_v2 = vor.u32 %v7355_v38, %v6163_v56  ;;  %v6193_v56 = vld [vmem:[#allocation8 + $0xe4] sm:$0xf0]  ;;  %v6115_v38 = vld [vmem:[#allocation8 + $0x38] sm:$0xf] }
 0x188   :  { %3164 = vmatpush.bf16.msra.mxu0 %v6112_v1  ;;  %v7396_v1 = vld [vmem:[#allocation8 + $0x1e8] sm:$0xf0] }
 0x189   :  { %2570 = vmatpush.bf16.msra.mxu2 %v5900_v15  ;;  %v7352_v15 = vld [vmem:[#allocation8 + $0x88] sm:$0xf0]  ;;  %v6324_v44 = vor.u32 %v7396_v1, %v6323_v4  ;;  %v6275_v4 = vld [vmem:[#allocation8 + $0x180] sm:$0xf] }
 0x18a   :  { %2582 = vmatpush.bf16.msra.mxu3 %v6020_v51  ;;  %3124 = vmatpush.bf16.msrb.mxu1 %v6180_v26  ;;  %v6232_v51 = vor.u32 %v7371_v10, %v6229_v11  ;;  %v7423_v26 = vld [vmem:[#allocation8 + $0x2c0] sm:$0xf0]  ;;  %v7384_v1 = vld [vmem:[#allocation8 + $0x188] sm:$0xf0]  ;;  %v7414_v10 = vld [vmem:[#allocation8 + $0x278] sm:$0xf0] }
 0x18b   :  { %v6432_v32 = vor.u32 %v7423_v26, %v6431_v25  ;;  %v7404_v11 = vld [vmem:[#allocation8 + $0x22c] sm:$0xf]  ;;  %v6276_v21 = vor.u32 %v7384_v1, %v6275_v4 }
 0x18c   :  { %3165 = vmatpush.bf16.msra.mxu0 %v6100_v9  ;;  %2571 = vmatmul.bf16.vlgmr.msra.gmra.mxu2 %v8174_v47  ;;  %v6244_v47 = vor.u32 %v7374_v49, %v6241_v54  ;;  %v7368_v9 = vld [vmem:[#allocation8 + $0x10c] sm:$0xf]  ;;  %v7417_v49 = vld [vmem:[#allocation8 + $0x290] sm:$0xf0]  ;;  %v7362_v54 = vld [vmem:[#allocation8 + $0xdc] sm:$0xf] }
 0x18d   :  { %3131 = vmatpush.bf16.msrb.mxu2 %v6360_v22  ;;  %3125 = vmatmul.bf16.vlgmr.msrb.gmra.mxu1 %v8193_v37  ;;  %v6152_v22 = vor.u32 %v7352_v15, %v6151_v14  ;;  %v6220_v8 = vor.u32 %v7368_v9, %v6217_v27  ;;  %v6196_v6 = vor.u32 %v7362_v54, %v6193_v56  ;;  %v6361_v14 = vld [vmem:[#allocation8 + $0x234] sm:$0xf0]  ;;  %v7359_v15 = vld [vmem:[#allocation8 + $0xc4] sm:$0xf] }
 0x18e   :  { %3173 = vmatpush.bf16.msra.mxu1 %v6268_v24  ;;  %2583 = vmatpush.bf16.msra.mxu3 %v6008_v48  ;;  %v805_v24 = vadd.f32 %v8135_v46, %v223_v0  ;;  %v6419_v48 = vld [vmem:[#allocation8 + $0x2a0] sm:$0xf]  ;;  %v6300_v0 = vor.u32 %v7390_v29, %v6299_v33  ;;  %v6364_v25 = vor.u32 %v7404_v11, %v6361_v14  ;;  %v6383_v9 = vld [vmem:[#allocation8 + $0x258] sm:$0xf]  ;;  %v7411_v27 = vld [vmem:[#allocation8 + $0x260] sm:$0xf0] }
 0x18f   :  { %v6420_v46 = vor.u32 %v7420_v58, %v6419_v48  ;;  %v7337_v33 = vld [vmem:[#allocation8 + $0x10] sm:$0xf0]  ;;  %v7379_v29 = vld [vmem:[#allocation8 + $0x160] sm:$0xf0]  ;;  %v6371_v58 = vld [vmem:[#allocation8 + $0x240] sm:$0xf] }
 0x190   :  { %3166 = vmatpush.bf16.msra.mxu0 %v6088_v23  ;;  %v6127_v23 = vld [vmem:[#allocation8 + $0x50] sm:$0xf]  ;;  %v819_v36 = vadd.f32 %v8140_v53, %v805_v24  ;;  %v7401_v24 = vld [vmem:[#allocation8 + $0x214] sm:$0xf]  ;;  %v7395_v54 = vld [vmem:[#allocation8 + $0x1e4] sm:$0xf] }
 0x191   :  { %3132 = vmatpush.bf16.msrb.mxu2 %v6348_v43  ;;  %v6205_v43 = vld [vmem:[#allocation8 + $0xfc] sm:$0xf0]  ;;  %v6128_v42 = vor.u32 %v7346_v35, %v6127_v23  ;;  %v6223_v11 = vld [vmem:[#allocation8 + $0x110] sm:$0xf]  ;;  %v7370_v14 = vld [vmem:[#allocation8 + $0x118] sm:$0xf0] }
 0x192   :  { %3174 = vmatpush.bf16.msra.mxu1 %v6256_v39  ;;  %2584 = vmatpush.bf16.msra.mxu3 %v5996_v61  ;;  %v7387_v39 = vld [vmem:[#allocation8 + $0x1a0] sm:$0xf0]  ;;  %v6224_v19 = vor.u32 %v7370_v14, %v6223_v11 }
 0x193   :  { %3167 = vmatmul.bf16.vlgmr.msra.gmra.mxu0 %v8181_v59  ;;  %v7343_v61 = vld [vmem:[#allocation8 + $0x40] sm:$0xf0]  ;;  %v6288_v53 = vor.u32 %v7387_v39, %v6287_v34  ;;  %v6247_v34 = vld [vmem:[#allocation8 + $0x140] sm:$0xf]  ;;  %v7376_v39 = vld [vmem:[#allocation8 + $0x148] sm:$0xf0] }
 0x194   :  { %3215 = vmatpush.bf16.msrb.mxu0 %v6176_v40  ;;  %v6116_v7 = vor.u32 %v7343_v61, %v6115_v38  ;;  %v6248_v56 = vor.u32 %v7376_v39, %v6247_v34  ;;  %v6325_v38 = vld [vmem:[#allocation8 + $0x1ec] sm:$0xf0]  ;;  %v7425_v61 = vld [vmem:[#allocation8 + $0x2d4] sm:$0xf]  ;;  %v7406_v39 = vld [vmem:[#allocation8 + $0x238] sm:$0xf0] }
 0x195   :  { %3133 = vmatpush.bf16.msrb.mxu2 %v6336_v60  ;;  %2585 = vmatmul.bf16.vlgmr.msra.gmra.mxu3 %v8179_v41  ;;  %v7365_v41 = vld [vmem:[#allocation8 + $0xf4] sm:$0xf]  ;;  %v833_v60 = vadd.f32 %v8148_v3, %v819_v36  ;;  %v6181_v3 = vld [vmem:[#allocation8 + $0xcc] sm:$0xf0]  ;;  %v6337_v36 = vld [vmem:[#allocation8 + $0x204] sm:$0xf0]  ;;  %v6328_v1 = vor.u32 %v7395_v54, %v6325_v38 }
 0x196   :  { %3145 = vmatpush.bf16.msrb.mxu3 %v6456_v62  ;;  %3175 = vmatpush.bf16.msra.mxu1 %v6244_v47  ;;  %v6208_v40 = vor.u32 %v7365_v41, %v6205_v43  ;;  %v6408_v62 = vor.u32 %v7417_v49, %v6407_v45  ;;  %v6395_v47 = vld [vmem:[#allocation8 + $0x270] sm:$0xf]  ;;  %v6184_v26 = vor.u32 %v7359_v15, %v6181_v3  ;;  %v7408_v41 = vld [vmem:[#allocation8 + $0x248] sm:$0xf0]  ;;  %v7398_v43 = vld [vmem:[#allocation8 + $0x1fc] sm:$0xf] }
 0x197   :  { %v6340_v45 = vor.u32 %v7398_v43, %v6337_v36  ;;  %v6579_v15 = vld [vmem:[#allocation5 + $0x2c0] sm:$0xf]  ;;  %v7645_v43 = vld [vmem:[#allocation5 + $0x22c] sm:$0xf0]  ;;  %v6397_v36 = vld [vmem:[#allocation8 + $0x27c] sm:$0xf0] }
 0x198   :  { %3216 = vmatpush.bf16.msrb.mxu0 %v6164_v2  ;;  %v847_v2 = vadd.f32 %v8146_v55, %v224_v50  ;;  %v883_v50 = vmax.f32 %v833_v60, 0.0  ;;  %v6445_v60 = vld [vmem:[#allocation8 + $0x2dc] sm:$0xf0]  ;;  %v7641_v38 = vld [vmem:[#allocation5 + $0x1cc] sm:$0xf0] }
 0x199   :  { %3134 = vmatpush.bf16.msrb.mxu2 %v6324_v44  ;;  %v6103_v44 = vld [vmem:[#allocation8 + $0x20] sm:$0xf]  ;;  %v7637_v14 = vld [vmem:[#allocation5 + $0x16c] sm:$0xf0] }
 0x19a   :  { %3146 = vmatpush.bf16.msrb.mxu3 %v6444_v16  ;;  %3176 = vmatpush.bf16.msra.mxu1 %v6232_v51  ;;  %v7340_v16 = vld [vmem:[#allocation8 + $0x28] sm:$0xf0]  ;;  %v879_v51 = vmax.f32 %v8138_v52, 0.0  ;;  %v861_v55 = vadd.f32 %v8152_v13, %v847_v2  ;;  %v6259_v52 = vld [vmem:[#allocation8 + $0x158] sm:$0xf] }
 0x19b   :  { %v6104_v28 = vor.u32 %v7340_v16, %v6103_v44  ;;  %v6260_v35 = vor.u32 %v7379_v29, %v6259_v52  ;;  %v7389_v16 = vld [vmem:[#allocation8 + $0x1b4] sm:$0xf]  ;;  %v6199_v52 = vld [vmem:[#allocation8 + $0xe0] sm:$0xf]  ;;  %v7364_v29 = vld [vmem:[#allocation8 + $0xe8] sm:$0xf0] }
 0x19c   :  { %3217 = vmatpush.bf16.msrb.mxu0 %v6152_v22  ;;  %v6396_v22 = vor.u32 %v7414_v10, %v6395_v47  ;;  %v875_v13 = vadd.f32 %v8155_v31, %v861_v55  ;;  %v6372_v31 = vor.u32 %v7408_v41, %v6371_v58  ;;  %v7392_v47 = vld [vmem:[#allocation8 + $0x1cc] sm:$0xf]  ;;  %v6433_v10 = vld [vmem:[#allocation8 + $0x2c4] sm:$0xf0]  ;;  %v7367_v55 = vld [vmem:[#allocation8 + $0x100] sm:$0xf0] }
 0x19d   :  { %3135 = vmatpush.bf16.msrb.mxu2 %v6312_v17  ;;  %v6349_v17 = vld [vmem:[#allocation8 + $0x21c] sm:$0xf0]  ;;  %v7383_v58 = vld [vmem:[#allocation8 + $0x184] sm:$0xf]  ;;  %v6277_v41 = vld [vmem:[#allocation8 + $0x18c] sm:$0xf0] }
 0x19e   :  { %3147 = vmatpush.bf16.msrb.mxu3 %v6432_v32  ;;  %3177 = vmatpush.bf16.msra.mxu1 %v6220_v8  ;;  %v6091_v32 = vld [vmem:[#allocation8 + $0x8] sm:$0xf]  ;;  %v6384_v8 = vor.u32 %v7411_v27, %v6383_v9  ;;  %v6352_v48 = vor.u32 %v7401_v24, %v6349_v17  ;;  %v7386_v9 = vld [vmem:[#allocation8 + $0x19c] sm:$0xf]  ;;  %v6563_v27 = vld [vmem:[#allocation5 + $0x260] sm:$0xf] }
 0x19f   :  { %v6092_v23 = vor.u32 %v7337_v33, %v6091_v32  ;;  %v6289_v24 = vld [vmem:[#allocation8 + $0x1a4] sm:$0xf0]  ;;  %v7416_v17 = vld [vmem:[#allocation8 + $0x28c] sm:$0xf]  ;;  %v6409_v32 = vld [vmem:[#allocation8 + $0x294] sm:$0xf0] }
 0x1a0   :  { %3218 = vmatpush.bf16.msrb.mxu0 %v6140_v63  ;;  %v8209_v63 = vpack.c.bf16 %v883_v50, %v879_v51  ;;  %v6301_v51 = vld [vmem:[#allocation8 + $0x1bc] sm:$0xf0]  ;;  %v6211_v50 = vld [vmem:[#allocation8 + $0xf8] sm:$0xf] }
 0x1a1   :  { %3136 = vmatpush.bf16.msrb.mxu2 %v6300_v0  ;;  %v7428_v0 = vld [vmem:[#allocation8 + $0x2ec] sm:$0xf] }
 0x1a2   :  { %3148 = vmatpush.bf16.msrb.mxu3 %v6420_v46  ;;  %3178 = vmatpush.bf16.msra.mxu1 %v6208_v40  ;;  %v6457_v46 = vld [vmem:[#allocation8 + $0x2f4] sm:$0xf0]  ;;  %v880_v40 = vmax.f32 %v8144_v12, 0.0  ;;  %v6448_v12 = vor.u32 %v7425_v61, %v6445_v60 }
 0x1a3   :  { %v6460_v49 = vor.u32 %v7428_v0, %v6457_v46  ;;  %v6367_v0 = vld [vmem:[#allocation8 + $0x230] sm:$0xf] }
 0x1a4   :  { %3219 = vmatpush.bf16.msrb.mxu0 %v6128_v42  ;;  %v884_v42 = vmax.f32 %v875_v13, 0.0  ;;  %v6292_v13 = vor.u32 %v7386_v9, %v6289_v24  ;;  %v6368_v61 = vor.u32 %v7406_v39, %v6367_v0  ;;  %v7633_v9 = vld [vmem:[#allocation5 + $0x10c] sm:$0xf0]  ;;  %v7397_v24 = vld [vmem:[#allocation8 + $0x1f0] sm:$0xf0] }
 0x1a5   :  { %3137 = vmatpush.bf16.msrb.mxu2 %v6288_v53  ;;  %v6235_v53 = vld [vmem:[#allocation8 + $0x128] sm:$0xf]  ;;  %v7424_v0 = vld [vmem:[#allocation8 + $0x2c8] sm:$0xf0]  ;;  %v6643_v39 = vld [vmem:[#allocation5 + $0x440] sm:$0xf] }
 0x1a6   :  { %3149 = vmatpush.bf16.msrb.mxu3 %v6408_v62  ;;  %3179 = vmatpush.bf16.msra.mxu1 %v6196_v6  ;;  %v7373_v62 = vld [vmem:[#allocation8 + $0x130] sm:$0xf0]  ;;  %v8215_v4 = vpack.c.bf16 %v884_v42, %v880_v40  ;;  %v6313_v6 = vld [vmem:[#allocation8 + $0x1d4] sm:$0xf0] }
 0x1a7   :  { %v6236_v2 = vor.u32 %v7373_v62, %v6235_v53  ;;  %v6316_v3 = vor.u32 %v7392_v47, %v6313_v6  ;;  %v7361_v40 = vld [vmem:[#allocation8 + $0xd0] sm:$0xf0]  ;;  %v7410_v53 = vld [vmem:[#allocation8 + $0x25c] sm:$0xf]  ;;  %v6385_v62 = vld [vmem:[#allocation8 + $0x264] sm:$0xf0] }
 0x1a8   :  { %3220 = vmatpush.bf16.msrb.mxu0 %v6116_v7  ;;  %v7422_v7 = vld [vmem:[#allocation8 + $0x2bc] sm:$0xf]  ;;  %v6707_v42 = vld [vmem:[#allocation5 + $0x5c0] sm:$0xf]  ;;  %v7403_v47 = vld [vmem:[#allocation8 + $0x220] sm:$0xf0]  ;;  %v6388_v11 = vor.u32 %v7410_v53, %v6385_v62 }
 0x1a9   :  { %3138 = vmatpush.bf16.msrb.mxu2 %v6276_v21  ;;  %v6436_v44 = vor.u32 %v7422_v7, %v6433_v10  ;;  %v6421_v21 = vld [vmem:[#allocation8 + $0x2ac] sm:$0xf0]  ;;  %v6691_v6 = vld [vmem:[#allocation5 + $0x560] sm:$0xf]  ;;  %v7681_v7 = vld [vmem:[#allocation5 + $0x58c] sm:$0xf0] }
 0x1aa   :  { %3150 = vmatpush.bf16.msrb.mxu3 %v6396_v22  ;;  %3180 = vmatpush.bf16.msra.mxu1 %v6184_v26  ;;  %v6580_v22 = vor.u32 %v7653_v18, %v6579_v15  ;;  %v6515_v10 = vld [vmem:[#allocation5 + $0x140] sm:$0xf]  ;;  %v7391_v62 = vld [vmem:[#allocation8 + $0x1c0] sm:$0xf0] }
 0x1ab   :  { %v6516_v18 = vor.u32 %v7637_v14, %v6515_v10  ;;  %v6295_v14 = vld [vmem:[#allocation8 + $0x1a0] sm:$0xf] }
 0x1ac   :  { %3221 = vmatpush.bf16.msrb.mxu0 %v6104_v28  ;;  %3139 = vmatmul.bf16.vlgmr.msrb.gmra.mxu2 %v8209_v63  ;;  %v7649_v28 = vld [vmem:[#allocation5 + $0x28c] sm:$0xf0] }
 0x1ad   :  { %3187 = vmatpush.bf16.msra.mxu2 %v6364_v25  ;;  %3181 = vmatmul.bf16.vlgmr.msra.gmra.mxu1 %v8193_v37  ;;  %v6304_v25 = vor.u32 %v7389_v16, %v6301_v51  ;;  %v6564_v33 = vor.u32 %v7649_v28, %v6563_v27  ;;  %v6343_v16 = vld [vmem:[#allocation8 + $0x200] sm:$0xf]  ;;  %v6463_v51 = vld [vmem:[#allocation8 + $0x2f0] sm:$0xf] }
 0x1ae   :  { %3229 = vmatpush.bf16.msrb.mxu1 %v6272_v30  ;;  %3151 = vmatpush.bf16.msrb.mxu3 %v6384_v8  ;;  %v6212_v30 = vor.u32 %v7367_v55, %v6211_v50  ;;  %v6547_v8 = vld [vmem:[#allocation5 + $0x200] sm:$0xf]  ;;  %v7677_v50 = vld [vmem:[#allocation5 + $0x52c] sm:$0xf0] }
 0x1af   :  { %v6548_v46 = vor.u32 %v7645_v43, %v6547_v8  ;;  %v6499_v55 = vld [vmem:[#allocation5 + $0xe0] sm:$0xf]  ;;  %v7673_v8 = vld [vmem:[#allocation5 + $0x4cc] sm:$0xf0]  ;;  %v6319_v43 = vld [vmem:[#allocation8 + $0x1d0] sm:$0xf] }
 0x1b0   :  { %3222 = vmatpush.bf16.msrb.mxu0 %v6092_v23  ;;  %v6200_v23 = vor.u32 %v7364_v29, %v6199_v52  ;;  %v8219_v34 = vpop.f32.mrf.mxu0  ;;  %v6659_v29 = vld [vmem:[#allocation5 + $0x4a0] sm:$0xf] }
 0x1b1   :  { %3188 = vmatpush.bf16.msra.mxu2 %v6352_v48  ;;  %v6412_v48 = vor.u32 %v7416_v17, %v6409_v32  ;;  %v6500_v17 = vor.u32 %v7633_v9, %v6499_v55  ;;  %v6451_v32 = vld [vmem:[#allocation8 + $0x2d8] sm:$0xf]  ;;  %v7385_v9 = vld [vmem:[#allocation8 + $0x190] sm:$0xf0] }
 0x1b2   :  { %3230 = vmatpush.bf16.msrb.mxu1 %v6260_v35  ;;  %3152 = vmatpush.bf16.msrb.mxu3 %v6372_v31  ;;  %v7413_v35 = vld [vmem:[#allocation8 + $0x274] sm:$0xf]  ;;  %v6187_v31 = vld [vmem:[#allocation8 + $0xc8] sm:$0xf] }
 0x1b3   :  { %3223 = vmatmul.bf16.vlgmr.msrb.gmra.mxu0 %v8181_v59  ;;  %v7419_v59 = vld [vmem:[#allocation8 + $0x2a4] sm:$0xf]  ;;  %v6400_v54 = vor.u32 %v7413_v35, %v6397_v36  ;;  %v6188_v60 = vor.u32 %v7361_v40, %v6187_v31  ;;  %v6439_v36 = vld [vmem:[#allocation8 + $0x2c0] sm:$0xf] }
 0x1b4   :  { %3857 = vmatpush.bf16.msra.mxu0 %v6580_v22  ;;  %v6424_v26 = vor.u32 %v7419_v59, %v6421_v21  ;;  %v7430_v59 = vld [vmem:[#allocation8 + $0x2f8] sm:$0xf0]  ;;  %v6692_v21 = vor.u32 %v7681_v7, %v6691_v6  ;;  %v6675_v22 = vld [vmem:[#allocation5 + $0x500] sm:$0xf]  ;;  %v7669_v40 = vld [vmem:[#allocation5 + $0x46c] sm:$0xf0] }
 0x1b5   :  { %3189 = vmatpush.bf16.msra.mxu2 %v6340_v45  ;;  %3153 = vmatmul.bf16.vlgmr.msrb.gmra.mxu3 %v8215_v4  ;;  %v7685_v45 = vld [vmem:[#allocation5 + $0x5ec] sm:$0xf0]  ;;  %v6464_v28 = vor.u32 %v7430_v59, %v6463_v51  ;;  %v6676_v52 = vor.u32 %v7677_v50, %v6675_v22  ;;  %v7679_v7 = vld [vmem:[#allocation5 + $0x564] sm:$0xf]  ;;  %v6283_v50 = vld [vmem:[#allocation8 + $0x188] sm:$0xf] }
 0x1b6   :  { %3201 = vmatpush.bf16.msra.mxu3 %v6460_v49  ;;  %3231 = vmatpush.bf16.msrb.mxu1 %v6248_v56  ;;  %v6280_v49 = vor.u32 %v7383_v58, %v6277_v41  ;;  %v6531_v56 = vld [vmem:[#allocation5 + $0x1a0] sm:$0xf]  ;;  %v7665_v6 = vld [vmem:[#allocation5 + $0x40c] sm:$0xf0] }
 0x1b7   :  { %v7661_v22 = vld [vmem:[#allocation5 + $0x3ac] sm:$0xf0] }
 0x1b8   :  { %3858 = vmatpush.bf16.msra.mxu0 %v6564_v33  ;;  %v7427_v33 = vld [vmem:[#allocation8 + $0x2e0] sm:$0xf0] }
 0x1b9   :  { %3190 = vmatpush.bf16.msra.mxu2 %v6328_v1  ;;  %v6532_v1 = vor.u32 %v7641_v38, %v6531_v56  ;;  %v6452_v41 = vor.u32 %v7427_v33, %v6451_v32  ;;  %v6440_v56 = vor.u32 %v7424_v0, %v6439_v36  ;;  %v6307_v38 = vld [vmem:[#allocation8 + $0x1b8] sm:$0xf]  ;;  %v6391_v36 = vld [vmem:[#allocation8 + $0x260] sm:$0xf]  ;;  %v7412_v0 = vld [vmem:[#allocation8 + $0x268] sm:$0xf0] }
 0x1ba   :  { %3202 = vmatpush.bf16.msra.mxu3 %v6448_v12  ;;  %3232 = vmatpush.bf16.msrb.mxu1 %v6236_v2  ;;  %v6355_v12 = vld [vmem:[#allocation8 + $0x218] sm:$0xf]  ;;  %v6708_v2 = vor.u32 %v7685_v45, %v6707_v42  ;;  %v6467_v42 = vld [vmem:[#allocation5 + $0x20] sm:$0xf]  ;;  %v7625_v45 = vld [vmem:[#allocation5 + $0x4c] sm:$0xf0]  ;;  %v6308_v10 = vor.u32 %v7391_v62, %v6307_v38 }
 0x1bb   :  { %v6356_v15 = vor.u32 %v7403_v47, %v6355_v12  ;;  %v7421_v12 = vld [vmem:[#allocation8 + $0x2b0] sm:$0xf0]  ;;  %v7667_v38 = vld [vmem:[#allocation5 + $0x444] sm:$0xf]  ;;  %v6645_v62 = vld [vmem:[#allocation5 + $0x470] sm:$0xf0] }
 0x1bc   :  { %3859 = vmatpush.bf16.msra.mxu0 %v6548_v46  ;;  %v6660_v46 = vor.u32 %v7673_v8, %v6659_v29  ;;  %v7657_v29 = vld [vmem:[#allocation5 + $0x34c] sm:$0xf0] }
 0x1bd   :  { %3191 = vmatpush.bf16.msra.mxu2 %v6316_v3  ;;  %v7407_v3 = vld [vmem:[#allocation8 + $0x244] sm:$0xf] }
 0x1be   :  { %3203 = vmatpush.bf16.msra.mxu3 %v6436_v44  ;;  %3233 = vmatpush.bf16.msrb.mxu1 %v6224_v19  ;;  %v6373_v44 = vld [vmem:[#allocation8 + $0x24c] sm:$0xf0]  ;;  %v7400_v19 = vld [vmem:[#allocation8 + $0x208] sm:$0xf0] }
 0x1bf   :  { %v6344_v27 = vor.u32 %v7400_v19, %v6343_v16  ;;  %v6415_v16 = vld [vmem:[#allocation8 + $0x290] sm:$0xf] }
 0x1c0   :  { %3860 = vmatpush.bf16.msra.mxu0 %v6532_v1  ;;  %v6427_v1 = vld [vmem:[#allocation8 + $0x2a8] sm:$0xf] }
 0x1c1   :  { %3192 = vmatpush.bf16.msra.mxu2 %v6304_v25  ;;  %v8222_v25 = vpop.f32.mrf.mxu0 }
 0x1c2   :  { %3204 = vmatpush.bf16.msra.mxu3 %v6424_v26  ;;  %3234 = vmatpush.bf16.msrb.mxu1 %v6212_v30  ;;  %v6376_v26 = vor.u32 %v7407_v3, %v6373_v44  ;;  %v6331_v30 = vld [vmem:[#allocation8 + $0x1e8] sm:$0xf]  ;;  %v7388_v44 = vld [vmem:[#allocation8 + $0x1a8] sm:$0xf0] }
 0x1c3   :  { %v6296_v55 = vor.u32 %v7388_v44, %v6295_v14  ;;  %v7663_v14 = vld [vmem:[#allocation5 + $0x3e4] sm:$0xf] }
 0x1c4   :  { %3861 = vmatpush.bf16.msra.mxu0 %v6516_v18  ;;  %v7418_v18 = vld [vmem:[#allocation8 + $0x298] sm:$0xf0] }
 0x1c5   :  { %3193 = vmatpush.bf16.msra.mxu2 %v6292_v13  ;;  %v6483_v13 = vld [vmem:[#allocation5 + $0x80] sm:$0xf] }
 0x1c6   :  { %3205 = vmatpush.bf16.msra.mxu3 %v6412_v48  ;;  %3235 = vmatpush.bf16.msrb.mxu1 %v6200_v23  ;;  %v7629_v48 = vld [vmem:[#allocation5 + $0xac] sm:$0xf0]  ;;  %v7394_v23 = vld [vmem:[#allocation8 + $0x1d8] sm:$0xf0] }
 0x1c7   :  { %v6484_v58 = vor.u32 %v7629_v48, %v6483_v13  ;;  %v7715_v13 = vld [vmem:[#allocation5 + $0x8c4] sm:$0xf]  ;;  %v6837_v48 = vld [vmem:[#allocation5 + $0x8f0] sm:$0xf0] }
 0x1c8   :  { %3862 = vmatpush.bf16.msra.mxu0 %v6500_v17  ;;  %v6835_v17 = vld [vmem:[#allocation5 + $0x8c0] sm:$0xf] }
 0x1c9   :  { %3194 = vmatpush.bf16.msra.mxu2 %v6280_v49  ;;  %v6468_v49 = vor.u32 %v7625_v45, %v6467_v42  ;;  %v8229_v53 = vpop.f32.mrf.mxu0  ;;  %v6819_v42 = vld [vmem:[#allocation5 + $0x860] sm:$0xf]  ;;  %v7713_v45 = vld [vmem:[#allocation5 + $0x88c] sm:$0xf0] }
 0x1ca   :  { %3206 = vmatpush.bf16.msra.mxu3 %v6400_v54  ;;  %3236 = vmatpush.bf16.msrb.mxu1 %v6188_v60  ;;  %v2446_v35 = vpop.f32.mrf.mxu1  ;;  %v6320_v54 = vor.u32 %v7394_v23, %v6319_v43  ;;  %v6709_v60 = vld [vmem:[#allocation5 + $0x5f0] sm:$0xf0] }
 0x1cb   :  { %v8227_v31 = vadd.f32 %v2446_v35, %v8219_v34  ;;  %v6644_v34 = vor.u32 %v7669_v40, %v6643_v39  ;;  %v6661_v43 = vld [vmem:[#allocation5 + $0x4d0] sm:$0xf0] }
 0x1cc   :  { %3195 = vmatmul.bf16.vlgmr.msra.gmra.mxu2 %v8209_v63  ;;  %3863 = vmatpush.bf16.msra.mxu0 %v6484_v58  ;;  %v7671_v58 = vld [vmem:[#allocation5 + $0x4a4] sm:$0xf] }
 0x1cd   :  { %3243 = vmatpush.bf16.msrb.mxu2 %v6368_v61  ;;  %3237 = vmatmul.bf16.vlgmr.msrb.gmra.mxu1 %v8193_v37  ;;  %v6332_v37 = vor.u32 %v7397_v24, %v6331_v30  ;;  %v7683_v61 = vld [vmem:[#allocation5 + $0x5c4] sm:$0xf]  ;;  %v7415_v24 = vld [vmem:[#allocation8 + $0x280] sm:$0xf0]  ;;  %v6664_v39 = vor.u32 %v7671_v58, %v6661_v43 }
 0x1ce   :  { %3871 = vmatpush.bf16.msra.mxu1 %v6708_v2  ;;  %3207 = vmatpush.bf16.msra.mxu3 %v6388_v11  ;;  %v6712_v47 = vor.u32 %v7683_v61, %v6709_v60  ;;  %v6627_v2 = vld [vmem:[#allocation5 + $0x3e0] sm:$0xf]  ;;  %v6428_v11 = vor.u32 %v7421_v12, %v6427_v1  ;;  %v6403_v30 = vld [vmem:[#allocation8 + $0x278] sm:$0xf]  ;;  %v6392_v61 = vor.u32 %v7412_v0, %v6391_v36  ;;  %v6379_v60 = vld [vmem:[#allocation8 + $0x248] sm:$0xf] }
 0x1cf   :  { %v6628_v19 = vor.u32 %v7665_v6, %v6627_v2  ;;  %v6820_v1 = vor.u32 %v7713_v45, %v6819_v42  ;;  %v7409_v12 = vld [vmem:[#allocation8 + $0x250] sm:$0xf0]  ;;  %v7651_v2 = vld [vmem:[#allocation5 + $0x2c4] sm:$0xf]  ;;  %v6581_v6 = vld [vmem:[#allocation5 + $0x2f0] sm:$0xf0] }
 0x1d0   :  { %3864 = vmatpush.bf16.msra.mxu0 %v6468_v49  ;;  %v6840_v49 = vor.u32 %v7715_v13, %v6837_v48  ;;  %v7699_v13 = vld [vmem:[#allocation5 + $0x744] sm:$0xf]  ;;  %v6773_v48 = vld [vmem:[#allocation5 + $0x770] sm:$0xf0]  ;;  %v6755_v36 = vld [vmem:[#allocation5 + $0x6e0] sm:$0xf] }
 0x1d1   :  { %3244 = vmatpush.bf16.msrb.mxu2 %v6356_v15  ;;  %v6693_v15 = vld [vmem:[#allocation5 + $0x590] sm:$0xf0]  ;;  %v2490_v8 = vpop.f32.mrf.mxu0  ;;  %v7655_v58 = vld [vmem:[#allocation5 + $0x324] sm:$0xf]  ;;  %v6843_v0 = vld [vmem:[#allocation5 + $0x8c8] sm:$0xf] }
 0x1d2   :  { %3872 = vmatpush.bf16.msra.mxu1 %v6692_v21  ;;  %3208 = vmatpush.bf16.msra.mxu3 %v6376_v26  ;;  %v2448_v3 = vpop.f32.mrf.mxu1  ;;  %v6696_v51 = vor.u32 %v7679_v7, %v6693_v15  ;;  %v6611_v21 = vld [vmem:[#allocation5 + $0x380] sm:$0xf]  ;;  %v6416_v26 = vor.u32 %v7418_v18, %v6415_v16  ;;  %v6629_v15 = vld [vmem:[#allocation5 + $0x410] sm:$0xf0]  ;;  %v7697_v45 = vld [vmem:[#allocation5 + $0x70c] sm:$0xf0] }
 0x1d3   :  { %3865 = vmatmul.bf16.vlgmr.msra.gmra.mxu0 %v8078_v57  ;;  %v8233_v59 = vadd.f32 %v2448_v3, %v8222_v25  ;;  %v6612_v32 = vor.u32 %v7661_v22, %v6611_v21  ;;  %v6595_v25 = vld [vmem:[#allocation5 + $0x320] sm:$0xf]  ;;  %v6380_v3 = vor.u32 %v7409_v12, %v6379_v60  ;;  %v6632_v44 = vor.u32 %v7663_v14, %v6629_v15  ;;  %v7705_v22 = vld [vmem:[#allocation5 + $0x7cc] sm:$0xf0]  ;;  %v7695_v60 = vld [vmem:[#allocation5 + $0x6e4] sm:$0xf] }
 0x1d4   :  { %3913 = vmatpush.bf16.msrb.mxu0 %v6712_v47  ;;  %v7709_v47 = vld [vmem:[#allocation5 + $0x82c] sm:$0xf0]  ;;  %v6787_v21 = vld [vmem:[#allocation5 + $0x7a0] sm:$0xf]  ;;  %v6741_v14 = vld [vmem:[#allocation5 + $0x6b0] sm:$0xf0] }
 0x1d5   :  { %3245 = vmatpush.bf16.msrb.mxu2 %v6344_v27  ;;  %3209 = vmatmul.bf16.vlgmr.msra.gmra.mxu3 %v8215_v4  ;;  %v7675_v27 = vld [vmem:[#allocation5 + $0x504] sm:$0xf]  ;;  %v6811_v15 = vld [vmem:[#allocation5 + $0x808] sm:$0xf] }
 0x1d6   :  { %3257 = vmatpush.bf16.msrb.mxu3 %v6464_v28  ;;  %3873 = vmatpush.bf16.msra.mxu1 %v6676_v52  ;;  %v6677_v28 = vld [vmem:[#allocation5 + $0x530] sm:$0xf0]  ;;  %v7717_v52 = vld [vmem:[#allocation5 + $0x8ec] sm:$0xf0] }
 0x1d7   :  { %v6680_v33 = vor.u32 %v7675_v27, %v6677_v28  ;;  %v6836_v35 = vor.u32 %v7717_v52, %v6835_v17  ;;  %v6789_v27 = vld [vmem:[#allocation5 + $0x7d0] sm:$0xf0]  ;;  %v7659_v28 = vld [vmem:[#allocation5 + $0x384] sm:$0xf]  ;;  %v6788_v17 = vor.u32 %v7705_v22, %v6787_v21  ;;  %v7701_v52 = vld [vmem:[#allocation5 + $0x76c] sm:$0xf0] }
 0x1d8   :  { %3914 = vmatpush.bf16.msrb.mxu0 %v6696_v51  ;;  %v6584_v51 = vor.u32 %v7651_v2, %v6581_v6  ;;  %v7693_v2 = vld [vmem:[#allocation5 + $0x6ac] sm:$0xf0]  ;;  %v7635_v6 = vld [vmem:[#allocation5 + $0x144] sm:$0xf] }
 0x1d9   :  { %3246 = vmatpush.bf16.msrb.mxu2 %v6332_v37  ;;  %v6284_v37 = vor.u32 %v7385_v9, %v6283_v50  ;;  %v2544_v16 = vpop.f32.mrf.mxu0  ;;  %v7703_v9 = vld [vmem:[#allocation5 + $0x7a4] sm:$0xf] }
 0x1da   :  { %3258 = vmatpush.bf16.msrb.mxu3 %v6452_v41  ;;  %3874 = vmatpush.bf16.msra.mxu1 %v6660_v46  ;;  %v6404_v41 = vor.u32 %v7415_v24, %v6403_v30  ;;  %v2502_v23 = vpop.f32.mrf.mxu1  ;;  %v6596_v46 = vor.u32 %v7657_v29, %v6595_v25  ;;  %v6613_v30 = vld [vmem:[#allocation5 + $0x3b0] sm:$0xf0]  ;;  %v7643_v25 = vld [vmem:[#allocation5 + $0x204] sm:$0xf] }
 0x1db   :  { %v8236_v40 = vadd.f32 %v2502_v23, %v8229_v53  ;;  %v6648_v53 = vor.u32 %v7667_v38, %v6645_v62  ;;  %v6616_v24 = vor.u32 %v7659_v28, %v6613_v30  ;;  %v6549_v29 = vld [vmem:[#allocation5 + $0x230] sm:$0xf0] }
 0x1dc   :  { %3915 = vmatpush.bf16.msrb.mxu0 %v6680_v33  ;;  %v6771_v33 = vld [vmem:[#allocation5 + $0x740] sm:$0xf]  ;;  %v6757_v62 = vld [vmem:[#allocation5 + $0x710] sm:$0xf0] }
 0x1dd   :  { %3247 = vmatpush.bf16.msrb.mxu2 %v6320_v54  ;;  %v7711_v54 = vld [vmem:[#allocation5 + $0x864] sm:$0xf]  ;;  %v6772_v23 = vor.u32 %v7701_v52, %v6771_v33  ;;  %v6725_v33 = vld [vmem:[#allocation5 + $0x650] sm:$0xf0] }
 0x1de   :  { %3259 = vmatpush.bf16.msrb.mxu3 %v6440_v56  ;;  %3875 = vmatpush.bf16.msra.mxu1 %v6644_v34  ;;  %v6821_v56 = vld [vmem:[#allocation5 + $0x890] sm:$0xf0]  ;;  %v6803_v34 = vld [vmem:[#allocation5 + $0x800] sm:$0xf] }
 0x1df   :  { %v6824_v7 = vor.u32 %v7711_v54, %v6821_v56  ;;  %v6533_v54 = vld [vmem:[#allocation5 + $0x1d0] sm:$0xf0] }
 0x1e0   :  { %3916 = vmatpush.bf16.msrb.mxu0 %v6664_v39 }
 0x1e1   :  { %3248 = vmatpush.bf16.msrb.mxu2 %v6308_v10  ;;  %v7707_v10 = vld [vmem:[#allocation5 + $0x804] sm:$0xf]  ;;  %v2546_v38 = vpop.f32.mrf.mxu0 }
 0x1e2   :  { %3260 = vmatpush.bf16.msrb.mxu3 %v6428_v11  ;;  %3876 = vmatpush.bf16.msra.mxu1 %v6628_v19  ;;  %v6805_v11 = vld [vmem:[#allocation5 + $0x830] sm:$0xf0]  ;;  %v2504_v18 = vpop.f32.mrf.mxu1  ;;  %v6804_v19 = vor.u32 %v7709_v47, %v6803_v34  ;;  %v6739_v34 = vld [vmem:[#allocation5 + $0x680] sm:$0xf]  ;;  %v6827_v47 = vld [vmem:[#allocation5 + $0x868] sm:$0xf] }
 0x1e3   :  { %v8240_v50 = vadd.f32 %v2504_v18, %v2490_v8  ;;  %v6792_v8 = vor.u32 %v7703_v9, %v6789_v27  ;;  %v6723_v18 = vld [vmem:[#allocation5 + $0x620] sm:$0xf] }
 0x1e4   :  { %3917 = vmatpush.bf16.msrb.mxu0 %v6648_v53  ;;  %v7714_v53 = vld [vmem:[#allocation5 + $0x894] sm:$0xf0] }
 0x1e5   :  { %3249 = vmatpush.bf16.msrb.mxu2 %v6296_v55  ;;  %v7647_v55 = vld [vmem:[#allocation5 + $0x264] sm:$0xf] }
 0x1e6   :  { %3261 = vmatpush.bf16.msrb.mxu3 %v6416_v26  ;;  %3877 = vmatpush.bf16.msra.mxu1 %v6612_v32  ;;  %v6808_v26 = vor.u32 %v7707_v10, %v6805_v11  ;;  %v6760_v10 = vor.u32 %v7695_v60, %v6757_v62  ;;  %v6828_v11 = vor.u32 %v7714_v53, %v6827_v47  ;;  %v6555_v60 = vld [vmem:[#allocation5 + $0x208] sm:$0xf]  ;;  %v7646_v62 = vld [vmem:[#allocation5 + $0x234] sm:$0xf0]  ;;  %v7648_v53 = vld [vmem:[#allocation5 + $0x26c] sm:$0xf] }
 0x1e7   :  { %v7686_v47 = vld [vmem:[#allocation5 + $0x5f4] sm:$0xf0] }
 0x1e8   :  { %3918 = vmatpush.bf16.msrb.mxu0 %v6632_v44  ;;  %v6740_v44 = vor.u32 %v7693_v2, %v6739_v34  ;;  %v6573_v2 = vld [vmem:[#allocation5 + $0x298] sm:$0xf0] }
 0x1e9   :  { %3250 = vmatpush.bf16.msrb.mxu2 %v6284_v37  ;;  %v6597_v37 = vld [vmem:[#allocation5 + $0x350] sm:$0xf0] }
 0x1ea   :  { %3262 = vmatpush.bf16.msrb.mxu3 %v6404_v41  ;;  %3878 = vmatpush.bf16.msra.mxu1 %v6596_v46  ;;  %v6600_v41 = vor.u32 %v7655_v58, %v6597_v37  ;;  %v2558_v43 = vpop.f32.mrf.mxu1  ;;  %v7718_v46 = vld [vmem:[#allocation5 + $0x8f4] sm:$0xf0]  ;;  %v7627_v58 = vld [vmem:[#allocation5 + $0x84] sm:$0xf]  ;;  %v6485_v37 = vld [vmem:[#allocation5 + $0xb0] sm:$0xf0] }
 0x1eb   :  { %v8243_v39 = vadd.f32 %v2558_v43, %v2544_v16  ;;  %v6844_v56 = vor.u32 %v7718_v46, %v6843_v0  ;;  %v6589_v0 = vld [vmem:[#allocation5 + $0x2f8] sm:$0xf0] }
 0x1ec   :  { %3251 = vmatmul.bf16.vlgmr.msrb.gmra.mxu2 %v8209_v63  ;;  %v6565_v63 = vld [vmem:[#allocation5 + $0x290] sm:$0xf0]  ;;  %3919 = vmatpush.bf16.msrb.mxu0 %v6616_v24 }
 0x1ed   :  { %3885 = vmatpush.bf16.msra.mxu2 %v6836_v35  ;;  %3879 = vmatmul.bf16.vlgmr.msra.gmra.mxu1 %v8081_v5  ;;  %v6568_v32 = vor.u32 %v7647_v55, %v6565_v63  ;;  %v6552_v35 = vor.u32 %v7643_v25, %v6549_v29  ;;  %v7631_v55 = vld [vmem:[#allocation5 + $0xe4] sm:$0xf]  ;;  %v6501_v63 = vld [vmem:[#allocation5 + $0x110] sm:$0xf0] }
 0x1ee   :  { %3927 = vmatpush.bf16.msrb.mxu1 %v6840_v49  ;;  %3263 = vmatpush.bf16.msrb.mxu3 %v6392_v61  ;;  %v7639_v49 = vld [vmem:[#allocation5 + $0x1a4] sm:$0xf]  ;;  %v6504_v29 = vor.u32 %v7631_v55, %v6501_v63  ;;  %v6557_v55 = vld [vmem:[#allocation5 + $0x238] sm:$0xf0] }
 0x1ef   :  { %v2460_v42 = vpop.f32.mrf.mxu2  ;;  %v6536_v12 = vor.u32 %v7639_v49, %v6533_v54  ;;  %v6488_v49 = vor.u32 %v7627_v58, %v6485_v37  ;;  %v7623_v54 = vld [vmem:[#allocation5 + $0x24] sm:$0xf]  ;;  %v6731_v37 = vld [vmem:[#allocation5 + $0x628] sm:$0xf] }
 0x1f0   :  { %v2461_v61 = vadd.f32 %v2460_v42, %v8227_v31  ;;  %3920 = vmatpush.bf16.msrb.mxu0 %v6600_v41  ;;  %v7691_v31 = vld [vmem:[#allocation5 + $0x684] sm:$0xf]  ;;  %v3112_v28 = vpop.f32.mrf.mxu0  ;;  %v6571_v41 = vld [vmem:[#allocation5 + $0x268] sm:$0xf] }
 0x1f1   :  { %3886 = vmatpush.bf16.msra.mxu2 %v6820_v1  ;;  %v6756_v1 = vor.u32 %v7697_v45, %v6755_v36  ;;  %v6744_v9 = vor.u32 %v7691_v31, %v6741_v14  ;;  %v7652_v36 = vld [vmem:[#allocation5 + $0x2cc] sm:$0xf]  ;;  %v6779_v42 = vld [vmem:[#allocation5 + $0x748] sm:$0xf]  ;;  %v7702_v45 = vld [vmem:[#allocation5 + $0x774] sm:$0xf0] }
 0x1f2   :  { %3928 = vmatpush.bf16.msrb.mxu1 %v6824_v7  ;;  %3264 = vmatpush.bf16.msrb.mxu3 %v6380_v3  ;;  %v6517_v7 = vld [vmem:[#allocation5 + $0x170] sm:$0xf0]  ;;  %v2560_v3 = vpop.f32.mrf.mxu1  ;;  %v6592_v46 = vor.u32 %v7652_v36, %v6589_v0  ;;  %v7698_v14 = vld [vmem:[#allocation5 + $0x714] sm:$0xf0]  ;;  %v6507_v0 = vld [vmem:[#allocation5 + $0xe8] sm:$0xf] }
 0x1f3   :  { %3921 = vmatmul.bf16.vlgmr.msrb.gmra.mxu0 %v8081_v5  ;;  %v6520_v16 = vor.u32 %v7635_v6, %v6517_v7  ;;  %v8247_v21 = vadd.f32 %v2560_v3, %v2546_v38  ;;  %v6576_v7 = vor.u32 %v7648_v53, %v6573_v2  ;;  %v7670_v53 = vld [vmem:[#allocation5 + $0x474] sm:$0xf0]  ;;  %v7632_v2 = vld [vmem:[#allocation5 + $0xec] sm:$0xf] }
 0x1f4   :  { %3969 = vmatpush.bf16.msra.mxu0 %v6844_v56  ;;  %v6780_v56 = vor.u32 %v7702_v45, %v6779_v42  ;;  %v7674_v45 = vld [vmem:[#allocation5 + $0x4d4] sm:$0xf0] }
 0x1f5   :  { %3887 = vmatpush.bf16.msra.mxu2 %v6804_v19  ;;  %3265 = vmatmul.bf16.vlgmr.msrb.gmra.mxu3 %v8215_v4  ;;  %v6776_v4 = vor.u32 %v7699_v13, %v6773_v48  ;;  %v7689_v19 = vld [vmem:[#allocation5 + $0x64c] sm:$0xf0]  ;;  %v7706_v13 = vld [vmem:[#allocation5 + $0x7d4] sm:$0xf0] }
 0x1f6   :  { %3899 = vmatpush.bf16.msra.mxu3 %v6584_v51  ;;  %3929 = vmatpush.bf16.msrb.mxu1 %v6808_v26  ;;  %v7710_v51 = vld [vmem:[#allocation5 + $0x834] sm:$0xf0]  ;;  %v6587_v26 = vld [vmem:[#allocation5 + $0x2c8] sm:$0xf]  ;;  %v6724_v25 = vor.u32 %v7689_v19, %v6723_v18 }
 0x1f7   :  { %v2462_v22 = vpop.f32.mrf.mxu2  ;;  %v6812_v27 = vor.u32 %v7710_v51, %v6811_v15  ;;  %v6556_v15 = vor.u32 %v7646_v62, %v6555_v60  ;;  %v7682_v51 = vld [vmem:[#allocation5 + $0x594] sm:$0xf0]  ;;  %v6491_v62 = vld [vmem:[#allocation5 + $0x88] sm:$0xf] }
 0x1f8   :  { %3970 = vmatpush.bf16.msra.mxu0 %v6828_v11  ;;  %v2463_v30 = vadd.f32 %v2462_v22, %v8233_v59  ;;  %v2474_v24 = vpop.f32.mrf.mxu3  ;;  %v3114_v11 = vpop.f32.mrf.mxu0  ;;  %v7644_v22 = vld [vmem:[#allocation5 + $0x20c] sm:$0xf] }
 0x1f9   :  { %3888 = vmatpush.bf16.msra.mxu2 %v6788_v17  ;;  %v7654_v17 = vld [vmem:[#allocation5 + $0x2f4] sm:$0xf0]  ;;  %v2475_v52 = vadd.f32 %v2474_v24, %v2461_v61  ;;  %v6560_v63 = vor.u32 %v7644_v22, %v6557_v55  ;;  %v6717_v22 = vld [vmem:[#allocation5 + $0x5f8] sm:$0xf0] }
 0x1fa   :  { %3900 = vmatpush.bf16.msra.mxu3 %v6568_v32  ;;  %3930 = vmatpush.bf16.msrb.mxu1 %v6792_v8  ;;  %v7687_v32 = vld [vmem:[#allocation5 + $0x624] sm:$0xf]  ;;  %v6795_v8 = vld [vmem:[#allocation5 + $0x7a8] sm:$0xf]  ;;  %v6588_v48 = vor.u32 %v7654_v17, %v6587_v26 }
 0x1fb   :  { %v8250_v43 = vadd.f32 %v3112_v28, %v2475_v52  ;;  %v6728_v59 = vor.u32 %v7687_v32, %v6725_v33  ;;  %v6747_v26 = vld [vmem:[#allocation5 + $0x688] sm:$0xf]  ;;  %v7638_v32 = vld [vmem:[#allocation5 + $0x174] sm:$0xf0] }
 0x1fc   :  { %3971 = vmatpush.bf16.msra.mxu0 %v6812_v27  ;;  %v6523_v17 = vld [vmem:[#allocation5 + $0x148] sm:$0xf] }
 0x1fd   :  { %3889 = vmatpush.bf16.msra.mxu2 %v6772_v23  ;;  %v6796_v23 = vor.u32 %v7706_v13, %v6795_v8  ;;  %v6683_v33 = vld [vmem:[#allocation5 + $0x508] sm:$0xf]  ;;  %v7640_v8 = vld [vmem:[#allocation5 + $0x1ac] sm:$0xf]  ;;  %v6541_v13 = vld [vmem:[#allocation5 + $0x1d8] sm:$0xf0] }
 0x1fe   :  { %3901 = vmatpush.bf16.msra.mxu3 %v6552_v35  ;;  %3931 = vmatpush.bf16.msrb.mxu1 %v6776_v4  ;;  %v7650_v35 = vld [vmem:[#allocation5 + $0x294] sm:$0xf0]  ;;  %v6469_v4 = vld [vmem:[#allocation5 + $0x50] sm:$0xf0]  ;;  %v6544_v58 = vor.u32 %v7640_v8, %v6541_v13  ;;  %v6701_v8 = vld [vmem:[#allocation5 + $0x598] sm:$0xf0] }
 0x1ff   :  { %v2516_v38 = vpop.f32.mrf.mxu2  ;;  %v6572_v61 = vor.u32 %v7650_v35, %v6571_v41  ;;  %v6472_v31 = vor.u32 %v7623_v54, %v6469_v4  ;;  %v7690_v41 = vld [vmem:[#allocation5 + $0x654] sm:$0xf0]  ;;  %v6524_v35 = vor.u32 %v7638_v32, %v6523_v17  ;;  %v6525_v54 = vld [vmem:[#allocation5 + $0x178] sm:$0xf0] }
 0x200   :  { %3972 = vmatpush.bf16.msra.mxu0 %v6796_v23  ;;  %v2517_v34 = vadd.f32 %v2516_v38, %v8236_v40  ;;  %v6539_v40 = vld [vmem:[#allocation5 + $0x1a8] sm:$0xf]  ;;  %v7662_v32 = vld [vmem:[#allocation5 + $0x3b4] sm:$0xf0] }
 0x201   :  { %3890 = vmatpush.bf16.msra.mxu2 %v6756_v1  ;;  %v6715_v1 = vld [vmem:[#allocation5 + $0x5c8] sm:$0xf] }
 0x202   :  { %3902 = vmatpush.bf16.msra.mxu3 %v6536_v12  ;;  %3932 = vmatpush.bf16.msrb.mxu1 %v6760_v10  ;;  %v2476_v12 = vpop.f32.mrf.mxu3  ;;  %v6763_v10 = vld [vmem:[#allocation5 + $0x6e8] sm:$0xf]  ;;  %v6716_v3 = vor.u32 %v7686_v47, %v6715_v1  ;;  %v7630_v1 = vld [vmem:[#allocation5 + $0xb4] sm:$0xf0] }
 0x203   :  { %v2477_v6 = vadd.f32 %v2476_v12, %v2463_v30  ;;  %v6764_v19 = vor.u32 %v7698_v14, %v6763_v10  ;;  %v6651_v12 = vld [vmem:[#allocation5 + $0x448] sm:$0xf] }
 0x204   :  { %3973 = vmatpush.bf16.msra.mxu0 %v6780_v56  ;;  %v6652_v14 = vor.u32 %v7670_v53, %v6651_v12  ;;  %v6813_v12 = vld [vmem:[#allocation5 + $0x838] sm:$0xf0]  ;;  %v7664_v53 = vld [vmem:[#allocation5 + $0x3ec] sm:$0xf] }
 0x205   :  { %3891 = vmatpush.bf16.msra.mxu2 %v6740_v44  ;;  %v7642_v44 = vld [vmem:[#allocation5 + $0x1d4] sm:$0xf0]  ;;  %v8255_v18 = vadd.f32 %v3114_v11, %v2477_v6  ;;  %v6509_v6 = vld [vmem:[#allocation5 + $0x118] sm:$0xf0] }
 0x206   :  { %3903 = vmatpush.bf16.msra.mxu3 %v6520_v16  ;;  %3933 = vmatpush.bf16.msrb.mxu1 %v6744_v9  ;;  %v6699_v16 = vld [vmem:[#allocation5 + $0x568] sm:$0xf]  ;;  %v7694_v9 = vld [vmem:[#allocation5 + $0x6b4] sm:$0xf0]  ;;  %v6540_v30 = vor.u32 %v7642_v44, %v6539_v40  ;;  %v6512_v10 = vor.u32 %v7632_v2, %v6509_v6  ;;  %v6637_v6 = vld [vmem:[#allocation5 + $0x418] sm:$0xf0] }
 0x207   :  { %v6748_v27 = vor.u32 %v7694_v9, %v6747_v26  ;;  %v2518_v28 = vpop.f32.mrf.mxu2  ;;  %v6700_v24 = vor.u32 %v7682_v51, %v6699_v16  ;;  %v6635_v40 = vld [vmem:[#allocation5 + $0x3e8] sm:$0xf]  ;;  %v7628_v16 = vld [vmem:[#allocation5 + $0x8c] sm:$0xf] }
 0x208   :  { %3974 = vmatpush.bf16.msra.mxu0 %v6764_v19  ;;  %v2519_v52 = vadd.f32 %v2518_v28, %v8240_v50  ;;  %v7634_v50 = vld [vmem:[#allocation5 + $0x114] sm:$0xf0]  ;;  %v6493_v19 = vld [vmem:[#allocation5 + $0xb8] sm:$0xf0]  ;;  %v7684_v51 = vld [vmem:[#allocation5 + $0x5cc] sm:$0xf] }
 0x209   :  { %3892 = vmatpush.bf16.msra.mxu2 %v6724_v25  ;;  %v6496_v55 = vor.u32 %v7628_v16, %v6493_v19  ;;  %v6619_v28 = vld [vmem:[#allocation5 + $0x388] sm:$0xf]  ;;  %v6720_v17 = vor.u32 %v7684_v51, %v6717_v22 }
 0x20a   :  { %3904 = vmatpush.bf16.msra.mxu3 %v6504_v29  ;;  %3934 = vmatpush.bf16.msrb.mxu1 %v6728_v59  ;;  %v2530_v25 = vpop.f32.mrf.mxu3  ;;  %v7678_v29 = vld [vmem:[#allocation5 + $0x534] sm:$0xf0]  ;;  %v6732_v59 = vor.u32 %v7690_v41, %v6731_v37  ;;  %v3126_v23 = vpop.f32.mrf.mxu1  ;;  %v6603_v37 = vld [vmem:[#allocation5 + $0x328] sm:$0xf] }
 0x20b   :  { %v6684_v36 = vor.u32 %v7678_v29, %v6683_v33  ;;  %v8260_v42 = vadd.f32 %v3126_v23, %v8250_v43  ;;  %v7624_v33 = vld [vmem:[#allocation5 + $0x2c] sm:$0xf]  ;;  %v7658_v41 = vld [vmem:[#allocation5 + $0x354] sm:$0xf0] }
 0x20c   :  { %3893 = vmatmul.bf16.vlgmr.msra.gmra.mxu2 %v8085_v20  ;;  %3975 = vmatpush.bf16.msra.mxu0 %v6748_v27  ;;  %v7680_v29 = vld [vmem:[#allocation5 + $0x56c] sm:$0xf] }
 0x20d   :  { %3941 = vmatpush.bf16.msrb.mxu2 %v6588_v48  ;;  %3935 = vmatmul.bf16.vlgmr.msrb.gmra.mxu1 %v8085_v20  ;;  %v2531_v48 = vadd.f32 %v2530_v25, %v2517_v34  ;;  %v7716_v23 = vld [vmem:[#allocation5 + $0x8cc] sm:$0xf] }
 0x20e   :  { %3983 = vmatpush.bf16.msra.mxu1 %v6592_v46  ;;  %3905 = vmatpush.bf16.msra.mxu3 %v6488_v49  ;;  %v6667_v46 = vld [vmem:[#allocation5 + $0x4a8] sm:$0xf]  ;;  %v7636_v49 = vld [vmem:[#allocation5 + $0x14c] sm:$0xf] }
 0x20f   :  { %v6528_v4 = vor.u32 %v7636_v49, %v6525_v54  ;;  %v2572_v38 = vpop.f32.mrf.mxu2  ;;  %v6668_v60 = vor.u32 %v7674_v45, %v6667_v46  ;;  %v7672_v45 = vld [vmem:[#allocation5 + $0x4ac] sm:$0xf]  ;;  %v6669_v54 = vld [vmem:[#allocation5 + $0x4d8] sm:$0xf0] }
 0x210   :  { %3976 = vmatpush.bf16.msra.mxu0 %v6732_v59  ;;  %v3168_v56 = vpop.f32.mrf.mxu0  ;;  %v2573_v43 = vadd.f32 %v2572_v38, %v8243_v39  ;;  %v7666_v39 = vld [vmem:[#allocation5 + $0x414] sm:$0xf0]  ;;  %v7676_v59 = vld [vmem:[#allocation5 + $0x50c] sm:$0xf]  ;;  %v6672_v38 = vor.u32 %v7672_v45, %v6669_v54 }
 0x211   :  { %3942 = vmatpush.bf16.msrb.mxu2 %v6572_v61  ;;  %v6508_v61 = vor.u32 %v7634_v50, %v6507_v0  ;;  %v8262_v34 = vadd.f32 %v3168_v56, %v2531_v48  ;;  %v6636_v27 = vor.u32 %v7666_v39, %v6635_v40  ;;  %v6620_v48 = vor.u32 %v7662_v32, %v6619_v28  ;;  %v6829_v56 = vld [vmem:[#allocation5 + $0x898] sm:$0xf0]  ;;  %v7700_v40 = vld [vmem:[#allocation5 + $0x74c] sm:$0xf] }
 0x212   :  { %3984 = vmatpush.bf16.msra.mxu1 %v6576_v7  ;;  %3906 = vmatpush.bf16.msra.mxu3 %v6472_v31  ;;  %v2532_v47 = vpop.f32.mrf.mxu3  ;;  %v3128_v11 = vpop.f32.mrf.mxu1  ;;  %v6492_v31 = vor.u32 %v7630_v1, %v6491_v62  ;;  %v6653_v62 = vld [vmem:[#allocation5 + $0x478] sm:$0xf0]  ;;  %v7708_v1 = vld [vmem:[#allocation5 + $0x80c] sm:$0xf] }
 0x213   :  { %3977 = vmatmul.bf16.vlgmr.msra.gmra.mxu0 %v8085_v20  ;;  %v2533_v7 = vadd.f32 %v2532_v47, %v2519_v52  ;;  %v8267_v44 = vadd.f32 %v3128_v11, %v8255_v18  ;;  %v6477_v52 = vld [vmem:[#allocation5 + $0x58] sm:$0xf0]  ;;  %v6640_v11 = vor.u32 %v7664_v53, %v6637_v6  ;;  %v7692_v32 = vld [vmem:[#allocation5 + $0x68c] sm:$0xf] }
 0x214   :  { %v6480_v13 = vor.u32 %v7624_v33, %v6477_v52  ;;  %v6781_v39 = vld [vmem:[#allocation5 + $0x778] sm:$0xf0] }
 0x215   :  { %3943 = vmatpush.bf16.msrb.mxu2 %v6556_v15  ;;  %3907 = vmatmul.bf16.vlgmr.msra.gmra.mxu3 %v8078_v57  ;;  %v6475_v15 = vld [vmem:[#allocation5 + $0x28] sm:$0xf]  ;;  %v6765_v28 = vld [vmem:[#allocation5 + $0x718] sm:$0xf0] }
 0x216   :  { %3955 = vmatpush.bf16.msrb.mxu3 %v6716_v3  ;;  %3985 = vmatpush.bf16.msra.mxu1 %v6560_v63  ;;  %v7626_v3 = vld [vmem:[#allocation5 + $0x54] sm:$0xf0]  ;;  %v6749_v33 = vld [vmem:[#allocation5 + $0x6b8] sm:$0xf0] }
 0x217   :  { %v2574_v26 = vpop.f32.mrf.mxu2  ;;  %v6476_v9 = vor.u32 %v7626_v3, %v6475_v15  ;;  %v6621_v3 = vld [vmem:[#allocation5 + $0x3b8] sm:$0xf0] }
 0x218   :  { %v3170_v63 = vpop.f32.mrf.mxu0 }
 0x219   :  { %3944 = vmatpush.bf16.msrb.mxu2 %v6540_v30  ;;  %v8269_v30 = vadd.f32 %v3170_v63, %v2533_v7  ;;  %v7704_v7 = vld [vmem:[#allocation5 + $0x7ac] sm:$0xf] }
 0x21a   :  { %3956 = vmatpush.bf16.msrb.mxu3 %v6700_v24  ;;  %3986 = vmatpush.bf16.msra.mxu1 %v6544_v58  ;;  %v2575_v24 = vadd.f32 %v2574_v26, %v8247_v21  ;;  %v2586_v18 = vpop.f32.mrf.mxu3  ;;  %v6704_v58 = vor.u32 %v7680_v29, %v6701_v8  ;;  %v6685_v21 = vld [vmem:[#allocation5 + $0x538] sm:$0xf0]  ;;  %v7656_v63 = vld [vmem:[#allocation5 + $0x32c] sm:$0xf] }
 0x21b   :  { %v2587_v25 = vadd.f32 %v2586_v18, %v2573_v43  ;;  %v6688_v50 = vor.u32 %v7676_v59, %v6685_v21  ;;  %v6816_v43 = vor.u32 %v7708_v1, %v6813_v12  ;;  %v6923_v59 = vld [vmem:[#allocation8 + $0x690] sm:$0xf]  ;;  %v7738_v21 = vld [vmem:[#allocation8 + $0x698] sm:$0xf0] }
 0x21c   :  { %v7019_v1 = vld [vmem:[#allocation8 + $0x750] sm:$0xf] }
 0x21d   :  { %3945 = vmatpush.bf16.msrb.mxu2 %v6524_v35  ;;  %v6845_v35 = vld [vmem:[#allocation5 + $0x8f8] sm:$0xf0] }
 0x21e   :  { %3957 = vmatpush.bf16.msrb.mxu3 %v6684_v36  ;;  %3987 = vmatpush.bf16.msra.mxu1 %v6528_v4  ;;  %v6604_v36 = vor.u32 %v7658_v41, %v6603_v37  ;;  %v6848_v46 = vor.u32 %v7716_v23, %v6845_v35  ;;  %v7712_v4 = vld [vmem:[#allocation5 + $0x86c] sm:$0xf]  ;;  %v6733_v37 = vld [vmem:[#allocation5 + $0x658] sm:$0xf0]  ;;  %v6911_v35 = vld [vmem:[#allocation8 + $0x678] sm:$0xf] }
 0x221   :  { %3946 = vmatpush.bf16.msrb.mxu2 %v6508_v61  ;;  %v6832_v61 = vor.u32 %v7712_v4, %v6829_v56  ;;  %v6899_v4 = vld [vmem:[#allocation8 + $0x660] sm:$0xf]  ;;  %v7732_v56 = vld [vmem:[#allocation8 + $0x668] sm:$0xf0] }
 0x222   :  { %3958 = vmatpush.bf16.msrb.mxu3 %v6668_v60  ;;  %3988 = vmatpush.bf16.msra.mxu1 %v6512_v10  ;;  %v2588_v0 = vpop.f32.mrf.mxu3  ;;  %v7668_v60 = vld [vmem:[#allocation5 + $0x44c] sm:$0xf]  ;;  %v6797_v10 = vld [vmem:[#allocation5 + $0x7d8] sm:$0xf0] }
 0x223   :  { %v2589_v49 = vadd.f32 %v2588_v0, %v2575_v24  ;;  %v6656_v47 = vor.u32 %v7668_v60, %v6653_v62  ;;  %v6887_v60 = vld [vmem:[#allocation8 + $0x648] sm:$0xf]  ;;  %v7729_v62 = vld [vmem:[#allocation8 + $0x650] sm:$0xf0] }
 0x224   :  { %v6888_v12 = vor.u32 %v7729_v62, %v6887_v60  ;;  %v7115_v60 = vld [vmem:[#allocation8 + $0x810] sm:$0xf]  ;;  %v7786_v62 = vld [vmem:[#allocation8 + $0x818] sm:$0xf0] }
 0x225   :  { %3947 = vmatpush.bf16.msrb.mxu2 %v6492_v31  ;;  %v6800_v31 = vor.u32 %v7704_v7, %v6797_v10  ;;  %v7007_v7 = vld [vmem:[#allocation8 + $0x738] sm:$0xf]  ;;  %v7759_v10 = vld [vmem:[#allocation8 + $0x740] sm:$0xf0] }
 0x226   :  { %3959 = vmatpush.bf16.msrb.mxu3 %v6652_v14  ;;  %3989 = vmatpush.bf16.msra.mxu1 %v6496_v55  ;;  %v7660_v14 = vld [vmem:[#allocation5 + $0x38c] sm:$0xf]  ;;  %v6784_v55 = vor.u32 %v7700_v40, %v6781_v39  ;;  %v7723_v40 = vld [vmem:[#allocation8 + $0x620] sm:$0xf0] }
 0x227   :  { %v6624_v22 = vor.u32 %v7660_v14, %v6621_v3  ;;  %v6863_v3 = vld [vmem:[#allocation8 + $0x618] sm:$0xf]  ;;  %v6995_v39 = vld [vmem:[#allocation8 + $0x720] sm:$0xf] }
 0x229   :  { %3948 = vmatpush.bf16.msrb.mxu2 %v6476_v9  ;;  %v6605_v9 = vld [vmem:[#allocation5 + $0x358] sm:$0xf0] }
 0x22a   :  { %3960 = vmatpush.bf16.msrb.mxu3 %v6636_v27  ;;  %3990 = vmatpush.bf16.msra.mxu1 %v6480_v13  ;;  %v7696_v27 = vld [vmem:[#allocation5 + $0x6ec] sm:$0xf]  ;;  %v6608_v24 = vor.u32 %v7656_v63, %v6605_v9  ;;  %v6935_v13 = vld [vmem:[#allocation8 + $0x6a8] sm:$0xf]  ;;  %v7753_v9 = vld [vmem:[#allocation8 + $0x710] sm:$0xf0] }
 0x22b   :  { %v6768_v18 = vor.u32 %v7696_v27, %v6765_v28 }
 0x22c   :  { %3949 = vmatmul.bf16.vlgmr.msrb.gmra.mxu2 %v8078_v57 }
 0x22d   :  { %3997 = vmatpush.bf16.msra.mxu2 %v6720_v17  ;;  %3991 = vmatmul.bf16.vlgmr.msra.gmra.mxu1 %v8078_v57  ;;  %v3182_v57 = vpop.f32.mrf.mxu1 }
 0x22e   :  { %3961 = vmatpush.bf16.msrb.mxu3 %v6620_v48  ;;  %v8276_v2 = vadd.f32 %v3182_v57, %v8262_v34  ;;  %v7741_v48 = vld [vmem:[#allocation8 + $0x6b0] sm:$0xf0]  ;;  %v7762_v57 = vld [vmem:[#allocation8 + $0x758] sm:$0xf0] }
 0x22f   :  { %v3140_v15 = vpop.f32.mrf.mxu2  ;;  %v6936_v41 = vor.u32 %v7741_v48, %v6935_v13  ;;  %v7020_v6 = vor.u32 %v7762_v57, %v7019_v1  ;;  %v6959_v13 = vld [vmem:[#allocation8 + $0x6d8] sm:$0xf]  ;;  %v7116_v1 = vor.u32 %v7786_v62, %v7115_v60  ;;  %v7813_v60 = vld [vmem:[#allocation8 + $0x8f0] sm:$0xf0] }
 0x230   :  { %v3141_v16 = vadd.f32 %v3140_v15, %v8260_v42  ;;  %v3224_v19 = vpop.f32.mrf.mxu0  ;;  %v6889_v57 = vld [vmem:[#allocation8 + $0x654] sm:$0xf0] }
 0x231   :  { %3998 = vmatpush.bf16.msra.mxu2 %v6704_v58  ;;  %v3225_v51 = vadd.f32 %v3224_v19, %v2587_v25  ;;  %v7688_v58 = vld [vmem:[#allocation5 + $0x62c] sm:$0xf]  ;;  %4677 = vmatpush.bf16.msrb.mxu0 %v6936_v41  ;;  %v7756_v19 = vld [vmem:[#allocation8 + $0x728] sm:$0xf0] }
 0x232   :  { %3962 = vmatpush.bf16.msrb.mxu3 %v6604_v36  ;;  %v6736_v23 = vor.u32 %v7688_v58, %v6733_v37  ;;  %v7735_v36 = vld [vmem:[#allocation8 + $0x680] sm:$0xf0]  ;;  %v6996_v63 = vor.u32 %v7756_v19, %v6995_v39  ;;  %v7734_v37 = vld [vmem:[#allocation8 + $0x67c] sm:$0xf]  ;;  %v7009_v39 = vld [vmem:[#allocation8 + $0x744] sm:$0xf0] }
 0x233   :  { %v6912_v54 = vor.u32 %v7735_v36, %v6911_v35  ;;  %v7747_v58 = vld [vmem:[#allocation8 + $0x6e0] sm:$0xf0] }
 0x235   :  { %3999 = vmatpush.bf16.msra.mxu2 %v6688_v50  ;;  %3963 = vmatmul.bf16.vlgmr.msrb.gmra.mxu3 %v8081_v5  ;;  %v3184_v34 = vpop.f32.mrf.mxu1  ;;  %v7031_v50 = vld [vmem:[#allocation8 + $0x768] sm:$0xf] }
 0x236   :  { %4011 = vmatpush.bf16.msra.mxu3 %v6848_v46  ;;  %v8280_v26 = vadd.f32 %v3184_v34, %v8269_v30  ;;  %v6752_v30 = vor.u32 %v7692_v32, %v6749_v33  ;;  %v7765_v46 = vld [vmem:[#allocation8 + $0x770] sm:$0xf0]  ;;  %v7720_v34 = vld [vmem:[#allocation8 + $0x608] sm:$0xf0]  ;;  %v6971_v33 = vld [vmem:[#allocation8 + $0x6f0] sm:$0xf] }
 0x237   :  { %v3142_v17 = vpop.f32.mrf.mxu2 }
 0x238   :  { %v3154_v42 = vpop.f32.mrf.mxu3  ;;  %v3143_v52 = vadd.f32 %v3142_v17, %v8267_v44  ;;  %v3226_v29 = vpop.f32.mrf.mxu0  ;;  %v6924_v44 = vor.u32 %v7738_v21, %v6923_v59  ;;  %v7740_v17 = vld [vmem:[#allocation8 + $0x6ac] sm:$0xf]  ;;  %v6913_v59 = vld [vmem:[#allocation8 + $0x684] sm:$0xf0] }
 0x239   :  { %4000 = vmatpush.bf16.msra.mxu2 %v6672_v38  ;;  %v8283_v25 = vadd.f32 %v3154_v42, %v3141_v16  ;;  %v3227_v8 = vadd.f32 %v3226_v29, %v2589_v49  ;;  %v7032_v49 = vor.u32 %v7765_v46, %v7031_v50  ;;  %v6864_v16 = vor.u32 %v7723_v40, %v6863_v3  ;;  %v6937_v42 = vld [vmem:[#allocation8 + $0x6b4] sm:$0xf0]  ;;  %v7737_v29 = vld [vmem:[#allocation8 + $0x694] sm:$0xf]  ;;  %v7127_v21 = vld [vmem:[#allocation8 + $0x828] sm:$0xf] }
 0x23a   :  { %4012 = vmatpush.bf16.msra.mxu3 %v6832_v61  ;;  %4678 = vmatpush.bf16.msrb.mxu0 %v6924_v44  ;;  %v6940_v32 = vor.u32 %v7740_v17, %v6937_v42  ;;  %v6960_v44 = vor.u32 %v7747_v58, %v6959_v13  ;;  %v6916_v35 = vor.u32 %v7734_v37, %v6913_v59  ;;  %v7744_v50 = vld [vmem:[#allocation8 + $0x6c8] sm:$0xf0]  ;;  %v7731_v46 = vld [vmem:[#allocation8 + $0x664] sm:$0xf]  ;;  %v6877_v3 = vld [vmem:[#allocation8 + $0x63c] sm:$0xf0] }
 0x23b   :  { %4691 = vmatpush.bf16.msrb.mxu1 %v7032_v49  ;;  %v6901_v49 = vld [vmem:[#allocation8 + $0x66c] sm:$0xf0]  ;;  %v7758_v40 = vld [vmem:[#allocation8 + $0x73c] sm:$0xf]  ;;  %v7079_v17 = vld [vmem:[#allocation8 + $0x7c8] sm:$0xf] }
 0x23c   :  { %v7012_v19 = vor.u32 %v7758_v40, %v7009_v39  ;;  %v7777_v42 = vld [vmem:[#allocation8 + $0x7d0] sm:$0xf0]  ;;  %v7752_v13 = vld [vmem:[#allocation8 + $0x70c] sm:$0xf]  ;;  %v7067_v58 = vld [vmem:[#allocation8 + $0x7b0] sm:$0xf] }
 0x23d   :  { %4001 = vmatpush.bf16.msra.mxu2 %v6656_v47  ;;  %v6875_v47 = vld [vmem:[#allocation8 + $0x630] sm:$0xf]  ;;  %v7774_v37 = vld [vmem:[#allocation8 + $0x7b8] sm:$0xf0]  ;;  %v7785_v40 = vld [vmem:[#allocation8 + $0x814] sm:$0xf] }
 0x23e   :  { %4013 = vmatpush.bf16.msra.mxu3 %v6816_v43  ;;  %4679 = vmatpush.bf16.msrb.mxu0 %v6912_v54  ;;  %v7726_v43 = vld [vmem:[#allocation8 + $0x638] sm:$0xf0]  ;;  %v7764_v54 = vld [vmem:[#allocation8 + $0x76c] sm:$0xf]  ;;  %v7068_v59 = vor.u32 %v7774_v37, %v7067_v58  ;;  %v7117_v39 = vld [vmem:[#allocation8 + $0x81c] sm:$0xf0] }
 0x23f   :  { %4692 = vmatpush.bf16.msrb.mxu1 %v7020_v6  ;;  %v7801_v58 = vld [vmem:[#allocation8 + $0x890] sm:$0xf0] }
 0x240   :  { %v3156_v0 = vpop.f32.mrf.mxu3 }
 0x241   :  { %4002 = vmatpush.bf16.msra.mxu2 %v6640_v11  ;;  %v8286_v45 = vadd.f32 %v3156_v0, %v3143_v52  ;;  %v7750_v52 = vld [vmem:[#allocation8 + $0x6f8] sm:$0xf0]  ;;  %v6947_v0 = vld [vmem:[#allocation8 + $0x6c0] sm:$0xf] }
 0x242   :  { %4014 = vmatpush.bf16.msra.mxu3 %v6800_v31  ;;  %v7008_v31 = vor.u32 %v7759_v10, %v7007_v7  ;;  %v7103_v10 = vld [vmem:[#allocation8 + $0x7f8] sm:$0xf] }
 0x244   :  { %4693 = vmatpush.bf16.msrb.mxu1 %v7008_v31 }
 0x245   :  { %4003 = vmatpush.bf16.msra.mxu2 %v6624_v22 }
 0x246   :  { %4015 = vmatpush.bf16.msra.mxu3 %v6784_v55 }
 0x248   :  { %4694 = vmatpush.bf16.msrb.mxu1 %v6996_v63  ;;  %v6865_v63 = vld [vmem:[#allocation8 + $0x624] sm:$0xf0] }
 0x249   :  { %4004 = vmatpush.bf16.msra.mxu2 %v6608_v24 }
 0x24a   :  { %4016 = vmatpush.bf16.msra.mxu3 %v6768_v18  ;;  %v3238_v38 = vpop.f32.mrf.mxu1 }
 0x24b   :  { %v8289_v61 = vadd.f32 %v3238_v38, %v3225_v51  ;;  %v6851_v51 = vld [vmem:[#allocation8 + $0x600] sm:$0xf] }
 0x24c   :  { %4005 = vmatmul.bf16.vlgmr.msra.gmra.mxu2 %v8081_v5  ;;  %v6900_v5 = vor.u32 %v7732_v56, %v6899_v4  ;;  %v6852_v24 = vor.u32 %v7720_v34, %v6851_v51  ;;  %v7033_v4 = vld [vmem:[#allocation8 + $0x774] sm:$0xf0]  ;;  %v6948_v56 = vor.u32 %v7744_v50, %v6947_v0  ;;  %v7091_v51 = vld [vmem:[#allocation8 + $0x7e0] sm:$0xf]  ;;  %v7780_v34 = vld [vmem:[#allocation8 + $0x7e8] sm:$0xf0] }
 0x24d   :  { %v7036_v38 = vor.u32 %v7764_v54, %v7033_v4  ;;  %v7055_v0 = vld [vmem:[#allocation8 + $0x798] sm:$0xf]  ;;  %v7771_v50 = vld [vmem:[#allocation8 + $0x7a0] sm:$0xf0]  ;;  %v7746_v54 = vld [vmem:[#allocation8 + $0x6dc] sm:$0xf] }
 0x24e   :  { %4017 = vmatpush.bf16.msra.mxu3 %v6752_v30  ;;  %4680 = vmatpush.bf16.msrb.mxu0 %v6900_v5  ;;  %v6925_v30 = vld [vmem:[#allocation8 + $0x69c] sm:$0xf0]  ;;  %v6904_v5 = vor.u32 %v7731_v46, %v6901_v49  ;;  %v7056_v49 = vor.u32 %v7771_v50, %v7055_v0  ;;  %v6961_v4 = vld [vmem:[#allocation8 + $0x6e4] sm:$0xf0]  ;;  %v6943_v50 = vld [vmem:[#allocation8 + $0x6b0] sm:$0xf] }
 0x24f   :  { %v3196_v53 = vpop.f32.mrf.mxu2 }
 0x250   :  { %v3197_v11 = vadd.f32 %v3196_v53, %v8276_v2  ;;  %v6983_v2 = vld [vmem:[#allocation8 + $0x708] sm:$0xf]  ;;  %v7021_v53 = vld [vmem:[#allocation8 + $0x75c] sm:$0xf0] }
 0x251   :  { %v6984_v18 = vor.u32 %v7753_v9, %v6983_v2  ;;  %v7755_v2 = vld [vmem:[#allocation8 + $0x724] sm:$0xf] }
 0x252   :  { %4018 = vmatpush.bf16.msra.mxu3 %v6736_v23  ;;  %4681 = vmatpush.bf16.msrb.mxu0 %v6888_v12  ;;  %v3240_v14 = vpop.f32.mrf.mxu1  ;;  %v7789_v23 = vld [vmem:[#allocation8 + $0x830] sm:$0xf0]  ;;  %v7728_v12 = vld [vmem:[#allocation8 + $0x64c] sm:$0xf] }
 0x253   :  { %v8292_v15 = vadd.f32 %v3240_v14, %v3227_v8  ;;  %4695 = vmatpush.bf16.msrb.mxu1 %v6984_v18  ;;  %v6972_v8 = vor.u32 %v7750_v52, %v6971_v33  ;;  %v7128_v36 = vor.u32 %v7789_v23, %v7127_v21  ;;  %v7080_v52 = vor.u32 %v7777_v42, %v7079_v17  ;;  %v7749_v21 = vld [vmem:[#allocation8 + $0x6f4] sm:$0xf]  ;;  %v6973_v23 = vld [vmem:[#allocation8 + $0x6fc] sm:$0xf0]  ;;  %v7804_v17 = vld [vmem:[#allocation8 + $0x8a8] sm:$0xf0] }
 0x255   :  { %4019 = vmatmul.bf16.vlgmr.msra.gmra.mxu3 %v8085_v20  ;;  %v6876_v20 = vor.u32 %v7726_v43, %v6875_v47  ;;  %4705 = vmatpush.bf16.msrb.mxu2 %v7128_v36  ;;  %v7761_v47 = vld [vmem:[#allocation8 + $0x754] sm:$0xf]  ;;  %v6892_v43 = vor.u32 %v7728_v12, %v6889_v57  ;;  %v7768_v12 = vld [vmem:[#allocation8 + $0x788] sm:$0xf0] }
 0x256   :  { %v7024_v7 = vor.u32 %v7761_v47, %v7021_v53  ;;  %v7788_v47 = vld [vmem:[#allocation8 + $0x82c] sm:$0xf] }
 0x257   :  { %4682 = vmatpush.bf16.msrb.mxu0 %v6876_v20  ;;  %v3198_v22 = vpop.f32.mrf.mxu2  ;;  %4696 = vmatpush.bf16.msrb.mxu1 %v6972_v8  ;;  %v7725_v20 = vld [vmem:[#allocation8 + $0x634] sm:$0xf]  ;;  %v6853_v8 = vld [vmem:[#allocation8 + $0x60c] sm:$0xf0] }
 0x258   :  { %v3210_v55 = vpop.f32.mrf.mxu3  ;;  %v3199_v27 = vadd.f32 %v3198_v22, %v8280_v26  ;;  %v6928_v26 = vor.u32 %v7737_v29, %v6925_v30  ;;  %v7092_v22 = vor.u32 %v7780_v34, %v7091_v51  ;;  %v7719_v29 = vld [vmem:[#allocation8 + $0x604] sm:$0xf]  ;;  %v7120_v51 = vor.u32 %v7785_v40, %v7117_v39  ;;  %v7199_v34 = vld [vmem:[#allocation8 + $0x8b8] sm:$0xf]  ;;  %v7057_v40 = vld [vmem:[#allocation8 + $0x7a4] sm:$0xf0] }
 0x259   :  { %v8295_v28 = vadd.f32 %v3210_v55, %v3197_v11  ;;  %4706 = vmatpush.bf16.msrb.mxu2 %v7116_v1  ;;  %v7783_v11 = vld [vmem:[#allocation8 + $0x800] sm:$0xf0]  ;;  %v7722_v55 = vld [vmem:[#allocation8 + $0x61c] sm:$0xf]  ;;  %v6856_v30 = vor.u32 %v7719_v29, %v6853_v8  ;;  %v7043_v1 = vld [vmem:[#allocation8 + $0x780] sm:$0xf] }
 0x25a   :  { %v7104_v14 = vor.u32 %v7783_v11, %v7103_v10  ;;  %v6868_v9 = vor.u32 %v7722_v55, %v6865_v63  ;;  %v7044_v57 = vor.u32 %v7768_v12, %v7043_v1  ;;  %v6949_v10 = vld [vmem:[#allocation8 + $0x6cc] sm:$0xf0]  ;;  %v7773_v1 = vld [vmem:[#allocation8 + $0x7b4] sm:$0xf]  ;;  %v7069_v12 = vld [vmem:[#allocation8 + $0x7bc] sm:$0xf0] }
 0x25b   :  { %4683 = vmatpush.bf16.msrb.mxu0 %v6864_v16  ;;  %4697 = vmatpush.bf16.msrb.mxu1 %v6960_v44  ;;  %v6880_v16 = vor.u32 %v7725_v20, %v6877_v3  ;;  %v6976_v44 = vor.u32 %v7749_v21, %v6973_v23  ;;  %v7211_v20 = vld [vmem:[#allocation8 + $0x8d0] sm:$0xf] }
 0x25d   :  { %4707 = vmatpush.bf16.msrb.mxu2 %v7104_v14 }
 0x25f   :  { %4684 = vmatpush.bf16.msrb.mxu0 %v6852_v24  ;;  %4698 = vmatpush.bf16.msrb.mxu1 %v6948_v56  ;;  %v8305_v56 = vld [vmem:[#allocation7 + $0x8] sm:$0xf] }
 0x260   :  { %v3212_v48 = vpop.f32.mrf.mxu3  ;;  %v3369_v53 = vperm.slane %v8305_v56, 0 }
 0x261   :  { %v8297_v41 = vadd.f32 %v3212_v48, %v3199_v27  ;;  %4708 = vmatpush.bf16.msrb.mxu2 %v7092_v22  ;;  %v6985_v48 = vld [vmem:[#allocation8 + $0x714] sm:$0xf0]  ;;  %v7807_v22 = vld [vmem:[#allocation8 + $0x8c0] sm:$0xf0] }
 0x262   :  { %v7200_v55 = vor.u32 %v7807_v22, %v7199_v34 }
 0x263   :  { %4733 = vmatpush.bf16.msra.mxu0 %v6940_v32  ;;  %4747 = vmatpush.bf16.msra.mxu1 %v7036_v38  ;;  %v7223_v38 = vld [vmem:[#allocation8 + $0x8e8] sm:$0xf] }
 0x264   :  { %v7224_v62 = vor.u32 %v7813_v60, %v7223_v38 }
 0x265   :  { %4709 = vmatpush.bf16.msrb.mxu2 %v7080_v52  ;;  %v7093_v52 = vld [vmem:[#allocation8 + $0x7ec] sm:$0xf0] }
 0x266   :  { %4719 = vmatpush.bf16.msrb.mxu3 %v7224_v62 }
 0x267   :  { %4734 = vmatpush.bf16.msra.mxu0 %v6928_v26  ;;  %4748 = vmatpush.bf16.msra.mxu1 %v7024_v7  ;;  %v6988_v26 = vor.u32 %v7752_v13, %v6985_v48  ;;  %v7743_v7 = vld [vmem:[#allocation8 + $0x6c4] sm:$0xf] }
 0x268   :  { %v6952_v11 = vor.u32 %v7743_v7, %v6949_v10  ;;  %v7151_v7 = vld [vmem:[#allocation8 + $0x858] sm:$0xf]  ;;  %v7795_v10 = vld [vmem:[#allocation8 + $0x860] sm:$0xf0] }
 0x269   :  { %4710 = vmatpush.bf16.msrb.mxu2 %v7068_v59 }
 0x26a   :  { %v3880_v36 = vpop.f32.mrf.mxu1 }
 0x26b   :  { %4735 = vmatpush.bf16.msra.mxu0 %v6916_v35  ;;  %4749 = vmatpush.bf16.msra.mxu1 %v7012_v19 }
 0x26d   :  { %4711 = vmatpush.bf16.msrb.mxu2 %v7056_v49  ;;  %v7742_v49 = vld [vmem:[#allocation8 + $0x6b8] sm:$0xf0] }
 0x26e   :  { %v6944_v62 = vor.u32 %v7742_v49, %v6943_v50  ;;  %v7806_v50 = vld [vmem:[#allocation8 + $0x8bc] sm:$0xf]  ;;  %v7201_v49 = vld [vmem:[#allocation8 + $0x8c4] sm:$0xf0] }
 0x26f   :  { %4736 = vmatpush.bf16.msra.mxu0 %v6904_v5  ;;  %v3252_v6 = vpop.f32.mrf.mxu2  ;;  %v6964_v5 = vor.u32 %v7746_v54, %v6961_v4  ;;  %v7163_v4 = vld [vmem:[#allocation8 + $0x870] sm:$0xf] }
 0x270   :  { %v3253_v31 = vadd.f32 %v3252_v6, %v8289_v61  ;;  %v6997_v61 = vld [vmem:[#allocation8 + $0x72c] sm:$0xf0] }
 0x271   :  { %v7000_v18 = vor.u32 %v7755_v2, %v6997_v61  ;;  %4712 = vmatpush.bf16.msrb.mxu2 %v7044_v57  ;;  %v7782_v2 = vld [vmem:[#allocation8 + $0x7fc] sm:$0xf] }
 0x272   :  { %v3882_v19 = vpop.f32.mrf.mxu1 }
 0x273   :  { %4737 = vmatpush.bf16.msra.mxu0 %v6892_v43  ;;  %4750 = vmatpush.bf16.msra.mxu1 %v7000_v18  ;;  %v7129_v43 = vld [vmem:[#allocation8 + $0x834] sm:$0xf0]  ;;  %v7187_v18 = vld [vmem:[#allocation8 + $0x8a0] sm:$0xf] }
 0x274   :  { %v7132_v6 = vor.u32 %v7788_v47, %v7129_v43  ;;  %v7188_v42 = vor.u32 %v7804_v17, %v7187_v18  ;;  %v6931_v43 = vld [vmem:[#allocation8 + $0x698] sm:$0xf]  ;;  %v7733_v17 = vld [vmem:[#allocation8 + $0x670] sm:$0xf0] }
 0x276   :  { %4761 = vmatpush.bf16.msra.mxu2 %v7132_v6  ;;  %v7072_v6 = vor.u32 %v7773_v1, %v7069_v12  ;;  %v7015_v1 = vld [vmem:[#allocation8 + $0x740] sm:$0xf]  ;;  %v7760_v12 = vld [vmem:[#allocation8 + $0x748] sm:$0xf0] }
 0x277   :  { %4738 = vmatpush.bf16.msra.mxu0 %v6880_v16  ;;  %v3254_v27 = vpop.f32.mrf.mxu2  ;;  %4751 = vmatpush.bf16.msra.mxu1 %v6988_v26  ;;  %v7175_v26 = vld [vmem:[#allocation8 + $0x888] sm:$0xf] }
 0x278   :  { %v3266_v24 = vpop.f32.mrf.mxu3  ;;  %v3255_v32 = vadd.f32 %v3254_v27, %v8292_v15  ;;  %v3866_v15 = vpop.f32.mrf.mxu0  ;;  %v7176_v59 = vor.u32 %v7801_v58, %v7175_v26  ;;  %v7809_v58 = vld [vmem:[#allocation8 + $0x8d4] sm:$0xf] }
 0x279   :  { %v8301_v33 = vadd.f32 %v3266_v24, %v3253_v31  ;;  %v7810_v31 = vld [vmem:[#allocation8 + $0x8d8] sm:$0xf0]  ;;  %v3867_v16 = vadd.f32 %v3866_v15, %v3369_v53  ;;  %v7776_v15 = vld [vmem:[#allocation8 + $0x7cc] sm:$0xf] }
 0x27a   :  { %v7212_v14 = vor.u32 %v7810_v31, %v7211_v20  ;;  %4762 = vmatpush.bf16.msra.mxu2 %v7120_v51  ;;  %v7736_v51 = vld [vmem:[#allocation8 + $0x688] sm:$0xf0] }
 0x27b   :  { %4739 = vmatpush.bf16.msra.mxu0 %v6868_v9  ;;  %4752 = vmatpush.bf16.msra.mxu1 %v6976_v44  ;;  %v7105_v9 = vld [vmem:[#allocation8 + $0x804] sm:$0xf0]  ;;  %v3881_v61 = vadd.f32 %v3880_v36, %v3867_v16  ;;  %v7081_v44 = vld [vmem:[#allocation8 + $0x7d4] sm:$0xf0] }
 0x27c   :  { %4720 = vmatpush.bf16.msrb.mxu3 %v7212_v14  ;;  %v7108_v24 = vor.u32 %v7782_v2, %v7105_v9  ;;  %v7084_v54 = vor.u32 %v7776_v15, %v7081_v44  ;;  %v6907_v9 = vld [vmem:[#allocation8 + $0x668] sm:$0xf] }
 0x27e   :  { %4763 = vmatpush.bf16.msra.mxu2 %v7108_v24  ;;  %v7225_v24 = vld [vmem:[#allocation8 + $0x8f4] sm:$0xf0] }
 0x27f   :  { %4740 = vmatpush.bf16.msra.mxu0 %v6856_v30  ;;  %4753 = vmatpush.bf16.msra.mxu1 %v6964_v5  ;;  %v3370_v30 = vperm.slane %v8305_v56, 1  ;;  %v7798_v5 = vld [vmem:[#allocation8 + $0x878] sm:$0xf0] }
 0x280   :  { %v3268_v35 = vpop.f32.mrf.mxu3  ;;  %v3868_v3 = vpop.f32.mrf.mxu0  ;;  %4721 = vmatpush.bf16.msrb.mxu3 %v7200_v55  ;;  %v7164_v60 = vor.u32 %v7798_v5, %v7163_v4  ;;  %v7139_v55 = vld [vmem:[#allocation8 + $0x840] sm:$0xf]  ;;  %v6883_v5 = vld [vmem:[#allocation8 + $0x638] sm:$0xf] }
 0x281   :  { %v8303_v46 = vadd.f32 %v3268_v35, %v3255_v32  ;;  %v3869_v27 = vadd.f32 %v3868_v3, %v3369_v53  ;;  %v7779_v32 = vld [vmem:[#allocation8 + $0x7e4] sm:$0xf]  ;;  %v7770_v3 = vld [vmem:[#allocation8 + $0x79c] sm:$0xf] }
 0x282   :  { %v7096_v13 = vor.u32 %v7779_v32, %v7093_v52  ;;  %v7739_v53 = vld [vmem:[#allocation8 + $0x6a0] sm:$0xf0]  ;;  %v7060_v34 = vor.u32 %v7770_v3, %v7057_v40  ;;  %v7045_v52 = vld [vmem:[#allocation8 + $0x78c] sm:$0xf0] }
 0x283   :  { %4754 = vmatpush.bf16.msra.mxu1 %v6952_v11  ;;  %v3883_v8 = vadd.f32 %v3882_v19, %v3869_v27  ;;  %v7152_v11 = vor.u32 %v7795_v10, %v7151_v7  ;;  %v6932_v14 = vor.u32 %v7739_v53, %v6931_v43  ;;  %v6919_v19 = vld [vmem:[#allocation8 + $0x680] sm:$0xf]  ;;  %v7812_v27 = vld [vmem:[#allocation8 + $0x8ec] sm:$0xf]  ;;  %v7767_v32 = vld [vmem:[#allocation8 + $0x784] sm:$0xf]  ;;  %v7016_v7 = vor.u32 %v7760_v12, %v7015_v1 }
 0x284   :  { %4722 = vmatpush.bf16.msrb.mxu3 %v7188_v42  ;;  %4764 = vmatpush.bf16.msra.mxu2 %v7096_v13  ;;  %v6920_v18 = vor.u32 %v7736_v51, %v6919_v19  ;;  %v7228_v42 = vor.u32 %v7812_v27, %v7225_v24  ;;  %v7766_v13 = vld [vmem:[#allocation8 + $0x778] sm:$0xf0]  ;;  %v7189_v43 = vld [vmem:[#allocation8 + $0x8ac] sm:$0xf0]  ;;  %v3371_v53 = vperm.slane %v8305_v56, 2 }
 0x285   :  { %v6871_v10 = vld [vmem:[#allocation8 + $0x620] sm:$0xf]  ;;  %v7797_v24 = vld [vmem:[#allocation8 + $0x874] sm:$0xf] }
 0x288   :  { %v3922_v48 = vpop.f32.mrf.mxu0  ;;  %4723 = vmatpush.bf16.msrb.mxu3 %v7176_v59  ;;  %4765 = vmatpush.bf16.msra.mxu2 %v7084_v54  ;;  %v6908_v59 = vor.u32 %v7733_v17, %v6907_v9  ;;  %v7754_v9 = vld [vmem:[#allocation8 + $0x718] sm:$0xf0] }
 0x28a   :  { %v3936_v37 = vpop.f32.mrf.mxu1 }
 0x28c   :  { %4724 = vmatpush.bf16.msrb.mxu3 %v7164_v60  ;;  %4766 = vmatpush.bf16.msra.mxu2 %v7072_v6 }
 0x28f   :  { %v3894_v63 = vpop.f32.mrf.mxu2 }
 0x290   :  { %v3895_v29 = vadd.f32 %v3894_v63, %v3881_v61  ;;  %v3924_v31 = vpop.f32.mrf.mxu0  ;;  %4725 = vmatpush.bf16.msrb.mxu3 %v7152_v11  ;;  %v7792_v63 = vld [vmem:[#allocation8 + $0x848] sm:$0xf0]  ;;  %4767 = vmatpush.bf16.msra.mxu2 %v7060_v34  ;;  %v6859_v34 = vld [vmem:[#allocation8 + $0x608] sm:$0xf] }
 0x291   :  { %v7140_v61 = vor.u32 %v7792_v63, %v7139_v55  ;;  %v7724_v11 = vld [vmem:[#allocation8 + $0x628] sm:$0xf0] }
 0x292   :  { %v4025_v35 = vmax.f32 %v3895_v29, 0.0  ;;  %v3938_v22 = vpop.f32.mrf.mxu1  ;;  %v6872_v40 = vor.u32 %v7724_v11, %v6871_v10 }
 0x294   :  { %4726 = vmatpush.bf16.msrb.mxu3 %v7140_v61 }
 0x297   :  { %v3896_v21 = vpop.f32.mrf.mxu2 }
 0x298   :  { %v3908_v23 = vpop.f32.mrf.mxu3  ;;  %v3897_v36 = vadd.f32 %v3896_v21, %v3883_v8  ;;  %4775 = vmatpush.bf16.msra.mxu3 %v7228_v42  ;;  %v3978_v3 = vpop.f32.mrf.mxu0 }
 0x299   :  { %v3909_v0 = vadd.f32 %v3908_v23, %v3370_v30  ;;  %v6895_v23 = vld [vmem:[#allocation8 + $0x650] sm:$0xf] }
 0x29a   :  { %v4029_v38 = vmax.f32 %v3897_v36, 0.0  ;;  %v7027_v36 = vld [vmem:[#allocation8 + $0x758] sm:$0xf] }
 0x29b   :  { %v3923_v47 = vadd.f32 %v3922_v48, %v3909_v0  ;;  %v7048_v48 = vor.u32 %v7767_v32, %v7045_v52  ;;  %v7763_v0 = vld [vmem:[#allocation8 + $0x760] sm:$0xf0]  ;;  %v6979_v52 = vld [vmem:[#allocation8 + $0x6f8] sm:$0xf] }
 0x29c   :  { %v8309_v57 = vpack.c.bf16 %v4029_v38, %v4025_v35  ;;  %v7730_v35 = vld [vmem:[#allocation8 + $0x658] sm:$0xf0]  ;;  %v7028_v4 = vor.u32 %v7763_v0, %v7027_v36  ;;  %v7204_v38 = vor.u32 %v7806_v50, %v7201_v49  ;;  %v7141_v36 = vld [vmem:[#allocation8 + $0x84c] sm:$0xf0] }
 0x29d   :  { %v3937_v39 = vadd.f32 %v3936_v37, %v3923_v47  ;;  %4768 = vmatpush.bf16.msra.mxu2 %v7048_v48  ;;  %v7213_v37 = vld [vmem:[#allocation8 + $0x8dc] sm:$0xf0]  ;;  %v6896_v54 = vor.u32 %v7730_v35, %v6895_v23  ;;  %v7803_v47 = vld [vmem:[#allocation8 + $0x8a4] sm:$0xf]  ;;  %v7748_v23 = vld [vmem:[#allocation8 + $0x6e8] sm:$0xf0] }
 0x29e   :  { %4685 = vmatmul.bf16.vlgmr.msrb.gmra.mxu0 %v8309_v57  ;;  %v7216_v15 = vor.u32 %v7809_v58, %v7213_v37  ;;  %v7791_v35 = vld [vmem:[#allocation8 + $0x844] sm:$0xf] }
 0x29f   :  { %4789 = vmatpush.bf16.msrb.mxu0 %v6944_v62  ;;  %v4026_v29 = vmax.f32 %v3937_v39, 0.0  ;;  %v7727_v62 = vld [vmem:[#allocation8 + $0x640] sm:$0xf0]  ;;  %v7800_v39 = vld [vmem:[#allocation8 + $0x88c] sm:$0xf] }
 0x2a0   :  { %v3910_v20 = vpop.f32.mrf.mxu3  ;;  %4776 = vmatpush.bf16.msra.mxu3 %v7216_v15  ;;  %v6884_v6 = vor.u32 %v7727_v62, %v6883_v5  ;;  %v7144_v5 = vor.u32 %v7791_v35, %v7141_v36  ;;  %v7808_v35 = vld [vmem:[#allocation8 + $0x8c8] sm:$0xf0] }
 0x2a1   :  { %v3911_v16 = vadd.f32 %v3910_v20, %v3370_v30  ;;  %v7039_v30 = vld [vmem:[#allocation8 + $0x770] sm:$0xf]  ;;  %v7192_v20 = vor.u32 %v7803_v47, %v7189_v43  ;;  %v7123_v43 = vld [vmem:[#allocation8 + $0x818] sm:$0xf] }
 0x2a2   :  { %v7040_v21 = vor.u32 %v7766_v13, %v7039_v30  ;;  %v7794_v30 = vld [vmem:[#allocation8 + $0x85c] sm:$0xf]  ;;  %v7153_v13 = vld [vmem:[#allocation8 + $0x864] sm:$0xf0] }
 0x2a3   :  { %v3925_v2 = vadd.f32 %v3924_v31, %v3911_v16  ;;  %4790 = vmatpush.bf16.msrb.mxu0 %v6932_v14  ;;  %v7003_v31 = vld [vmem:[#allocation8 + $0x728] sm:$0xf]  ;;  %v7757_v14 = vld [vmem:[#allocation8 + $0x730] sm:$0xf0]  ;;  %v7177_v16 = vld [vmem:[#allocation8 + $0x894] sm:$0xf0]  ;;  %v7156_v58 = vor.u32 %v7794_v30, %v7153_v13 }
 0x2a4   :  { %4777 = vmatpush.bf16.msra.mxu3 %v7204_v38  ;;  %v7004_v51 = vor.u32 %v7757_v14, %v7003_v31  ;;  %v7180_v55 = vor.u32 %v7800_v39, %v7177_v16  ;;  %v6955_v38 = vld [vmem:[#allocation8 + $0x6c8] sm:$0xf]  ;;  %v7781_v14 = vld [vmem:[#allocation8 + $0x7f0] sm:$0xf0]  ;;  %v7087_v39 = vld [vmem:[#allocation8 + $0x7d0] sm:$0xf] }
 0x2a5   :  { %v3939_v8 = vadd.f32 %v3938_v22, %v3925_v2  ;;  %v7721_v22 = vld [vmem:[#allocation8 + $0x610] sm:$0xf0]  ;;  %v6991_v2 = vld [vmem:[#allocation8 + $0x710] sm:$0xf]  ;;  %v7099_v31 = vld [vmem:[#allocation8 + $0x7e8] sm:$0xf] }
 0x2a6   :  { %v6860_v27 = vor.u32 %v7721_v22, %v6859_v34  ;;  %v6992_v42 = vor.u32 %v7754_v9, %v6991_v2  ;;  %v7778_v16 = vld [vmem:[#allocation8 + $0x7d8] sm:$0xf0]  ;;  %v7769_v30 = vld [vmem:[#allocation8 + $0x790] sm:$0xf0] }
 0x2a7   :  { %v4030_v26 = vmax.f32 %v3939_v8, 0.0  ;;  %4791 = vmatpush.bf16.msrb.mxu0 %v6920_v18  ;;  %v7165_v18 = vld [vmem:[#allocation8 + $0x87c] sm:$0xf0]  ;;  %v7088_v34 = vor.u32 %v7778_v16, %v7087_v39  ;;  %v4865_v39 = vld [vmem:[#allocation11] sm:$0xff] }
 0x2a8   :  { %4778 = vmatpush.bf16.msra.mxu3 %v7192_v20  ;;  %v7168_v32 = vor.u32 %v7797_v24, %v7165_v18  ;;  %v7772_v24 = vld [vmem:[#allocation8 + $0x7a8] sm:$0xf0] }
 0x2a9   :  { %v8312_v44 = vpack.c.bf16 %v4030_v26, %v4026_v29  ;;  %v7751_v29 = vld [vmem:[#allocation8 + $0x700] sm:$0xf0] }
 0x2aa   :  { %v6980_v26 = vor.u32 %v7751_v29, %v6979_v52  ;;  %v3992_v10 = vpop.f32.mrf.mxu1  ;;  %v7231_v52 = vld [vmem:[#allocation8 + $0x8f0] sm:$0xf]  ;;  %v7814_v29 = vld [vmem:[#allocation8 + $0x8f8] sm:$0xf0] }
 0x2ab   :  { %4699 = vmatmul.bf16.vlgmr.msrb.gmra.mxu1 %v8312_v44  ;;  %4792 = vmatpush.bf16.msrb.mxu0 %v6908_v59  ;;  %v3980_v59 = vpop.f32.mrf.mxu0 }
 0x2ac   :  { %4803 = vmatpush.bf16.msrb.mxu1 %v7040_v21  ;;  %4779 = vmatpush.bf16.msra.mxu3 %v7180_v55  ;;  %v6967_v21 = vld [vmem:[#allocation8 + $0x6e0] sm:$0xf]  ;;  %v7075_v55 = vld [vmem:[#allocation8 + $0x7b8] sm:$0xf] }
 0x2ad   :  { %v6968_v49 = vor.u32 %v7748_v23, %v6967_v21  ;;  %v7811_v21 = vld [vmem:[#allocation8 + $0x8e0] sm:$0xf0] }
 0x2ae   :  { %4741 = vmatmul.bf16.vlgmr.msra.gmra.mxu0 %v8309_v57 }
 0x2af   :  { %v3950_v60 = vpop.f32.mrf.mxu2  ;;  %4793 = vmatpush.bf16.msrb.mxu0 %v6896_v54  ;;  %v7135_v54 = vld [vmem:[#allocation8 + $0x830] sm:$0xf] }
 0x2b0   :  { %4804 = vmatpush.bf16.msrb.mxu1 %v7028_v4  ;;  %v3951_v19 = vadd.f32 %v3950_v60, %v3371_v53  ;;  %4780 = vmatpush.bf16.msra.mxu3 %v7168_v32  ;;  %v7790_v4 = vld [vmem:[#allocation8 + $0x838] sm:$0xf0]  ;;  %v7745_v60 = vld [vmem:[#allocation8 + $0x6d0] sm:$0xf0] }
 0x2b1   :  { %v7136_v1 = vor.u32 %v7790_v4, %v7135_v54  ;;  %v6956_v47 = vor.u32 %v7745_v60, %v6955_v38  ;;  %v7183_v54 = vld [vmem:[#allocation8 + $0x890] sm:$0xf]  ;;  %v7802_v4 = vld [vmem:[#allocation8 + $0x898] sm:$0xf0]  ;;  %v7171_v38 = vld [vmem:[#allocation8 + $0x878] sm:$0xf] }
 0x2b2   :  { %v3994_v22 = vpop.f32.mrf.mxu1  ;;  %v7799_v60 = vld [vmem:[#allocation8 + $0x880] sm:$0xf0] }
 0x2b3   :  { %4794 = vmatpush.bf16.msrb.mxu0 %v6884_v6  ;;  %v7111_v6 = vld [vmem:[#allocation8 + $0x800] sm:$0xf] }
 0x2b4   :  { %4805 = vmatpush.bf16.msrb.mxu1 %v7016_v7  ;;  %4781 = vmatpush.bf16.msra.mxu3 %v7156_v58  ;;  %v7784_v7 = vld [vmem:[#allocation8 + $0x808] sm:$0xf0] }
 0x2b5   :  { %v7112_v11 = vor.u32 %v7784_v7, %v7111_v6 }
 0x2b7   :  { %v3952_v61 = vpop.f32.mrf.mxu2  ;;  %4795 = vmatpush.bf16.msrb.mxu0 %v6872_v40  ;;  %v7100_v40 = vor.u32 %v7781_v14, %v7099_v31 }
 0x2b8   :  { %v3964_v63 = vpop.f32.mrf.mxu3  ;;  %4806 = vmatpush.bf16.msrb.mxu1 %v7004_v51  ;;  %v3953_v8 = vadd.f32 %v3952_v61, %v3371_v53  ;;  %4782 = vmatpush.bf16.msra.mxu3 %v7144_v5  ;;  %v7787_v53 = vld [vmem:[#allocation8 + $0x820] sm:$0xf0]  ;;  %v7184_v5 = vor.u32 %v7802_v4, %v7183_v54 }
 0x2b9   :  { %v3965_v17 = vadd.f32 %v3964_v63, %v3951_v19  ;;  %v7775_v63 = vld [vmem:[#allocation8 + $0x7c0] sm:$0xf0] }
 0x2ba   :  { %v7076_v61 = vor.u32 %v7775_v63, %v7075_v55 }
 0x2bb   :  { %4755 = vmatmul.bf16.vlgmr.msra.gmra.mxu1 %v8312_v44  ;;  %v3979_v48 = vadd.f32 %v3978_v3, %v3965_v17  ;;  %4796 = vmatpush.bf16.msrb.mxu0 %v6860_v27  ;;  %v3372_v3 = vperm.slane %v8305_v56, 3  ;;  %v7063_v27 = vld [vmem:[#allocation8 + $0x7a0] sm:$0xf] }
 0x2bc   :  { %4807 = vmatpush.bf16.msrb.mxu1 %v6992_v42  ;;  %v7064_v32 = vor.u32 %v7772_v24, %v7063_v27  ;;  %v4868_v24 = vld [vmem:[#allocation11 + $0x18] sm:$0xff] }
 0x2bd   :  { %v4027_v0 = vmax.f32 %v3979_v48, 0.0  ;;  %v3993_v19 = vadd.f32 %v3992_v10, %v3372_v3  ;;  %v3995_v9 = vadd.f32 %v3994_v22, %v3372_v3  ;;  %v8321_v3 = vld [vmem:[#allocation10] sm:$0x7] }
 0x2be   :  { %4797 = vmatmul.bf16.vlgmr.msrb.gmra.mxu0 %v8309_v57  ;;  %v7124_v57 = vor.u32 %v7787_v53, %v7123_v43  ;;  %v7793_v53 = vld [vmem:[#allocation8 + $0x850] sm:$0xf0] }
 0x2c0   :  { %v3966_v37 = vpop.f32.mrf.mxu3  ;;  %4808 = vmatpush.bf16.msrb.mxu1 %v6980_v26  ;;  %v7232_v26 = vor.u32 %v7814_v29, %v7231_v52 }
 0x2c1   :  { %v3967_v15 = vadd.f32 %v3966_v37, %v3953_v8  ;;  %v7051_v8 = vld [vmem:[#allocation8 + $0x788] sm:$0xf] }
 0x2c2   :  { %v7052_v37 = vor.u32 %v7769_v30, %v7051_v8 }
 0x2c3   :  { %v3981_v50 = vadd.f32 %v3980_v59, %v3967_v15  ;;  %v7219_v59 = vld [vmem:[#allocation8 + $0x8d8] sm:$0xf]  ;;  %v7207_v15 = vld [vmem:[#allocation8 + $0x8c0] sm:$0xf] }
 0x2c4   :  { %4809 = vmatpush.bf16.msrb.mxu1 %v6968_v49  ;;  %v7220_v23 = vor.u32 %v7811_v21, %v7219_v59  ;;  %v7208_v36 = vor.u32 %v7808_v35, %v7207_v15  ;;  %v4854_v21 = vperm.slane %v8321_v3, 1 }
 0x2c5   :  { %v4031_v62 = vmax.f32 %v3981_v50, 0.0  ;;  %v7805_v50 = vld [vmem:[#allocation8 + $0x8b0] sm:$0xf0] }
 0x2c7   :  { %v4035_v12 = vpack.c.bf16 %v4031_v62, %v4027_v0  ;;  %v7195_v0 = vld [vmem:[#allocation8 + $0x8a8] sm:$0xf]  ;;  %v7172_v62 = vor.u32 %v7799_v60, %v7171_v38 }
 0x2c8   :  { %4810 = vmatpush.bf16.msrb.mxu1 %v6956_v47  ;;  %v7196_v49 = vor.u32 %v7805_v50, %v7195_v0  ;;  %v7796_v47 = vld [vmem:[#allocation8 + $0x868] sm:$0xf0]  ;;  %v4869_v50 = vld [vmem:[#allocation11 + $0x20] sm:$0xff] }
 0x2c9   :  { %4713 = vmatmul.bf16.vlgmr.msrb.gmra.mxu2 %v4035_v12 }
 0x2ca   :  { %4817 = vmatpush.bf16.msrb.mxu2 %v7136_v1  ;;  %v7159_v1 = vld [vmem:[#allocation8 + $0x860] sm:$0xf] }
 0x2cb   :  { %4811 = vmatmul.bf16.vlgmr.msrb.gmra.mxu1 %v8312_v44  ;;  %v7160_v43 = vor.u32 %v7796_v47, %v7159_v1 }
 0x2ce   :  { %4818 = vmatpush.bf16.msrb.mxu2 %v7124_v57 }
 0x2cf   :  { %v4006_v20 = vpop.f32.mrf.mxu2 }
 0x2d0   :  { %v4007_v2 = vadd.f32 %v4006_v20, %v3993_v19 }
 0x2d2   :  { %4819 = vmatpush.bf16.msrb.mxu2 %v7112_v11 }
 0x2d6   :  { %4820 = vmatpush.bf16.msrb.mxu2 %v7100_v40 }
 0x2d7   :  { %v4008_v44 = vpop.f32.mrf.mxu2 }
 0x2d8   :  { %v4020_v51 = vpop.f32.mrf.mxu3  ;;  %v4009_v56 = vadd.f32 %v4008_v44, %v3995_v9 }
 0x2d9   :  { %4769 = vmatmul.bf16.vlgmr.msra.gmra.mxu2 %v4035_v12  ;;  %v4021_v18 = vadd.f32 %v4020_v51, %v4007_v2  ;;  %v4853_v51 = vperm.slane %v8321_v3, 0 }
 0x2da   :  { %4821 = vmatpush.bf16.msrb.mxu2 %v7088_v34  ;;  %v7233_v34 = vxor.u32 2147483648, %v4865_v39 }
 0x2db   :  { %v4028_v13 = vmax.f32 %v4021_v18, 0.0 }
 0x2dc   :  { %vm4873_vm0 = vcmp.ge.s32.totalorder %v7233_v34, 3006477107 }
 0x2de   :  { %4822 = vmatpush.bf16.msrb.mxu2 %v7076_v61 }
 0x2e0   :  { %v4022_v17 = vpop.f32.mrf.mxu3 }
 0x2e1   :  { %v4023_v42 = vadd.f32 %v4022_v17, %v4009_v56 }
 0x2e2   :  { %4823 = vmatpush.bf16.msrb.mxu2 %v7064_v32 }
 0x2e3   :  { %v4032_v48 = vmax.f32 %v4023_v42, 0.0  ;;  %v7236_v42 = vxor.u32 2147483648, %v4868_v24 }
 0x2e5   :  { %v4036_v58 = vpack.c.bf16 %v4032_v48, %v4028_v13  ;;  %vm4882_vm1 = vcmp.ge.s32.totalorder %v7236_v42, 3006477107  ;;  %v4866_v48 = vld [vmem:[#allocation11 + $0x8] sm:$0xff] }
 0x2e6   :  { %4824 = vmatpush.bf16.msrb.mxu2 %v7052_v37 }
 0x2e7   :  { %4727 = vmatmul.bf16.vlgmr.msrb.gmra.mxu3 %v4036_v58 }
 0x2e8   :  { %4831 = vmatpush.bf16.msrb.mxu3 %v7232_v26 }
 0x2e9   :  { %4825 = vmatmul.bf16.vlgmr.msrb.gmra.mxu2 %v4035_v12  ;;  %v7147_v12 = vld [vmem:[#allocation8 + $0x848] sm:$0xf] }
 0x2ea   :  { %v7148_v57 = vor.u32 %v7793_v53, %v7147_v12  ;;  %v4867_v53 = vld [vmem:[#allocation11 + $0x10] sm:$0xff] }
 0x2ec   :  { %4832 = vmatpush.bf16.msrb.mxu3 %v7220_v23  ;;  %v7234_v23 = vxor.u32 2147483648, %v4866_v48 }
 0x2ee   :  { %vm4876_vm2 = vcmp.ge.s32.totalorder %v7234_v23, 3006477107 }
 0x2f0   :  { %4833 = vmatpush.bf16.msrb.mxu3 %v7208_v36 }
 0x2f4   :  { %4834 = vmatpush.bf16.msrb.mxu3 %v7196_v49 }
 0x2f7   :  { %4783 = vmatmul.bf16.vlgmr.msra.gmra.mxu3 %v4036_v58 }
 0x2f8   :  { %4835 = vmatpush.bf16.msrb.mxu3 %v7184_v5 }
 0x2fc   :  { %4836 = vmatpush.bf16.msrb.mxu3 %v7172_v62  ;;  %v7237_v62 = vxor.u32 2147483648, %v4869_v50 }
 0x2fe   :  { %vm4885_vm3 = vcmp.ge.s32.totalorder %v7237_v62, 3006477107 }
 0x300   :  { %4837 = vmatpush.bf16.msrb.mxu3 %v7160_v43 }
 0x304   :  { %4838 = vmatpush.bf16.msrb.mxu3 %v7148_v57 }
 0x307   :  { %4839 = vmatmul.bf16.vlgmr.msrb.gmra.mxu3 %v4036_v58 }
 0x31b   :  { %v4686_v7 = vpop.f32.mrf.mxu0 }
 0x323   :  { %v4688_v20 = vpop.f32.mrf.mxu0 }
 0x328   :  { %v4700_v6 = vpop.f32.mrf.mxu1 }
 0x329   :  { %v4701_v14 = vadd.f32 %v4700_v6, %v4686_v7 }
 0x32b   :  { %v4742_v63 = vpop.f32.mrf.mxu0 }
 0x330   :  { %v4702_v11 = vpop.f32.mrf.mxu1 }
 0x331   :  { %v4703_v2 = vadd.f32 %v4702_v11, %v4688_v20  ;;  %v7235_v20 = vxor.u32 2147483648, %v4867_v53 }
 0x333   :  { %vm4879_vm4 = vcmp.ge.s32.totalorder %v7235_v20, 3006477107 }
 0x338   :  { %v4756_v55 = vpop.f32.mrf.mxu1 }
 0x339   :  { %v4757_v52 = vadd.f32 %v4756_v55, %v4742_v63 }
 0x340   :  { %v4758_v8 = vpop.f32.mrf.mxu1 }
 0x348   :  { %v4812_v49 = vpop.f32.mrf.mxu1 }
 0x34c   :  { %v4714_v10 = vpop.f32.mrf.mxu2 }
 0x34d   :  { %v4715_v40 = vadd.f32 %v4714_v10, %v4701_v14  ;;  %v4855_v10 = vperm.slane %v8321_v3, 2 }
 0x350   :  { %v4814_v11 = vpop.f32.mrf.mxu1 }
 0x354   :  { %v4716_v31 = vpop.f32.mrf.mxu2 }
 0x355   :  { %v4717_v61 = vadd.f32 %v4716_v31, %v4703_v2 }
 0x35c   :  { %v4770_v9 = vpop.f32.mrf.mxu2 }
 0x35d   :  { %v4771_v30 = vadd.f32 %v4770_v9, %v4757_v52 }
 0x364   :  { %v4772_v26 = vpop.f32.mrf.mxu2 }
 0x36a   :  { %v4728_v16 = vpop.f32.mrf.mxu3 }
 0x36b   :  { %v4729_v19 = vadd.f32 %v4728_v16, %v4715_v40 }
 0x36c   :  { %v4826_v60 = vpop.f32.mrf.mxu2 }
 0x36d   :  { %v4845_v22 = vadd.f32 %v4729_v19, %v8283_v25  ;;  %v4744_v25 = vpop.f32.mrf.mxu0 }
 0x36e   :  { %v4759_v35 = vadd.f32 %v4758_v8, %v4744_v25 }
 0x36f   :  { %v4859_v44 = vadd.f32 %v4853_v51, %v4845_v22 }
 0x370   :  { %v4773_v36 = vadd.f32 %v4772_v26, %v4759_v35 }
 0x371   :  { %v4889_v27 = vmul.f32 1.25, %v4859_v44 }
 0x372   :  { %v4730_v56 = vpop.f32.mrf.mxu3 }
 0x373   :  { %v4895_v18 = vsel %vm4873_vm0, %v4889_v27, 0.0  ;;  %v4731_v17 = vadd.f32 %v4730_v56, %v4717_v61 }
 0x374   :  { %4901 = vst [vmem:[#allocation13] sm:$0xff] %v4895_v18  ;;  %v4828_v40 = vpop.f32.mrf.mxu2 }
 0x375   :  { %v4848_v32 = vadd.f32 %v4731_v17, %v8286_v45  ;;  %v4798_v38 = vpop.f32.mrf.mxu0 }
 0x376   :  { %v4813_v47 = vadd.f32 %v4812_v49, %v4798_v38 }
 0x377   :  { %v4862_v29 = vadd.f32 %v4853_v51, %v4848_v32  ;;  %v4870_v51 = vld [vmem:[#allocation11 + $0x28] sm:$0xff] }
 0x378   :  { %v7238_v63 = vxor.u32 2147483648, %v4870_v51 }
 0x379   :  { %v4892_v13 = vmul.f32 1.25, %v4862_v29 }
 0x37a   :  { %v4784_v58 = vpop.f32.mrf.mxu3  ;;  %vm4888_vm5 = vcmp.ge.s32.totalorder %v7238_v63, 3006477107 }
 0x37b   :  { %v4898_v37 = vsel %vm4882_vm1, %v4892_v13, 0.0  ;;  %v4785_v59 = vadd.f32 %v4784_v58, %v4771_v30 }
 0x37c   :  { %4904 = vst [vmem:[#allocation13 + $0x18] sm:$0xff] %v4898_v37 }
 0x37d   :  { %v4846_v15 = vadd.f32 %v4785_v59, %v8295_v28  ;;  %v4827_v28 = vadd.f32 %v4826_v60, %v4813_v47  ;;  %v4800_v14 = vpop.f32.mrf.mxu0 }
 0x37e   :  { %v4815_v39 = vadd.f32 %v4814_v11, %v4800_v14 }
 0x37f   :  { %v4860_v45 = vadd.f32 %v4854_v21, %v4846_v15 }
 0x380   :  { %v4829_v16 = vadd.f32 %v4828_v40, %v4815_v39 }
 0x381   :  { %v4890_v0 = vmul.f32 1.25, %v4860_v45 }
 0x382   :  { %v4786_v54 = vpop.f32.mrf.mxu3 }
 0x383   :  { %v4896_v4 = vsel %vm4876_vm2, %v4890_v0, 0.0  ;;  %v4787_v5 = vadd.f32 %v4786_v54, %v4773_v36 }
 0x384   :  { %4902 = vst [vmem:[#allocation13 + $0x8] sm:$0xff] %v4896_v4 }
 0x385   :  { %v4849_v1 = vadd.f32 %v4787_v5, %v8297_v41 }
 0x387   :  { %v4863_v43 = vadd.f32 %v4854_v21, %v4849_v1 }
 0x389   :  { %v4893_v12 = vmul.f32 1.25, %v4863_v43 }
 0x38a   :  { %v4840_v57 = vpop.f32.mrf.mxu3 }
 0x38b   :  { %v4899_v6 = vsel %vm4885_vm3, %v4893_v12, 0.0  ;;  %v4841_v7 = vadd.f32 %v4840_v57, %v4827_v28 }
 0x38c   :  { %4905 = vst [vmem:[#allocation13 + $0x20] sm:$0xff] %v4899_v6 }
 0x38d   :  { %v4847_v31 = vadd.f32 %v4841_v7, %v8301_v33 }
 0x38f   :  { %v4861_v41 = vadd.f32 %v4855_v10, %v4847_v31 }
 0x391   :  { %v4891_v19 = vmul.f32 1.25, %v4861_v41 }
 0x392   :  { %v4842_v34 = vpop.f32.mrf.mxu3 }
 0x393   :  { %v4897_v22 = vsel %vm4879_vm4, %v4891_v19, 0.0  ;;  %v4843_v55 = vadd.f32 %v4842_v34, %v4829_v16 }
 0x394   :  { %4903 = vst [vmem:[#allocation13 + $0x10] sm:$0xff] %v4897_v22 }
 0x395   :  { %v4850_v3 = vadd.f32 %v4843_v55, %v8303_v46 }
 0x397   :  { %v4864_v2 = vadd.f32 %v4855_v10, %v4850_v3 }
 0x399   :  { %v4894_v33 = vmul.f32 1.25, %v4864_v2 }
 0x39b   :  { %v4900_v44 = vsel %vm4888_vm5, %v4894_v33, 0.0 }
 0x39c   :  { %4906 = vst [vmem:[#allocation13 + $0x28] sm:$0xff] %v4900_v44 }
 0x39d   :  { %4919 = dma.vmem_to_hbm [thread:$0]  %s4912_s5, 768, %s4914_s7, [#allocation4], %s8013_s17, %s8013_s17, %s8014_s18  }
 0x39e   :  { %8004 = dma.done.wait [#allocation4], 768  }
 0x39f   :  { %8005 = vsyncadd [#allocation4], 4294966528 }
 0x3a0   :  { %4924 = vsyncpa [#allocation3], 1 }
 0x3a1   :  { %4925 = vsyncpa [#allocation6], 1 }
 0x3a2   :  { %4926 = vsyncpa [#allocation9], 1 }
 0x3a3   :  { %4927 = vsyncpa [#allocation12], 1 }
 0x3a4   :  { %4928 = vsyncpa [#allocation4], 1 }

</bundles_post_ra>
